<compile_context>
chip_gen: v5e
topology: v5e:2x2
jax: 0.10.0
libtpu: 0.0.40
codegen_flags: <defaults>
</compile_context>

<pallas_src>
import math
import functools

import numpy as np
import jax
import jax.numpy as jnp
from jax import lax
from jax.experimental import pallas as pl
from jax.experimental.pallas import tpu as pltpu


# ----------------------------- Pallas kernel -------------------------------
def _swin_block_kernel(x_ref, bias_ref, mask_ref,
                       wq_ref, bq_ref, wk_ref, bk_ref, wv_ref, bv_ref,
                       wp_ref, bp_ref, w1_ref, b1_ref, w2_ref, b2_ref,
                       o_ref):
    xt = x_ref[...]                             # (T, C) f32 tokens of one batch elem
    T, C = xt.shape
    nh, N, _ = bias_ref.shape
    nW = mask_ref.shape[0]
    dh = C // nh

    # --- LayerNorm 1 (gamma/beta folded into Wq/Wk/Wv wrapper-side) ---
    mu = jnp.mean(xt, axis=-1, keepdims=True)
    var = jnp.mean(jnp.square(xt - mu), axis=-1, keepdims=True)
    xn = ((xt - mu) * lax.rsqrt(var + 1e-5)).astype(jnp.bfloat16)

    # --- dense 2-D projections, bf16 operands / f32 accumulation on the MXU ---
    # (qk scale is folded into wq/bq wrapper-side.)
    q2 = jnp.dot(xn, wq_ref[...], preferred_element_type=jnp.float32) + bq_ref[...]
    k2 = jnp.dot(xn, wk_ref[...], preferred_element_type=jnp.float32) + bk_ref[...]
    v2 = jnp.dot(xn, wv_ref[...], preferred_element_type=jnp.float32) + bv_ref[...]

    def to_heads(t2d):
        # (T, C) -> (nh*nW, N, dh), head-major batch; static lane slices + stack.
        hs = jnp.stack([t2d[:, h * dh:(h + 1) * dh] for h in range(nh)], axis=0)
        return hs.reshape(nh * nW, N, dh).astype(jnp.bfloat16)

    qh = to_heads(q2)
    kh = to_heads(k2)
    vh = to_heads(v2)

    # --- attention scores, batched over (head, window) ---
    dn_s = (((2,), (2,)), ((0,), (0,)))
    s = lax.dot_general(qh, kh, dn_s, preferred_element_type=jnp.float32)
    # add relative-position bias (per head) and shift mask (per window)
    s = (s.reshape(nh, nW, N, N)
         + bias_ref[...][:, None, :, :]
         + mask_ref[...][None, :, :, :]).reshape(nh * nW, N, N)

    # --- softmax over keys (approx reciprocal runs on the EUP) ---
    s = s - jnp.max(s, axis=-1, keepdims=True)
    e = jnp.exp(s)
    p = (e * pl.reciprocal(jnp.sum(e, axis=-1, keepdims=True), approx=True)
         ).astype(jnp.bfloat16)

    # --- attention @ V ---
    dn_v = (((2,), (1,)), ((0,), (0,)))
    ctx = lax.dot_general(p, vh, dn_v,
                          preferred_element_type=jnp.float32)   # (nh*nW, N, dh)

    # --- heads back to lanes (token-major), one dense K=C output projection ---
    ctx_h = ctx.reshape(nh, T, dh)
    ctx_cat = jnp.concatenate([ctx_h[h] for h in range(nh)], axis=-1)   # (T, C)
    attn = jnp.dot(ctx_cat.astype(jnp.bfloat16), wp_ref[...],
                   preferred_element_type=jnp.float32) + bp_ref[...]

    # --- residual 1 (f32) ---
    y = xt + attn

    # --- LayerNorm 2 (affine folded into fc1 wrapper-side) + MLP ---
    mu2 = jnp.mean(y, axis=-1, keepdims=True)
    var2 = jnp.mean(jnp.square(y - mu2), axis=-1, keepdims=True)
    yn = ((y - mu2) * lax.rsqrt(var2 + 1e-5)).astype(jnp.bfloat16)

    h1 = jnp.dot(yn, w1_ref[...], preferred_element_type=jnp.float32) + b1_ref[...]
    # TODO(synk): PyTorch nn.GELU defaults to exact erf GELU; Mosaic has no erf
    # lowering, so the tanh approximation is used (~1e-3 abs deviation).
    cg = math.sqrt(2.0 / math.pi)
    h1 = 0.5 * h1 * (1.0 + jnp.tanh(cg * (h1 + 0.044715 * (h1 * h1 * h1))))
    m = jnp.dot(h1.astype(jnp.bfloat16), w2_ref[...],
                preferred_element_type=jnp.float32) + b2_ref[...]

    # --- residual 2: direct (T, C) store, no reshape ---
    o_ref[...] = y + m


# ------------------------------ JAX glue ------------------------------------
def _window_partition(x, ws):
    B, H, W, C = x.shape
    x = x.reshape(B, H // ws, ws, W // ws, ws, C)
    x = jnp.transpose(x, (0, 1, 3, 2, 4, 5))
    return x.reshape(-1, ws * ws, C)


def _window_reverse(windows, ws, H, W):
    B = windows.shape[0] // ((H // ws) * (W // ws))
    x = windows.reshape(B, H // ws, W // ws, ws, ws, -1)
    x = jnp.transpose(x, (0, 1, 3, 2, 4, 5))
    return x.reshape(B, H, W, -1)


def _relative_position_index(ws):
    coords = np.stack(np.meshgrid(np.arange(ws), np.arange(ws), indexing="ij"))
    cf = coords.reshape(2, -1)
    rel = (cf[:, :, None] - cf[:, None, :]).transpose(1, 2, 0).astype(np.int64)
    rel[:, :, 0] += ws - 1
    rel[:, :, 1] += ws - 1
    rel[:, :, 0] *= 2 * ws - 1
    return rel.sum(-1)                                           # (N, N)


def _shift_attn_mask(H, W, ws, shift):
    nW = (H // ws) * (W // ws)
    N = ws * ws
    if shift == 0:
        return np.zeros((nW, N, N), np.float32)
    img_mask = np.zeros((1, H, W, 1), np.float32)
    slices = (slice(0, -ws), slice(-ws, -shift), slice(-shift, None))
    cnt = 0
    for hs in slices:
        for wsl in slices:
            img_mask[:, hs, wsl, :] = cnt
            cnt += 1
    mw = img_mask.reshape(1, H // ws, ws, W // ws, ws, 1)
    mw = mw.transpose(0, 1, 3, 2, 4, 5).reshape(-1, N)
    diff = mw[:, None, :] - mw[:, :, None]
    return np.where(diff != 0, -100.0, 0.0).astype(np.float32)


def _fold_params(params, C, num_heads):
    """Fold LN affines and the q-scale into the following linears; bf16 weights."""
    dh = C // num_heads
    scale = float(dh) ** -0.5
    g1, be1 = params["gamma1"], params["beta1"]
    g2, be2 = params["gamma2"], params["beta2"]
    wq = ((g1[:, None] * params["wq"]) * scale).astype(jnp.bfloat16)
    bq = ((params["bq"] + be1 @ params["wq"]) * scale).reshape(1, C)
    wk = (g1[:, None] * params["wk"]).astype(jnp.bfloat16)
    bk = (params["bk"] + be1 @ params["wk"]).reshape(1, C)
    wv = (g1[:, None] * params["wv"]).astype(jnp.bfloat16)
    bv = (params["bv"] + be1 @ params["wv"]).reshape(1, C)
    wp = params["wproj"].astype(jnp.bfloat16)
    bp = params["bproj"].reshape(1, C)
    w1 = (g2[:, None] * params["w1"]).astype(jnp.bfloat16)
    b1 = (params["b1"] + be2 @ params["w1"]).reshape(1, -1)
    w2 = params["w2"].astype(jnp.bfloat16)
    b2 = params["b2"].reshape(1, C)
    return wq, bq, wk, bk, wv, bv, wp, bp, w1, b1, w2, b2


def swin_block_forward(x, params, *, H, W, num_heads, window_size, shift_size):
    B, L, C = x.shape
    ws = window_size
    nW = (H // ws) * (W // ws)
    N = ws * ws
    T = nW * N
    nh = num_heads

    # --- layout glue: cyclic shift + window partition (token permutations) ---
    xi = x.reshape(B, H, W, C)
    if shift_size > 0:
        xi = jnp.roll(xi, shift=(-shift_size, -shift_size), axis=(1, 2))
    xw = _window_partition(xi, ws).reshape(B * T, C)             # (B*T, C)

    # --- relative-position bias (per head) and shift mask (per window) ---
    idx = _relative_position_index(ws).reshape(-1)               # host numpy, trace-time
    bias = jnp.take(params["rel_bias_table"], jnp.asarray(idx), axis=0)
    bias = jnp.transpose(bias.reshape(N, N, nh), (2, 0, 1)).astype(jnp.float32)
    mask = jnp.asarray(_shift_attn_mask(H, W, ws, shift_size))   # (nW, N, N)

    (wq, bq, wk, bk, wv, bv, wp, bp, w1, b1, w2, b2) = _fold_params(params, C, nh)
    hidden = w1.shape[1]

    out_flat = pl.pallas_call(
        _swin_block_kernel,
        out_shape=jax.ShapeDtypeStruct((B * T, C), jnp.float32),
        grid=(B,),
        in_specs=[
            pl.BlockSpec((T, C), lambda b: (b, 0)),              # tokens of batch b
            pl.BlockSpec((nh, N, N), lambda b: (0, 0, 0)),       # rel-pos bias
            pl.BlockSpec((nW, N, N), lambda b: (0, 0, 0)),       # shift mask
            pl.BlockSpec((C, C), lambda b: (0, 0)),              # Wq (LN1+scale folded)
            pl.BlockSpec((1, C), lambda b: (0, 0)),              # bq
            pl.BlockSpec((C, C), lambda b: (0, 0)),              # Wk
            pl.BlockSpec((1, C), lambda b: (0, 0)),              # bk
            pl.BlockSpec((C, C), lambda b: (0, 0)),              # Wv
            pl.BlockSpec((1, C), lambda b: (0, 0)),              # bv
            pl.BlockSpec((C, C), lambda b: (0, 0)),              # Wproj
            pl.BlockSpec((1, C), lambda b: (0, 0)),              # bproj
            pl.BlockSpec((C, hidden), lambda b: (0, 0)),         # fc1 (LN2 folded)
            pl.BlockSpec((1, hidden), lambda b: (0, 0)),         # b1
            pl.BlockSpec((hidden, C), lambda b: (0, 0)),         # fc2
            pl.BlockSpec((1, C), lambda b: (0, 0)),              # b2
        ],
        out_specs=pl.BlockSpec((T, C), lambda b: (b, 0)),
        compiler_params=pltpu.CompilerParams(
            # one step per TC on v7x; one extra ~0.35us step on single-TC v5e/v6e
            dimension_semantics=("parallel",)),
    )(xw, bias, mask, wq, bq, wk, bk, wv, bv, wp, bp, w1, b1, w2, b2)

    # --- reverse layout glue ---
    xo = _window_reverse(out_flat.reshape(B * nW, N, C), ws, H, W)
    if shift_size > 0:
        xo = jnp.roll(xo, shift=(shift_size, shift_size), axis=(1, 2))
    return xo.reshape(B, L, C)


def basic_layer_forward(x, block_params_list, *, input_resolution, num_heads,
                        window_size):
    H, W = input_resolution
    for i, params in enumerate(block_params_list):
        ws = window_size
        shift = 0 if i % 2 == 0 else window_size // 2
        if min(H, W) <= ws:            # SwinTransformerBlock clamping rule
            shift = 0
            ws = min(H, W)
        x = swin_block_forward(x, params, H=H, W=W, num_heads=num_heads,
                               window_size=ws, shift_size=shift)
    # TODO(synk): BasicLayer default downsample=None and no downsample class is
    # given in the spec, so no downsample stage is applied.
    # NOTE: Dropout / DropPath are identity at eval (p=0.0) and therefore omitted.
    return x


# --------------------------------- main --------------------------------------
def _init_block_params(key, C, hidden, num_heads, ws):
    ks = jax.random.split(key, 13)
    s = 0.05
    # Linear weights stored (in, out): y = x @ W + b.
    return {
        "wq": s * jax.random.normal(ks[0], (C, C), jnp.float32),
        "wk": s * jax.random.normal(ks[1], (C, C), jnp.float32),
        "wv": s * jax.random.normal(ks[2], (C, C), jnp.float32),
        "bq": s * jax.random.normal(ks[3], (C,), jnp.float32),
        "bk": s * jax.random.normal(ks[4], (C,), jnp.float32),
        "bv": s * jax.random.normal(ks[5], (C,), jnp.float32),
        "wproj": s * jax.random.normal(ks[6], (C, C), jnp.float32),
        "bproj": s * jax.random.normal(ks[7], (C,), jnp.float32),
        "gamma1": jnp.ones((C,), jnp.float32),
        "beta1": jnp.zeros((C,), jnp.float32),
        "gamma2": jnp.ones((C,), jnp.float32),
        "beta2": jnp.zeros((C,), jnp.float32),
        "w1": s * jax.random.normal(ks[8], (C, hidden), jnp.float32),
        "b1": s * jax.random.normal(ks[9], (hidden,), jnp.float32),
        "w2": s * jax.random.normal(ks[10], (hidden, C), jnp.float32),
        "b2": s * jax.random.normal(ks[11], (C,), jnp.float32),
        "rel_bias_table": 0.02 * jax.random.normal(
            ks[12], ((2 * ws - 1) ** 2, num_heads), jnp.float32),
    }


if __name__ == "__main__":
    B = 2
    H_img, W_img = 8, 8          # input_resolution
    C = 32                       # dim
    depth = 2                    # one regular + one shifted block
    num_heads = 4                # head_dim = 8
    window_size = 4              # nW = 4, N = 16 tokens per window
    mlp_ratio = 4.0
    hidden = int(C * mlp_ratio)
    L = H_img * W_img

    key = jax.random.PRNGKey(0)
    key, xkey = jax.random.split(key)
    x = jax.random.normal(xkey, (B, L, C), jnp.float32)

    eff_ws = min(window_size, min(H_img, W_img))
    blocks = []
    for _ in range(depth):
        key, bkey = jax.random.split(key)
        blocks.append(_init_block_params(bkey, C, hidden, num_heads, eff_ws))

    forward = jax.jit(functools.partial(
        basic_layer_forward, input_resolution=(H_img, W_img),
        num_heads=num_heads, window_size=window_size))

    out = forward(x, blocks)
    jax.block_until_ready(out)
    assert out.shape == (B, L, C) and out.dtype == jnp.float32
    print("KERNEL_OK")
</pallas_src>

<mosaic_0001>
module attributes {stable_mosaic.version = 11 : i64} {
  func.func @_swin_block_kernel(%arg0: i32, %arg1: memref<64x32xf32, #tpu.memory_space<vmem>>, %arg2: memref<4x16x16xf32, #tpu.memory_space<vmem>>, %arg3: memref<4x16x16xf32, #tpu.memory_space<vmem>>, %arg4: memref<32x32xbf16, #tpu.memory_space<vmem>>, %arg5: memref<1x32xf32, #tpu.memory_space<vmem>>, %arg6: memref<32x32xbf16, #tpu.memory_space<vmem>>, %arg7: memref<1x32xf32, #tpu.memory_space<vmem>>, %arg8: memref<32x32xbf16, #tpu.memory_space<vmem>>, %arg9: memref<1x32xf32, #tpu.memory_space<vmem>>, %arg10: memref<32x32xbf16, #tpu.memory_space<vmem>>, %arg11: memref<1x32xf32, #tpu.memory_space<vmem>>, %arg12: memref<32x128xbf16, #tpu.memory_space<vmem>>, %arg13: memref<1x128xf32, #tpu.memory_space<vmem>>, %arg14: memref<128x32xbf16, #tpu.memory_space<vmem>>, %arg15: memref<1x32xf32, #tpu.memory_space<vmem>>, %arg16: memref<64x32xf32, #tpu.memory_space<vmem>>) attributes {dimension_semantics = [#tpu.dimension_semantics<parallel>], iteration_bounds = array<i64: 2>, scalar_prefetch = 0 : i64, scratch_operands = 0 : i64, tpu.core_type = #tpu.core_type<tc>, window_params = [{transform_indices = @transform_0, window_bounds = array<i64: 64, 32>}, {pipeline_mode = #tpu.pipeline_mode<synchronous>, transform_indices = @transform_1, window_bounds = array<i64: 4, 16, 16>}, {pipeline_mode = #tpu.pipeline_mode<synchronous>, transform_indices = @transform_2, window_bounds = array<i64: 4, 16, 16>}, {pipeline_mode = #tpu.pipeline_mode<synchronous>, transform_indices = @transform_3, window_bounds = array<i64: 32, 32>}, {pipeline_mode = #tpu.pipeline_mode<synchronous>, transform_indices = @transform_4, window_bounds = array<i64: 1, 32>}, {pipeline_mode = #tpu.pipeline_mode<synchronous>, transform_indices = @transform_5, window_bounds = array<i64: 32, 32>}, {pipeline_mode = #tpu.pipeline_mode<synchronous>, transform_indices = @transform_6, window_bounds = array<i64: 1, 32>}, {pipeline_mode = #tpu.pipeline_mode<synchronous>, transform_indices = @transform_7, window_bounds = array<i64: 32, 32>}, {pipeline_mode = #tpu.pipeline_mode<synchronous>, transform_indices = @transform_8, window_bounds = array<i64: 1, 32>}, {pipeline_mode = #tpu.pipeline_mode<synchronous>, transform_indices = @transform_9, window_bounds = array<i64: 32, 32>}, {pipeline_mode = #tpu.pipeline_mode<synchronous>, transform_indices = @transform_10, window_bounds = array<i64: 1, 32>}, {pipeline_mode = #tpu.pipeline_mode<synchronous>, transform_indices = @transform_11, window_bounds = array<i64: 32, 128>}, {pipeline_mode = #tpu.pipeline_mode<synchronous>, transform_indices = @transform_12, window_bounds = array<i64: 1, 128>}, {pipeline_mode = #tpu.pipeline_mode<synchronous>, transform_indices = @transform_13, window_bounds = array<i64: 128, 32>}, {pipeline_mode = #tpu.pipeline_mode<synchronous>, transform_indices = @transform_14, window_bounds = array<i64: 1, 32>}, {transform_indices = @transform_15, window_bounds = array<i64: 64, 32>}]} {
    %c0 = arith.constant 0 : index
    %c0_0 = arith.constant 0 : index
    %0 = vector.load %arg1[%c0, %c0_0] : memref<64x32xf32, #tpu.memory_space<vmem>>, vector<64x32xf32>
    %cst = arith.constant dense<0.000000e+00> : vector<64xf32>
    %1 = vector.multi_reduction <add>, %0, %cst [1] : vector<64x32xf32> to vector<64xf32>
    %2 = vector.shape_cast %1 : vector<64xf32> to vector<64x1xf32>
    %cst_1 = arith.constant 3.200000e+01 : f32
    %3 = vector.broadcast %cst_1 : f32 to vector<64x1xf32>
    %4 = arith.divf %2, %3 : vector<64x1xf32>
    %5 = vector.broadcast %4 : vector<64x1xf32> to vector<64x32xf32>
    %6 = arith.subf %0, %5 : vector<64x32xf32>
    %7 = arith.mulf %6, %6 : vector<64x32xf32>
    %cst_2 = arith.constant dense<0.000000e+00> : vector<64xf32>
    %8 = vector.multi_reduction <add>, %7, %cst_2 [1] : vector<64x32xf32> to vector<64xf32>
    %9 = vector.shape_cast %8 : vector<64xf32> to vector<64x1xf32>
    %cst_3 = arith.constant 3.200000e+01 : f32
    %10 = vector.broadcast %cst_3 : f32 to vector<64x1xf32>
    %11 = arith.divf %9, %10 : vector<64x1xf32>
    %12 = vector.broadcast %4 : vector<64x1xf32> to vector<64x32xf32>
    %13 = arith.subf %0, %12 : vector<64x32xf32>
    %cst_4 = arith.constant 9.99999974E-6 : f32
    %14 = vector.broadcast %cst_4 : f32 to vector<64x1xf32>
    %15 = arith.addf %11, %14 : vector<64x1xf32>
    %16 = math.rsqrt %15 : vector<64x1xf32>
    %17 = vector.broadcast %16 : vector<64x1xf32> to vector<64x32xf32>
    %18 = arith.mulf %13, %17 : vector<64x32xf32>
    %19 = arith.truncf %18 : vector<64x32xf32> to vector<64x32xbf16>
    %c0_5 = arith.constant 0 : index
    %c0_6 = arith.constant 0 : index
    %20 = vector.load %arg4[%c0_5, %c0_6] : memref<32x32xbf16, #tpu.memory_space<vmem>>, vector<32x32xbf16>
    %cst_7 = arith.constant dense<0.000000e+00> : vector<64x32xf32>
    %21 = tpu.matmul %19, %20, %cst_7 {dimension_numbers = #tpu.dot_dimension_numbers<[1], [0], [0], [1], [0, 0, 1, 1], [], []>} : vector<64x32xbf16>, vector<32x32xbf16>, vector<64x32xf32> -> vector<64x32xf32>
    %c0_8 = arith.constant 0 : index
    %c0_9 = arith.constant 0 : index
    %22 = vector.load %arg5[%c0_8, %c0_9] : memref<1x32xf32, #tpu.memory_space<vmem>>, vector<1x32xf32>
    %23 = vector.broadcast %22 : vector<1x32xf32> to vector<64x32xf32>
    %24 = arith.addf %21, %23 : vector<64x32xf32>
    %c0_10 = arith.constant 0 : index
    %c0_11 = arith.constant 0 : index
    %25 = vector.load %arg6[%c0_10, %c0_11] : memref<32x32xbf16, #tpu.memory_space<vmem>>, vector<32x32xbf16>
    %cst_12 = arith.constant dense<0.000000e+00> : vector<64x32xf32>
    %26 = tpu.matmul %19, %25, %cst_12 {dimension_numbers = #tpu.dot_dimension_numbers<[1], [0], [0], [1], [0, 0, 1, 1], [], []>} : vector<64x32xbf16>, vector<32x32xbf16>, vector<64x32xf32> -> vector<64x32xf32>
    %c0_13 = arith.constant 0 : index
    %c0_14 = arith.constant 0 : index
    %27 = vector.load %arg7[%c0_13, %c0_14] : memref<1x32xf32, #tpu.memory_space<vmem>>, vector<1x32xf32>
    %28 = vector.broadcast %27 : vector<1x32xf32> to vector<64x32xf32>
    %29 = arith.addf %26, %28 : vector<64x32xf32>
    %c0_15 = arith.constant 0 : index
    %c0_16 = arith.constant 0 : index
    %30 = vector.load %arg8[%c0_15, %c0_16] : memref<32x32xbf16, #tpu.memory_space<vmem>>, vector<32x32xbf16>
    %cst_17 = arith.constant dense<0.000000e+00> : vector<64x32xf32>
    %31 = tpu.matmul %19, %30, %cst_17 {dimension_numbers = #tpu.dot_dimension_numbers<[1], [0], [0], [1], [0, 0, 1, 1], [], []>} : vector<64x32xbf16>, vector<32x32xbf16>, vector<64x32xf32> -> vector<64x32xf32>
    %c0_18 = arith.constant 0 : index
    %c0_19 = arith.constant 0 : index
    %32 = vector.load %arg9[%c0_18, %c0_19] : memref<1x32xf32, #tpu.memory_space<vmem>>, vector<1x32xf32>
    %33 = vector.broadcast %32 : vector<1x32xf32> to vector<64x32xf32>
    %34 = arith.addf %31, %33 : vector<64x32xf32>
    %35 = vector.extract_strided_slice %24 {offsets = [0, 0], sizes = [64, 8], strides = [1, 1]} : vector<64x32xf32> to vector<64x8xf32>
    %36 = vector.extract_strided_slice %24 {offsets = [0, 8], sizes = [64, 8], strides = [1, 1]} : vector<64x32xf32> to vector<64x8xf32>
    %37 = vector.extract_strided_slice %24 {offsets = [0, 16], sizes = [64, 8], strides = [1, 1]} : vector<64x32xf32> to vector<64x8xf32>
    %38 = vector.extract_strided_slice %24 {offsets = [0, 24], sizes = [64, 8], strides = [1, 1]} : vector<64x32xf32> to vector<64x8xf32>
    %39 = vector.shape_cast %35 : vector<64x8xf32> to vector<1x64x8xf32>
    %40 = vector.shape_cast %36 : vector<64x8xf32> to vector<1x64x8xf32>
    %41 = vector.shape_cast %37 : vector<64x8xf32> to vector<1x64x8xf32>
    %42 = vector.shape_cast %38 : vector<64x8xf32> to vector<1x64x8xf32>
    %43 = tpu.concatenate %39, %40, %41, %42 in 0 : vector<1x64x8xf32>, vector<1x64x8xf32>, vector<1x64x8xf32>, vector<1x64x8xf32> -> vector<4x64x8xf32>
    %44 = vector.shape_cast %43 : vector<4x64x8xf32> to vector<16x16x8xf32>
    %45 = arith.truncf %44 : vector<16x16x8xf32> to vector<16x16x8xbf16>
    %46 = vector.extract_strided_slice %29 {offsets = [0, 0], sizes = [64, 8], strides = [1, 1]} : vector<64x32xf32> to vector<64x8xf32>
    %47 = vector.extract_strided_slice %29 {offsets = [0, 8], sizes = [64, 8], strides = [1, 1]} : vector<64x32xf32> to vector<64x8xf32>
    %48 = vector.extract_strided_slice %29 {offsets = [0, 16], sizes = [64, 8], strides = [1, 1]} : vector<64x32xf32> to vector<64x8xf32>
    %49 = vector.extract_strided_slice %29 {offsets = [0, 24], sizes = [64, 8], strides = [1, 1]} : vector<64x32xf32> to vector<64x8xf32>
    %50 = vector.shape_cast %46 : vector<64x8xf32> to vector<1x64x8xf32>
    %51 = vector.shape_cast %47 : vector<64x8xf32> to vector<1x64x8xf32>
    %52 = vector.shape_cast %48 : vector<64x8xf32> to vector<1x64x8xf32>
    %53 = vector.shape_cast %49 : vector<64x8xf32> to vector<1x64x8xf32>
    %54 = tpu.concatenate %50, %51, %52, %53 in 0 : vector<1x64x8xf32>, vector<1x64x8xf32>, vector<1x64x8xf32>, vector<1x64x8xf32> -> vector<4x64x8xf32>
    %55 = vector.shape_cast %54 : vector<4x64x8xf32> to vector<16x16x8xf32>
    %56 = arith.truncf %55 : vector<16x16x8xf32> to vector<16x16x8xbf16>
    %57 = vector.extract_strided_slice %34 {offsets = [0, 0], sizes = [64, 8], strides = [1, 1]} : vector<64x32xf32> to vector<64x8xf32>
    %58 = vector.extract_strided_slice %34 {offsets = [0, 8], sizes = [64, 8], strides = [1, 1]} : vector<64x32xf32> to vector<64x8xf32>
    %59 = vector.extract_strided_slice %34 {offsets = [0, 16], sizes = [64, 8], strides = [1, 1]} : vector<64x32xf32> to vector<64x8xf32>
    %60 = vector.extract_strided_slice %34 {offsets = [0, 24], sizes = [64, 8], strides = [1, 1]} : vector<64x32xf32> to vector<64x8xf32>
    %61 = vector.shape_cast %57 : vector<64x8xf32> to vector<1x64x8xf32>
    %62 = vector.shape_cast %58 : vector<64x8xf32> to vector<1x64x8xf32>
    %63 = vector.shape_cast %59 : vector<64x8xf32> to vector<1x64x8xf32>
    %64 = vector.shape_cast %60 : vector<64x8xf32> to vector<1x64x8xf32>
    %65 = tpu.concatenate %61, %62, %63, %64 in 0 : vector<1x64x8xf32>, vector<1x64x8xf32>, vector<1x64x8xf32>, vector<1x64x8xf32> -> vector<4x64x8xf32>
    %66 = vector.shape_cast %65 : vector<4x64x8xf32> to vector<16x16x8xf32>
    %67 = arith.truncf %66 : vector<16x16x8xf32> to vector<16x16x8xbf16>
    %cst_20 = arith.constant dense<0.000000e+00> : vector<16x16x16xf32>
    %68 = tpu.matmul %45, %56, %cst_20 {dimension_numbers = #tpu.dot_dimension_numbers<[2], [2], [1], [1], [0, 0, 0, 1, 1, 1], [0], [0]>} : vector<16x16x8xbf16>, vector<16x16x8xbf16>, vector<16x16x16xf32> -> vector<16x16x16xf32>
    %69 = vector.shape_cast %68 : vector<16x16x16xf32> to vector<4x4x16x16xf32>
    %c0_21 = arith.constant 0 : index
    %c0_22 = arith.constant 0 : index
    %c0_23 = arith.constant 0 : index
    %70 = vector.load %arg2[%c0_21, %c0_22, %c0_23] : memref<4x16x16xf32, #tpu.memory_space<vmem>>, vector<4x16x16xf32>
    %71 = vector.shape_cast %70 : vector<4x16x16xf32> to vector<4x1x16x16xf32>
    %72 = vector.broadcast %71 : vector<4x1x16x16xf32> to vector<4x4x16x16xf32>
    %73 = arith.addf %69, %72 : vector<4x4x16x16xf32>
    %c0_24 = arith.constant 0 : index
    %c0_25 = arith.constant 0 : index
    %c0_26 = arith.constant 0 : index
    %74 = vector.load %arg3[%c0_24, %c0_25, %c0_26] : memref<4x16x16xf32, #tpu.memory_space<vmem>>, vector<4x16x16xf32>
    %75 = vector.shape_cast %74 : vector<4x16x16xf32> to vector<1x4x16x16xf32>
    %76 = vector.broadcast %75 : vector<1x4x16x16xf32> to vector<4x4x16x16xf32>
    %77 = arith.addf %73, %76 : vector<4x4x16x16xf32>
    %78 = vector.shape_cast %77 : vector<4x4x16x16xf32> to vector<16x16x16xf32>
    %cst_27 = arith.constant dense<0xFF800000> : vector<16x16xf32>
    %79 = vector.multi_reduction <maximumf>, %78, %cst_27 [2] : vector<16x16x16xf32> to vector<16x16xf32>
    %80 = vector.shape_cast %79 : vector<16x16xf32> to vector<16x16x1xf32>
    %81 = vector.broadcast %80 : vector<16x16x1xf32> to vector<16x16x16xf32>
    %82 = arith.subf %78, %81 : vector<16x16x16xf32>
    %83 = math.exp %82 : vector<16x16x16xf32>
    %cst_28 = arith.constant dense<0.000000e+00> : vector<16x16xf32>
    %84 = vector.multi_reduction <add>, %83, %cst_28 [2] : vector<16x16x16xf32> to vector<16x16xf32>
    %85 = vector.shape_cast %84 : vector<16x16xf32> to vector<16x16x1xf32>
    %86 = tpu.reciprocal %85 {approx = true} : vector<16x16x1xf32> -> vector<16x16x1xf32>
    %87 = vector.broadcast %86 : vector<16x16x1xf32> to vector<16x16x16xf32>
    %88 = arith.mulf %83, %87 : vector<16x16x16xf32>
    %89 = arith.truncf %88 : vector<16x16x16xf32> to vector<16x16x16xbf16>
    %cst_29 = arith.constant dense<0.000000e+00> : vector<16x16x8xf32>
    %90 = tpu.matmul %89, %67, %cst_29 {dimension_numbers = #tpu.dot_dimension_numbers<[2], [1], [1], [2], [0, 0, 0, 1, 1, 2], [0], [0]>} : vector<16x16x16xbf16>, vector<16x16x8xbf16>, vector<16x16x8xf32> -> vector<16x16x8xf32>
    %91 = vector.shape_cast %90 : vector<16x16x8xf32> to vector<4x64x8xf32>
    %92 = vector.extract_strided_slice %91 {offsets = [0, 0, 0], sizes = [1, 64, 8], strides = [1, 1, 1]} : vector<4x64x8xf32> to vector<1x64x8xf32>
    %93 = vector.shape_cast %92 : vector<1x64x8xf32> to vector<64x8xf32>
    %94 = vector.extract_strided_slice %91 {offsets = [1, 0, 0], sizes = [1, 64, 8], strides = [1, 1, 1]} : vector<4x64x8xf32> to vector<1x64x8xf32>
    %95 = vector.shape_cast %94 : vector<1x64x8xf32> to vector<64x8xf32>
    %96 = vector.extract_strided_slice %91 {offsets = [2, 0, 0], sizes = [1, 64, 8], strides = [1, 1, 1]} : vector<4x64x8xf32> to vector<1x64x8xf32>
    %97 = vector.shape_cast %96 : vector<1x64x8xf32> to vector<64x8xf32>
    %98 = vector.extract_strided_slice %91 {offsets = [3, 0, 0], sizes = [1, 64, 8], strides = [1, 1, 1]} : vector<4x64x8xf32> to vector<1x64x8xf32>
    %99 = vector.shape_cast %98 : vector<1x64x8xf32> to vector<64x8xf32>
    %100 = tpu.concatenate %93, %95, %97, %99 in 1 : vector<64x8xf32>, vector<64x8xf32>, vector<64x8xf32>, vector<64x8xf32> -> vector<64x32xf32>
    %101 = arith.truncf %100 : vector<64x32xf32> to vector<64x32xbf16>
    %c0_30 = arith.constant 0 : index
    %c0_31 = arith.constant 0 : index
    %102 = vector.load %arg10[%c0_30, %c0_31] : memref<32x32xbf16, #tpu.memory_space<vmem>>, vector<32x32xbf16>
    %cst_32 = arith.constant dense<0.000000e+00> : vector<64x32xf32>
    %103 = tpu.matmul %101, %102, %cst_32 {dimension_numbers = #tpu.dot_dimension_numbers<[1], [0], [0], [1], [0, 0, 1, 1], [], []>} : vector<64x32xbf16>, vector<32x32xbf16>, vector<64x32xf32> -> vector<64x32xf32>
    %c0_33 = arith.constant 0 : index
    %c0_34 = arith.constant 0 : index
    %104 = vector.load %arg11[%c0_33, %c0_34] : memref<1x32xf32, #tpu.memory_space<vmem>>, vector<1x32xf32>
    %105 = vector.broadcast %104 : vector<1x32xf32> to vector<64x32xf32>
    %106 = arith.addf %103, %105 : vector<64x32xf32>
    %107 = arith.addf %0, %106 : vector<64x32xf32>
    %cst_35 = arith.constant dense<0.000000e+00> : vector<64xf32>
    %108 = vector.multi_reduction <add>, %107, %cst_35 [1] : vector<64x32xf32> to vector<64xf32>
    %109 = vector.shape_cast %108 : vector<64xf32> to vector<64x1xf32>
    %cst_36 = arith.constant 3.200000e+01 : f32
    %110 = vector.broadcast %cst_36 : f32 to vector<64x1xf32>
    %111 = arith.divf %109, %110 : vector<64x1xf32>
    %112 = vector.broadcast %111 : vector<64x1xf32> to vector<64x32xf32>
    %113 = arith.subf %107, %112 : vector<64x32xf32>
    %114 = arith.mulf %113, %113 : vector<64x32xf32>
    %cst_37 = arith.constant dense<0.000000e+00> : vector<64xf32>
    %115 = vector.multi_reduction <add>, %114, %cst_37 [1] : vector<64x32xf32> to vector<64xf32>
    %116 = vector.shape_cast %115 : vector<64xf32> to vector<64x1xf32>
    %cst_38 = arith.constant 3.200000e+01 : f32
    %117 = vector.broadcast %cst_38 : f32 to vector<64x1xf32>
    %118 = arith.divf %116, %117 : vector<64x1xf32>
    %119 = vector.broadcast %111 : vector<64x1xf32> to vector<64x32xf32>
    %120 = arith.subf %107, %119 : vector<64x32xf32>
    %cst_39 = arith.constant 9.99999974E-6 : f32
    %121 = vector.broadcast %cst_39 : f32 to vector<64x1xf32>
    %122 = arith.addf %118, %121 : vector<64x1xf32>
    %123 = math.rsqrt %122 : vector<64x1xf32>
    %124 = vector.broadcast %123 : vector<64x1xf32> to vector<64x32xf32>
    %125 = arith.mulf %120, %124 : vector<64x32xf32>
    %126 = arith.truncf %125 : vector<64x32xf32> to vector<64x32xbf16>
    %c0_40 = arith.constant 0 : index
    %c0_41 = arith.constant 0 : index
    %127 = vector.load %arg12[%c0_40, %c0_41] : memref<32x128xbf16, #tpu.memory_space<vmem>>, vector<32x128xbf16>
    %cst_42 = arith.constant dense<0.000000e+00> : vector<64x128xf32>
    %128 = tpu.matmul %126, %127, %cst_42 {dimension_numbers = #tpu.dot_dimension_numbers<[1], [0], [0], [1], [0, 0, 1, 1], [], []>} : vector<64x32xbf16>, vector<32x128xbf16>, vector<64x128xf32> -> vector<64x128xf32>
    %c0_43 = arith.constant 0 : index
    %c0_44 = arith.constant 0 : index
    %129 = vector.load %arg13[%c0_43, %c0_44] : memref<1x128xf32, #tpu.memory_space<vmem>>, vector<1x128xf32>
    %130 = vector.broadcast %129 : vector<1x128xf32> to vector<64x128xf32>
    %131 = arith.addf %128, %130 : vector<64x128xf32>
    %cst_45 = arith.constant 5.000000e-01 : f32
    %132 = vector.broadcast %cst_45 : f32 to vector<64x128xf32>
    %133 = arith.mulf %132, %131 : vector<64x128xf32>
    %134 = arith.mulf %131, %131 : vector<64x128xf32>
    %135 = arith.mulf %134, %131 : vector<64x128xf32>
    %cst_46 = arith.constant 4.471500e-02 : f32
    %136 = vector.broadcast %cst_46 : f32 to vector<64x128xf32>
    %137 = arith.mulf %136, %135 : vector<64x128xf32>
    %138 = arith.addf %131, %137 : vector<64x128xf32>
    %cst_47 = arith.constant 0.797884583 : f32
    %139 = vector.broadcast %cst_47 : f32 to vector<64x128xf32>
    %140 = arith.mulf %139, %138 : vector<64x128xf32>
    %141 = math.tanh %140 : vector<64x128xf32>
    %cst_48 = arith.constant 1.000000e+00 : f32
    %142 = vector.broadcast %cst_48 : f32 to vector<64x128xf32>
    %143 = arith.addf %142, %141 : vector<64x128xf32>
    %144 = arith.mulf %133, %143 : vector<64x128xf32>
    %145 = arith.truncf %144 : vector<64x128xf32> to vector<64x128xbf16>
    %c0_49 = arith.constant 0 : index
    %c0_50 = arith.constant 0 : index
    %146 = vector.load %arg14[%c0_49, %c0_50] : memref<128x32xbf16, #tpu.memory_space<vmem>>, vector<128x32xbf16>
    %cst_51 = arith.constant dense<0.000000e+00> : vector<64x32xf32>
    %147 = tpu.matmul %145, %146, %cst_51 {dimension_numbers = #tpu.dot_dimension_numbers<[1], [0], [0], [1], [0, 0, 1, 1], [], []>} : vector<64x128xbf16>, vector<128x32xbf16>, vector<64x32xf32> -> vector<64x32xf32>
    %c0_52 = arith.constant 0 : index
    %c0_53 = arith.constant 0 : index
    %148 = vector.load %arg15[%c0_52, %c0_53] : memref<1x32xf32, #tpu.memory_space<vmem>>, vector<1x32xf32>
    %149 = vector.broadcast %148 : vector<1x32xf32> to vector<64x32xf32>
    %150 = arith.addf %147, %149 : vector<64x32xf32>
    %151 = arith.addf %107, %150 : vector<64x32xf32>
    %c0_54 = arith.constant 0 : index
    %c0_55 = arith.constant 0 : index
    %152 = vector.load %arg16[%c0_54, %c0_55] : memref<64x32xf32, #tpu.memory_space<vmem>>, vector<64x32xf32>
    tpu.vector_store %arg16[%c0_54, %c0_55], %151 {strides = array<i32>} : memref<64x32xf32, #tpu.memory_space<vmem>>, vector<64x32xf32>,
    return
  }
  func.func @transform_0(%arg0: i32) -> (i32, i32) {
    %c0_i32 = arith.constant 0 : i32
    %c0_i32_0 = arith.constant 0 : i32
    return %arg0, %c0_i32 : i32, i32
  }
  func.func @transform_1(%arg0: i32) -> (i32, i32, i32) {
    %c0_i32 = arith.constant 0 : i32
    %c0_i32_0 = arith.constant 0 : i32
    %c0_i32_1 = arith.constant 0 : i32
    %c0_i32_2 = arith.constant 0 : i32
    return %c0_i32, %c0_i32_0, %c0_i32_1 : i32, i32, i32
  }
  func.func @transform_2(%arg0: i32) -> (i32, i32, i32) {
    %c0_i32 = arith.constant 0 : i32
    %c0_i32_0 = arith.constant 0 : i32
    %c0_i32_1 = arith.constant 0 : i32
    %c0_i32_2 = arith.constant 0 : i32
    return %c0_i32, %c0_i32_0, %c0_i32_1 : i32, i32, i32
  }
  func.func @transform_3(%arg0: i32) -> (i32, i32) {
    %c0_i32 = arith.constant 0 : i32
    %c0_i32_0 = arith.constant 0 : i32
    %c0_i32_1 = arith.constant 0 : i32
    return %c0_i32, %c0_i32_0 : i32, i32
  }
  func.func @transform_4(%arg0: i32) -> (i32, i32) {
    %c0_i32 = arith.constant 0 : i32
    %c0_i32_0 = arith.constant 0 : i32
    %c0_i32_1 = arith.constant 0 : i32
    return %c0_i32, %c0_i32_0 : i32, i32
  }
  func.func @transform_5(%arg0: i32) -> (i32, i32) {
    %c0_i32 = arith.constant 0 : i32
    %c0_i32_0 = arith.constant 0 : i32
    %c0_i32_1 = arith.constant 0 : i32
    return %c0_i32, %c0_i32_0 : i32, i32
  }
  func.func @transform_6(%arg0: i32) -> (i32, i32) {
    %c0_i32 = arith.constant 0 : i32
    %c0_i32_0 = arith.constant 0 : i32
    %c0_i32_1 = arith.constant 0 : i32
    return %c0_i32, %c0_i32_0 : i32, i32
  }
  func.func @transform_7(%arg0: i32) -> (i32, i32) {
    %c0_i32 = arith.constant 0 : i32
    %c0_i32_0 = arith.constant 0 : i32
    %c0_i32_1 = arith.constant 0 : i32
    return %c0_i32, %c0_i32_0 : i32, i32
  }
  func.func @transform_8(%arg0: i32) -> (i32, i32) {
    %c0_i32 = arith.constant 0 : i32
    %c0_i32_0 = arith.constant 0 : i32
    %c0_i32_1 = arith.constant 0 : i32
    return %c0_i32, %c0_i32_0 : i32, i32
  }
  func.func @transform_9(%arg0: i32) -> (i32, i32) {
    %c0_i32 = arith.constant 0 : i32
    %c0_i32_0 = arith.constant 0 : i32
    %c0_i32_1 = arith.constant 0 : i32
    return %c0_i32, %c0_i32_0 : i32, i32
  }
  func.func @transform_10(%arg0: i32) -> (i32, i32) {
    %c0_i32 = arith.constant 0 : i32
    %c0_i32_0 = arith.constant 0 : i32
    %c0_i32_1 = arith.constant 0 : i32
    return %c0_i32, %c0_i32_0 : i32, i32
  }
  func.func @transform_11(%arg0: i32) -> (i32, i32) {
    %c0_i32 = arith.constant 0 : i32
    %c0_i32_0 = arith.constant 0 : i32
    %c0_i32_1 = arith.constant 0 : i32
    return %c0_i32, %c0_i32_0 : i32, i32
  }
  func.func @transform_12(%arg0: i32) -> (i32, i32) {
    %c0_i32 = arith.constant 0 : i32
    %c0_i32_0 = arith.constant 0 : i32
    %c0_i32_1 = arith.constant 0 : i32
    return %c0_i32, %c0_i32_0 : i32, i32
  }
  func.func @transform_13(%arg0: i32) -> (i32, i32) {
    %c0_i32 = arith.constant 0 : i32
    %c0_i32_0 = arith.constant 0 : i32
    %c0_i32_1 = arith.constant 0 : i32
    return %c0_i32, %c0_i32_0 : i32, i32
  }
  func.func @transform_14(%arg0: i32) -> (i32, i32) {
    %c0_i32 = arith.constant 0 : i32
    %c0_i32_0 = arith.constant 0 : i32
    %c0_i32_1 = arith.constant 0 : i32
    return %c0_i32, %c0_i32_0 : i32, i32
  }
  func.func @transform_15(%arg0: i32) -> (i32, i32) {
    %c0_i32 = arith.constant 0 : i32
    %c0_i32_0 = arith.constant 0 : i32
    return %arg0, %c0_i32 : i32, i32
  }
}

</mosaic_0001>

<bundles_post_ra>
// kernel: basic_layer_forward.2
= control target key start
LH: loop header
LB: loop body
LE: loop exit
PB: predicated region body
PF: predicated region fallthrough
CT: control target
= control target key end

     0   :  { %s3961_s18 = smov 0   ;;  %s5060_s0 = inlined_call_operand.vmem [shape: f32[128,32], index: 0, kind: input, shape index: {}]   ;;  %s5061_s1 = inlined_call_operand.vmem [shape: f32[4,16,16], index: 1, kind: input, shape index: {}]   ;;  %s5062_s2 = inlined_call_operand.vmem [shape: f32[4,16,16], index: 2, kind: input, shape index: {}]   ;;  %s5063_s3 = inlined_call_operand.vmem [shape: bf16[32,32], index: 3, kind: input, shape index: {}]   ;;  %s5064_s4 = inlined_call_operand.vmem [shape: f32[1,32], index: 4, kind: input, shape index: {}]   ;;  %s5065_s5 = inlined_call_operand.vmem [shape: bf16[32,32], index: 5, kind: input, shape index: {}]   ;;  %s5066_s6 = inlined_call_operand.vmem [shape: f32[1,32], index: 6, kind: input, shape index: {}]   ;;  %s5067_s7 = inlined_call_operand.vmem [shape: bf16[32,32], index: 7, kind: input, shape index: {}]   ;;  %s5068_s8 = inlined_call_operand.vmem [shape: f32[1,32], index: 8, kind: input, shape index: {}]   ;;  %s5069_s9 = inlined_call_operand.vmem [shape: bf16[32,32], index: 9, kind: input, shape index: {}]   ;;  %s5070_s10 = inlined_call_operand.vmem [shape: f32[1,32], index: 10, kind: input, shape index: {}]   ;;  %s5071_s11 = inlined_call_operand.vmem [shape: bf16[32,128], index: 11, kind: input, shape index: {}]   ;;  %s5072_s12 = inlined_call_operand.vmem [shape: f32[1,128], index: 12, kind: input, shape index: {}]   ;;  %s5073_s13 = inlined_call_operand.vmem [shape: bf16[128,32], index: 13, kind: input, shape index: {}]   ;;  %s5074_s14 = inlined_call_operand.vmem [shape: f32[1,32], index: 14, kind: input, shape index: {}]   ;;  %s5075_s15 = inlined_call_operand.vmem [shape: f32[128,32], index: 15, kind: output, shape index: {}]  }
   0x1 LB: > { %s3264_s19 = sadd.s32 4294967295, %s3872_s18   ;;  %p3268_p0 = scmp.ge.s32.totalorder %s3872_s18, 1  ;;  %s3872_s18 = sphi %s3961_s18, %s25_s18  }
   0x2   : > { %p438_p1 = scmp.lt.s32.totalorder %s3872_s18, 3 }
   0x4   : > { %p439_p2 = pnand %p3268_p0, %p438_p1 }
   0x5   : > { %s3269_s20 = sshll.u32 (!%p439_p2), %s3264_s19, 3  ;;  %s3875_s17 = smov (!%p439_p2), 120  }
   0x6   : > { %442 = sbr.rel (%p439_p2) target bundleno = 2126 (0x84e), region = 80  ;;  %p487_p3 = scmp.lt.s32.totalorder (!%p439_p2), %s3269_s20, 15 }
   0x7   : > { %s3876_s19 = smov (!%p439_p2), 104   ;;  %s3877_s22 = smov (!%p439_p2), 112  }
   0xb   : > { %s5079_s20 = smov (!%p487_p3, %s3269_s20), 15  ;;  %vm507_vm0 = vcmask 261120   ;;  %v3874_v14 = vmov 32.0   ;;  %v3400_v58 = vld [vmem:[%s5063_s3 + $0x8] sm:$0xff]  ;;  %v3399_v61 = vld [vmem:[%s5063_s3] sm:$0xff] }
   0xc   : > { %s3270_s21 = sshll.u32 %s5079_s20, 3  ;;  %3680 = vrcp.f32 %v3874_v14  ;;  %v3402_v59 = vld [vmem:[%s5065_s5 + $0x8] sm:$0xff]  ;;  %733 = vmatpush.bf16.msra.mxu0 %v3400_v58  ;;  %v3401_v62 = vld [vmem:[%s5065_s5] sm:$0xff] }
   0xd   : > { %s3977_s24 = scalar_lea.vmem %s5060_s0, %s3270_s21  ;;  %v3404_v60 = vld [vmem:[%s5067_s7 + $0x8] sm:$0xff]  ;;  %782 = vmatpush.bf16.msra.mxu1 %v3402_v59  ;;  %v3403_v63 = vld [vmem:[%s5067_s7] sm:$0xff]  ;;  %s496_s16 = scalar_lea.vmem %s5075_s15, %s3270_s21 }
   0xe   : > { %v503_v0 = vld [vmem:[%s3977_s24 + $0x20] sm:$0xff]  ;;  %v501_v1 = vld [vmem:[%s3977_s24 + $0x10] sm:$0xff]  ;;  %v504_v6 = vld [vmem:[%s3977_s24 + $0x28] sm:$0xff]  ;;  %831 = vmatpush.bf16.msra.mxu2 %v3404_v60  ;;  %3417 = vmatpush.bf16.msra.mxu3 %v3404_v60 }
   0xf   : > { %v499_v2 = vld [vmem:[%s3977_s24] sm:$0xff]  ;;  %v520_v3 = vsel %vm507_vm0, %v503_v0, 0.0  ;;  %v514_v4 = vsel %vm507_vm0, %v501_v1, 0.0  ;;  %v502_v7 = vld [vmem:[%s3977_s24 + $0x18] sm:$0xff]  ;;  %v500_v8 = vld [vmem:[%s3977_s24 + $0x8] sm:$0xff]  ;;  %v523_v9 = vsel %vm507_vm0, %v504_v6, 0.0 }
  0x10   : > { %v508_v5 = vsel %vm507_vm0, %v499_v2, 0.0  ;;  %521 = vadd.xlane.f32.xlu2 %v520_v3  ;;  %515 = vadd.xlane.f32.xlu1 %v514_v4  ;;  %v517_v10 = vsel %vm507_vm0, %v502_v7, 0.0  ;;  %v511_v11 = vsel %vm507_vm0, %v500_v8, 0.0  ;;  %v505_v12 = vld [vmem:[%s3977_s24 + $0x30] sm:$0xff]  ;;  %v506_v36 = vld [vmem:[%s3977_s24 + $0x38] sm:$0xff] }
  0x11   : > { %509 = vadd.xlane.f32.xlu0 %v508_v5  ;;  %v526_v13 = vsel %vm507_vm0, %v505_v12, 0.0  ;;  %v529_v41 = vsel %vm507_vm0, %v506_v36, 0.0  ;;  %734 = vmatpush.bf16.msra.mxu0 %v3399_v61 }
  0x12   : > { %v3681_v15 = vpop.eup %3680  ;;  %783 = vmatpush.bf16.msra.mxu1 %v3401_v62  ;;  %832 = vmatpush.bf16.msra.mxu2 %v3403_v63 }
  0x13   : > { %v533_v16 = vmul.f32 32.0, %v3681_v15  ;;  %vm537_vm1 = vweird.f32 %v3681_v15  ;;  %3418 = vmatpush.bf16.msra.mxu3 %v3403_v63 }
  0x15   : > { %v534_v17 = vsub.f32 1.0, %v533_v16 }
  0x17   : > { %v535_v18 = vmul.f32 %v3681_v15, %v534_v17 }
  0x18   : > { %524 = vadd.xlane.f32.xlu2 %v523_v9  ;;  %518 = vadd.xlane.f32.xlu1 %v517_v10 }
  0x19   : > { %512 = vadd.xlane.f32.xlu0 %v511_v11  ;;  %v536_v19 = vadd.f32 %v3681_v15, %v535_v18 }
  0x1b   : > { %v3993_v20 = vsel %vm537_vm1, %v3681_v15, %v536_v19 }
  0x20   : > { %527 = vadd.xlane.f32.xlu2 %v526_v13 }
  0x83   : > { %v522_v21 = vpop.xlane.xlu2 %521  ;;  %v516_v22 = vpop.xlane.xlu1 %515 }
  0x84   : > { %v510_v23 = vpop.xlane.xlu0 %509  ;;  %v543_v32 = vmul.f32 %v3993_v20, %v522_v21  ;;  %v541_v33 = vmul.f32 %v3993_v20, %v516_v22 }
  0x85   : > { %v539_v24 = vmul.f32 %v3993_v20, %v510_v23 }
  0x86   : > { %v4012_v39 = vsub.f32 %v503_v0, %v543_v32  ;;  %v4014_v40 = vsub.f32 %v501_v1, %v541_v33 }
  0x87   : > { %v3996_v25 = vsub.f32 %v499_v2, %v539_v24 }
  0x88   : > { %v559_v48 = vmul.f32 %v4012_v39, %v4012_v39  ;;  %v557_v49 = vmul.f32 %v4014_v40, %v4014_v40 }
  0x89   : > { %v555_v26 = vmul.f32 %v3996_v25, %v3996_v25 }
  0x8a   : > { %v575_v53 = vsel %vm507_vm0, %v559_v48, 0.0  ;;  %v569_v54 = vsel %vm507_vm0, %v557_v49, 0.0 }
  0x8b   : > { %v525_v27 = vpop.xlane.xlu2 %524  ;;  %v519_v28 = vpop.xlane.xlu1 %518  ;;  %v563_v29 = vsel %vm507_vm0, %v555_v26, 0.0 }
  0x8c   : > { %v542_v30 = vmul.f32 %v3993_v20, %v519_v28  ;;  %564 = vadd.xlane.f32.xlu0 %v563_v29  ;;  %v513_v31 = vpop.xlane.xlu0 %512  ;;  %v544_v47 = vmul.f32 %v3993_v20, %v525_v27 }
  0x8d   : > { %v540_v34 = vmul.f32 %v3993_v20, %v513_v31 }
  0x8e   : > { %v4005_v35 = vsub.f32 %v502_v7, %v542_v30  ;;  %v4031_v52 = vsub.f32 %v504_v6, %v544_v47 }
  0x8f   : > { %v4008_v37 = vsub.f32 %v500_v8, %v540_v34 }
  0x90   : > { %v558_v38 = vmul.f32 %v4005_v35, %v4005_v35  ;;  %v560_v56 = vmul.f32 %v4031_v52, %v4031_v52 }
  0x91   : > { %v556_v42 = vmul.f32 %v4008_v37, %v4008_v37 }
  0x92   : > { %v572_v43 = vsel %vm507_vm0, %v558_v38, 0.0  ;;  %v578_v57 = vsel %vm507_vm0, %v560_v56, 0.0 }
  0x93   : > { %v528_v44 = vpop.xlane.xlu2 %527  ;;  %573 = vadd.xlane.f32.xlu2 %v572_v43  ;;  %v566_v45 = vsel %vm507_vm0, %v556_v42, 0.0 }
  0x94   : > { %v545_v46 = vmul.f32 %v3993_v20, %v528_v44  ;;  %530 = vadd.xlane.f32.xlu0 %v529_v41  ;;  %567 = vadd.xlane.f32.xlu1 %v566_v45 }
  0x96   : > { %v4027_v50 = vsub.f32 %v505_v12, %v545_v46 }
  0x98   : > { %v561_v51 = vmul.f32 %v4027_v50, %v4027_v50 }
  0x9a   : > { %v581_v55 = vsel %vm507_vm0, %v561_v51, 0.0 }
  0x9b   : > { %582 = vadd.xlane.f32.xlu2 %v581_v55 }
  0x9c   : > { %576 = vadd.xlane.f32.xlu0 %v575_v53  ;;  %570 = vadd.xlane.f32.xlu1 %v569_v54 }
  0xa4   : > { %579 = vadd.xlane.f32.xlu1 %v578_v57 }
  0xff   : > { %v565_v0 = vpop.xlane.xlu0 %564 }
 0x100   : > { %v587_v1 = vmul.f32 %v565_v0, %v3993_v20 }
 0x102   : > { %v595_v2 = vadd.f32 1e-05, %v587_v1 }
 0x104   : > { %3682 = vrsqrt.f32 %v595_v2  ;;  %vm609_vm5 = vweird.f32 %v595_v2 }
 0x106   : > { %v574_v3 = vpop.xlane.xlu2 %573 }
 0x107   : > { %v590_v4 = vmul.f32 %v574_v3, %v3993_v20  ;;  %v568_v5 = vpop.xlane.xlu1 %567  ;;  %v531_v6 = vpop.xlane.xlu0 %530 }
 0x108   : > { %v588_v7 = vmul.f32 %v568_v5, %v3993_v20  ;;  %v546_v8 = vmul.f32 %v3993_v20, %v531_v6 }
 0x109   : > { %v598_v9 = vadd.f32 1e-05, %v590_v4 }
 0x10a   : > { %v3683_v10 = vpop.eup %3682  ;;  %v596_v11 = vadd.f32 1e-05, %v588_v7  ;;  %v4061_v12 = vsub.f32 %v506_v36, %v546_v8 }
 0x10b   : > { %v604_v13 = vmul.f32 %v3683_v10, %v595_v2  ;;  %3684 = vrsqrt.f32 %v598_v9  ;;  %vm610_vm2 = vweird.f32 %v3683_v10  ;;  %vm639_vm8 = vweird.f32 %v598_v9 }
 0x10c   : > { %3686 = vrsqrt.f32 %v596_v11  ;;  %v562_v14 = vmul.f32 %v4061_v12, %v4061_v12  ;;  %vm619_vm3 = vweird.f32 %v596_v11  ;;  %vm4072_vm6 = vmor %vm609_vm5, %vm610_vm2 }
 0x10d   : > { %v605_v15 = vmul.f32 %v3683_v10, %v604_v13 }
 0x10e   : > { %v584_v16 = vsel %vm507_vm0, %v562_v14, 0.0 }
 0x10f   : > { %v606_v17 = vmul.f32 0.5, %v605_v15  ;;  %v571_v18 = vpop.xlane.xlu1 %570  ;;  %585 = vadd.xlane.f32.xlu0 %v584_v16  ;;  %v577_v19 = vpop.xlane.xlu0 %576 }
 0x110   : > { %v589_v21 = vmul.f32 %v571_v18, %v3993_v20  ;;  %v591_v22 = vmul.f32 %v577_v19, %v3993_v20  ;;  %v583_v16 = vpop.xlane.xlu2 %582 }
 0x111   : > { %v3685_v23 = vpop.eup %3684  ;;  %v607_v29 = vsub.f32 1.5, %v606_v17  ;;  %v593_v17 = vmul.f32 %v583_v16, %v3993_v20 }
 0x112   : > { %v3687_v24 = vpop.eup %3686  ;;  %v634_v26 = vmul.f32 %v3685_v23, %v598_v9  ;;  %v597_v27 = vadd.f32 1e-05, %v589_v21  ;;  %v4068_v28 = vadd.f32 1e-05, %v591_v22  ;;  %vm640_vm9 = vweird.f32 %v3685_v23 }
 0x113   : > { %v614_v30 = vmul.f32 %v3687_v24, %v596_v11  ;;  %v608_v33 = vmul.f32 %v3683_v10, %v607_v29  ;;  %vm620_vm4 = vweird.f32 %v3687_v24  ;;  %vm641_vm12 = vmor %vm639_vm8, %vm640_vm9  ;;  %v601_v18 = vadd.f32 1e-05, %v593_v17 }
 0x114   : > { %v635_v31 = vmul.f32 %v3685_v23, %v634_v26  ;;  %3688 = vrsqrt.f32 %v597_v27  ;;  %vm621_vm7 = vmor %vm619_vm3, %vm620_vm4  ;;  %vm629_vm10 = vweird.f32 %v597_v27  ;;  %vm649_vm1 = vweird.f32 %v4068_v28 }
 0x115   : > { %v615_v32 = vmul.f32 %v3687_v24, %v614_v30  ;;  %3690 = vrsqrt.f32 %v4068_v28  ;;  %v612_v49 = vsel %vm4072_vm6, %v3683_v10, %v608_v33  ;;  %vm669_vm5 = vweird.f32 %v601_v18 }
 0x116   : > { %v636_v34 = vmul.f32 0.5, %v635_v31  ;;  %v683_v55 = vmul.f32 %v612_v49, %v3996_v25 }
 0x117   : > { %v616_v36 = vmul.f32 0.5, %v615_v32  ;;  %v580_v38 = vpop.xlane.xlu1 %579 }
 0x118   : > { %v592_v41 = vmul.f32 %v580_v38, %v3993_v20  ;;  %v637_v46 = vsub.f32 1.5, %v636_v34 }
 0x119   : > { %v617_v43 = vsub.f32 1.5, %v616_v36 }
 0x11a   : > { %v3689_v44 = vpop.eup %3688  ;;  %v600_v45 = vadd.f32 1e-05, %v592_v41  ;;  %v638_v57 = vmul.f32 %v3685_v23, %v637_v46 }
 0x11b   : > { %v618_v47 = vmul.f32 %v3687_v24, %v617_v43  ;;  %v624_v48 = vmul.f32 %v3689_v44, %v597_v27  ;;  %v3691_v51 = vpop.eup %3690  ;;  %vm630_vm11 = vweird.f32 %v3689_v44 }
 0x11c   : > { %3692 = vrsqrt.f32 %v600_v45  ;;  %v644_v59 = vmul.f32 %v3691_v51, %v4068_v28  ;;  %vm631_vm13 = vmor %vm629_vm10, %vm630_vm11  ;;  %v642_v25 = vsel %vm641_vm12, %v3685_v23, %v638_v57  ;;  %vm659_vm14 = vweird.f32 %v600_v45 }
 0x11d   : > { %v625_v53 = vmul.f32 %v3689_v44, %v624_v48  ;;  %v622_v54 = vsel %vm621_vm7, %v3687_v24, %v618_v47  ;;  %v686_v4 = vmul.f32 %v642_v25, %v4005_v35  ;;  %vm650_vm2 = vweird.f32 %v3691_v51  ;;  %v4116_v47 = vld [vmem:[%s5068_s8] ss:$0 sm:$0xff] }
 0x11e   : > { %v684_v56 = vmul.f32 %v622_v54, %v4008_v37  ;;  %v645_v0 = vmul.f32 %v3691_v51, %v644_v59  ;;  %vm651_vm4 = vmor %vm649_vm1, %vm650_vm2  ;;  %3694 = vrsqrt.f32 %v601_v18  ;;  %vm1200_vm11 = vcmask 64512  }
 0x11f   : > { %v626_v58 = vmul.f32 0.5, %v625_v53  ;;  %vm1751_vm12 = vcmask 130048  }
 0x120   : > { %v691_v60 = vpack.c.bf16 %v684_v56, %v683_v55  ;;  %v646_v5 = vmul.f32 0.5, %v645_v0 }
 0x121   : > { %v627_v61 = vsub.f32 1.5, %v626_v58 }
 0x122   : > { %v3693_v62 = vpop.eup %3692  ;;  %3281 = vmatmul.msk.bf16.vlgmr.msra.gmra.mxu0 %vm507_vm0, %v691_v60  ;;  %3293 = vmatmul.msk.bf16.vlgmr.msra.gmra.mxu1 %vm507_vm0, %v691_v60  ;;  %v647_v9 = vsub.f32 1.5, %v646_v5 }
 0x123   : > { %v628_v63 = vmul.f32 %v3689_v44, %v627_v61  ;;  %v654_v1 = vmul.f32 %v3693_v62, %v600_v45  ;;  %3305 = vmatmul.msk.bf16.vlgmr.msra.gmra.mxu2 %vm507_vm0, %v691_v60  ;;  %vm660_vm15 = vweird.f32 %v3693_v62  ;;  %v4105_v45 = vld [vmem:[%s5066_s6] ss:$0 sm:$0xff] }
 0x124   : > { %vm661_vm3 = vmor %vm659_vm14, %vm660_vm15  ;;  %v648_v11 = vmul.f32 %v3691_v51, %v647_v9  ;;  %v3695_v19 = vpop.eup %3694 }
 0x125   : > { %v655_v37 = vmul.f32 %v3693_v62, %v654_v1  ;;  %v632_v2 = vsel %vm631_vm13, %v3689_v44, %v628_v63  ;;  %v664_v21 = vmul.f32 %v3695_v19, %v601_v18  ;;  %vm670_vm6 = vweird.f32 %v3695_v19 }
 0x126   : > { %v685_v3 = vmul.f32 %v632_v2, %v4014_v40  ;;  %v652_v35 = vsel %vm651_vm4, %v3691_v51, %v648_v11  ;;  %vm671_vm7 = vmor %vm669_vm5, %vm670_vm6  ;;  %vm2696_vm13 = vcmask 195584  }
 0x127   : > { %v656_v6 = vmul.f32 0.5, %v655_v37  ;;  %v687_v14 = vmul.f32 %v652_v35, %v4012_v39  ;;  %v665_v24 = vmul.f32 %v3695_v19, %v664_v21 }
 0x128   : > { %v692_v7 = vpack.c.bf16 %v686_v4, %v685_v3 }
 0x129   : > { %v657_v8 = vsub.f32 1.5, %v656_v6  ;;  %v666_v39 = vmul.f32 0.5, %v665_v24 }
 0x12a   : > { %3306 = vmatmul.msk.bf16.vlgmr.msra.gmra.mxu3 %vm507_vm0, %v692_v7 }
 0x12b   : > { %v658_v10 = vmul.f32 %v3693_v62, %v657_v8  ;;  %v667_v27 = vsub.f32 1.5, %v666_v39 }
 0x12d   : > { %v662_v13 = vsel %vm661_vm3, %v3693_v62, %v658_v10  ;;  %v668_v30 = vmul.f32 %v3695_v19, %v667_v27 }
 0x12e   : > { %v688_v40 = vmul.f32 %v662_v13, %v4031_v52 }
 0x12f   : > { %v672_v34 = vsel %vm671_vm7, %v3695_v19, %v668_v30 }
 0x130   : > { %v693_v15 = vpack.c.bf16 %v688_v40, %v687_v14  ;;  %v689_v38 = vmul.f32 %v672_v34, %v4027_v50  ;;  %v4110_v50 = vld [vmem:[%s5064_s4] ss:$0 sm:$0xff] }
 0x132   : > { %3282 = vmatmul.msk.bf16.gmra.mxu0 %vm507_vm0, %v692_v7  ;;  %3294 = vmatmul.msk.bf16.gmra.mxu1 %vm507_vm0, %v692_v7 }
 0x13a   : > { %3307 = vmatmul.msk.bf16.gmra.mxu3 %vm507_vm0, %v693_v15 }
 0x142   : > { %3283 = vmatmul.msk.bf16.gmra.mxu0 %vm507_vm0, %v693_v15  ;;  %3295 = vmatmul.msk.bf16.gmra.mxu1 %vm507_vm0, %v693_v15 }
 0x182   : > { %v586_v22 = vpop.xlane.xlu0 %585 }
 0x183   : > { %v594_v23 = vmul.f32 %v586_v22, %v3993_v20 }
 0x185   : > { %v602_v52 = vadd.f32 1e-05, %v594_v23 }
 0x187   : > { %3696 = vrsqrt.f32 %v602_v52  ;;  %vm679_vm9 = vweird.f32 %v602_v52 }
 0x18d   : > { %v3697_v26 = vpop.eup %3696 }
 0x18e   : > { %v674_v28 = vmul.f32 %v3697_v26, %v602_v52  ;;  %vm680_vm8 = vweird.f32 %v3697_v26 }
 0x18f   : > { %vm681_vm10 = vmor %vm679_vm9, %vm680_vm8 }
 0x190   : > { %v675_v29 = vmul.f32 %v3697_v26, %v674_v28 }
 0x192   : > { %v676_v31 = vmul.f32 0.5, %v675_v29 }
 0x194   : > { %v677_v32 = vsub.f32 1.5, %v676_v31 }
 0x196   : > { %v678_v33 = vmul.f32 %v3697_v26, %v677_v32 }
 0x198   : > { %v682_v36 = vsel %vm681_vm10, %v3697_v26, %v678_v33 }
 0x199   : > { %v690_v41 = vmul.f32 %v682_v36, %v4061_v12 }
 0x19b   : > { %v694_v42 = vpack.c.bf16 %v690_v41, %v689_v38 }
 0x19d   : > { %3284 = vmatmul.msk.bf16.gmra.mxu0 %vm507_vm0, %v694_v42  ;;  %3296 = vmatmul.msk.bf16.gmra.mxu1 %vm507_vm0, %v694_v42 }
 0x19e   : > { %3308 = vmatmul.msk.bf16.gmra.mxu3 %vm507_vm0, %v694_v42 }
 0x19f   : > { %v736_v43 = vpop.f32.mrf.mxu0  ;;  %v785_v44 = vpop.f32.mrf.mxu1 }
 0x1a0   : > { %v786_v12 = vadd.f32 %v4105_v45, %v785_v44  ;;  %v737_v51 = vadd.f32 %v4110_v50, %v736_v43 }
 0x1a2   : > { %v1046_v55 = vpack.c.bf16 %v786_v12, %v786_v12  ;;  %v934_v4 = vpack.c.bf16 %v737_v51, %v737_v51 }
 0x1a4   : > { %v1197_v60 = vunpack.c.l.b16 %v1046_v55  ;;  %v1192_v11 = vunpack.c.l.b16 %v934_v4 }
 0x1a6   : > { %v834_v46 = vpop.f32.mrf.mxu2 }
 0x1a7   : > { %v738_v48 = vpop.f32.mrf.mxu0  ;;  %v787_v49 = vpop.f32.mrf.mxu1  ;;  %v835_v59 = vadd.f32 %v4116_v47, %v834_v46 }
 0x1a8   : > { %v739_v53 = vadd.f32 %v4110_v50, %v738_v48  ;;  %v788_v54 = vadd.f32 %v4105_v45, %v787_v49 }
 0x1a9   : > { %v1158_v25 = vpack.c.bf16 %v835_v59, %v835_v59 }
 0x1aa   : > { %v4121_v56 = vpack.i.bf16 %v788_v54, %v786_v12  ;;  %v3439_v57 = vpack.i.bf16 %v739_v53, %v737_v51  ;;  %v1047_v58 = vpack.c.bf16 %v788_v54, %v788_v54  ;;  %v935_v63 = vpack.c.bf16 %v739_v53, %v739_v53 }
 0x1ab   : > { %v4129_v8 = vunpack.c.l.b16 %v1158_v25 }
 0x1ac   : > { %3435 = vrot.lane.b32.xlu1 %v4121_v56, %s3875_s17  ;;  %3440 = vrot.lane.b32.xlu2 %v3439_v57, %s3875_s17  ;;  %v1198_v61 = vunpack.c.l.b16 %v1047_v58  ;;  %v1193_v7 = vunpack.c.l.b16 %v935_v63 }
 0x1ad   : > { %v839_v62 = vpop.f32.mrf.mxu3 }
 0x1ae   : > { %v836_v0 = vpop.f32.mrf.mxu2  ;;  %v1199_v1 = vpack.c.b16 %v1198_v61, %v1197_v60  ;;  %v840_v9 = vadd.f32 %v4116_v47, %v839_v62  ;;  %v1194_v15 = vpack.c.b16 %v1193_v7, %v1192_v11 }
 0x1af   : > { %v837_v37 = vadd.f32 %v4116_v47, %v836_v0  ;;  %v741_v2 = vpop.f32.mrf.mxu0  ;;  %v790_v3 = vpop.f32.mrf.mxu1 }
 0x1b0   : > { %v1205_v5 = vsel %vm1200_vm11, %v1199_v1, 0  ;;  %v791_v13 = vadd.f32 %v4105_v45, %v790_v3  ;;  %v1160_v16 = vpack.c.bf16 %v840_v9, %v840_v9  ;;  %v742_v26 = vadd.f32 %v4110_v50, %v741_v2 }
 0x1b1   : > { %v1159_v6 = vpack.c.bf16 %v837_v37, %v837_v37  ;;  %1214 = vmatpush.bf16.xpose.msrb.mxu3 %v1205_v5  ;;  %v4148_v24 = vpack.i.bf16 %v837_v37, %v835_v59 }
 0x1b2   : > { %v1048_v23 = vpack.c.bf16 %v791_v13, %v791_v13  ;;  %v4151_v27 = vunpack.c.l.b16 %v1160_v16  ;;  %v936_v41 = vpack.c.bf16 %v742_v26, %v742_v26 }
 0x1b3   : > { %v4132_v10 = vunpack.c.l.b16 %v1159_v6 }
 0x1b4   : > { %3460 = vrot.lane.b32.xlu1 %v3439_v57, %s3876_s19  ;;  %3445 = vrot.lane.b32.xlu2 %v4121_v56, %s3877_s22  ;;  %v1228_v28 = vunpack.c.l.b16 %v1048_v23  ;;  %v1223_v12 = vunpack.c.l.b16 %v936_v41 }
 0x1b5   : > { %v841_v35 = vpop.f32.mrf.mxu3  ;;  %v2145_v40 = vpack.c.b16 %v4132_v10, %v4129_v8 }
 0x1b6   : > { %v842_v14 = vadd.f32 %v4116_v47, %v841_v35 }
 0x1b7   : > { %v743_v17 = vpop.f32.mrf.mxu0  ;;  %v792_v18 = vpop.f32.mrf.mxu1 }
 0x1b8   : > { %v1161_v19 = vpack.c.bf16 %v842_v14, %v842_v14  ;;  %v793_v21 = vadd.f32 %v4105_v45, %v792_v18  ;;  %3309 = vmatmul.msk.bf16.vlgmr.msrb.gmra.mxu3 %vm1200_vm11, %v1194_v15  ;;  %v4143_v22 = vpack.i.bf16 %v842_v14, %v840_v9  ;;  %v744_v52 = vadd.f32 %v4110_v50, %v743_v17 }
 0x1ba   : > { %3470 = vrot.lane.b32.xlu0 %v4143_v22, %s3875_s17  ;;  %v1049_v39 = vpack.c.bf16 %v793_v21, %v793_v21  ;;  %v4156_v30 = vunpack.c.l.b16 %v1161_v19  ;;  %v937_v32 = vpack.c.bf16 %v744_v52, %v744_v52  ;;  %v3484_v43 = vpack.i.bf16 %v793_v21, %v791_v13 }
 0x1bc   : > { %3475 = vrot.lane.b32.xlu1 %v4148_v24, %s3877_s22  ;;  %3450 = vrot.lane.b32.xlu2 %v3439_v57, %s3877_s22  ;;  %v1229_v29 = vunpack.c.l.b16 %v1049_v39  ;;  %v2173_v34 = vpack.c.b16 %v4156_v30, %v4151_v27  ;;  %v1224_v44 = vunpack.c.l.b16 %v937_v32  ;;  %v3489_v57 = vpack.i.bf16 %v744_v52, %v742_v26 }
 0x1bd   : > { %v844_v31 = vpop.f32.mrf.mxu3 }
 0x1be   : > { %v1230_v33 = vpack.c.b16 %v1229_v29, %v1228_v28  ;;  %v845_v46 = vadd.f32 %v4116_v47, %v844_v31  ;;  %v1225_v53 = vpack.c.b16 %v1224_v44, %v1223_v12 }
 0x1bf   : > { %v746_v36 = vpop.f32.mrf.mxu0  ;;  %v795_v38 = vpop.f32.mrf.mxu1 }
 0x1c0   : > { %v1235_v42 = vsel %vm1200_vm11, %v1230_v33, 0  ;;  %v796_v48 = vadd.f32 %v4105_v45, %v795_v38  ;;  %v1162_v58 = vpack.c.bf16 %v845_v46, %v845_v46  ;;  %v747_v0 = vadd.f32 %v4110_v50, %v746_v36 }
 0x1c1   : > { %1244 = vmatpush.bf16.xpose.msra.mxu3 %v1235_v42 }
 0x1c2   : > { %3485 = vrot.lane.b32.xlu0 %v3484_v43, %s3875_s17  ;;  %v1050_v61 = vpack.c.bf16 %v796_v48, %v796_v48  ;;  %v4176_v1 = vunpack.c.l.b16 %v1162_v58  ;;  %v938_v6 = vpack.c.bf16 %v747_v0, %v747_v0 }
 0x1c4   : > { %3480 = vrot.lane.b32.xlu1 %v4143_v22, %s3877_s22  ;;  %3455 = vrot.lane.b32.xlu2 %v4121_v56, %s3876_s19  ;;  %v1258_v25 = vunpack.c.l.b16 %v1050_v61  ;;  %v1253_v11 = vunpack.c.l.b16 %v938_v6 }
 0x1c5   : > { %v846_v49 = vpop.f32.mrf.mxu3 }
 0x1c6   : > { %v847_v51 = vadd.f32 %v4116_v47, %v846_v49 }
 0x1c7   : > { %v748_v54 = vpop.f32.mrf.mxu0  ;;  %v797_v55 = vpop.f32.mrf.mxu1 }
 0x1c8   : > { %v1163_v59 = vpack.c.bf16 %v847_v51, %v847_v51  ;;  %v798_v60 = vadd.f32 %v4105_v45, %v797_v55  ;;  %3310 = vmatmul.msk.bf16.vlgmr.msra.gmra.mxu3 %vm1200_vm11, %v1225_v53  ;;  %v4171_v62 = vpack.i.bf16 %v847_v51, %v845_v46  ;;  %v749_v63 = vadd.f32 %v4110_v50, %v748_v54 }
 0x1ca   : > { %3490 = vrot.lane.b32.xlu0 %v3489_v57, %s3875_s17  ;;  %v1051_v56 = vpack.c.bf16 %v798_v60, %v798_v60  ;;  %v4181_v2 = vunpack.c.l.b16 %v1163_v59  ;;  %v939_v3 = vpack.c.bf16 %v749_v63, %v749_v63  ;;  %v3519_v35 = vpack.i.bf16 %v798_v60, %v796_v48 }
 0x1cb   : > { %v3534_v14 = vpack.i.bf16 %v749_v63, %v747_v0 }
 0x1cc   : > { %3505 = vrot.lane.b32.xlu1 %v3484_v43, %s3876_s19  ;;  %3465 = vrot.lane.b32.xlu2 %v4148_v24, %s3875_s17  ;;  %v1259_v37 = vunpack.c.l.b16 %v1051_v56  ;;  %v2201_v5 = vpack.c.b16 %v4181_v2, %v4176_v1  ;;  %v1254_v9 = vunpack.c.l.b16 %v939_v3 }
 0x1ce   : > { %v1260_v4 = vpack.c.b16 %v1259_v37, %v1258_v25  ;;  %v1255_v13 = vpack.c.b16 %v1254_v9, %v1253_v11 }
 0x1d0   : > { %v1265_v7 = vsel %vm1200_vm11, %v1260_v4, 0 }
 0x1d1   : > { %1274 = vmatpush.bf16.xpose.msrb.mxu3 %v1265_v7 }
 0x1d2   : > { %3495 = vrot.lane.b32.xlu0 %v3484_v43, %s3877_s22 }
 0x1d4   : > { %3510 = vrot.lane.b32.xlu1 %v3489_v57, %s3876_s19  ;;  %3500 = vrot.lane.b32.xlu2 %v3489_v57, %s3877_s22 }
 0x1d8   : > { %3311 = vmatmul.msk.bf16.vlgmr.msrb.gmra.mxu3 %vm1200_vm11, %v1255_v13 }
 0x1da   : > { %3515 = vrot.lane.b32.xlu0 %v4171_v62, %s3875_s17 }
 0x1dc   : > { %3520 = vrot.lane.b32.xlu1 %v3519_v35, %s3875_s17  ;;  %3535 = vrot.lane.b32.xlu2 %v3534_v14, %s3877_s22 }
 0x1e2   : > { %3530 = vrot.lane.b32.xlu0 %v3519_v35, %s3877_s22 }
 0x1e4   : > { %3540 = vrot.lane.b32.xlu2 %v3519_v35, %s3876_s19  ;;  %3525 = vrot.lane.b32.xlu1 %v3534_v14, %s3875_s17 }
 0x1ec   : > { %3545 = vrot.lane.b32.xlu2 %v3534_v14, %s3876_s19 }
 0x1f4   : > { %3550 = vrot.lane.b32.xlu2 %v4148_v24, %s3876_s19 }
 0x206   : > { %v3441_v15 = vpop.permute.xlu2 %3440 }
 0x207   : > { %v3443_v42 = vunpack.i.h.bf16 %v3441_v15  ;;  %v3442_v43 = vunpack.i.l.bf16 %v3441_v15 }
 0x209   : > { %v943_v54 = vpack.c.bf16 %v3443_v42, %v3443_v42  ;;  %v942_v57 = vpack.c.bf16 %v3442_v43, %v3442_v43 }
 0x20b   : > { %v1314_v35 = vunpack.c.l.b16 %v943_v54  ;;  %v1313_v14 = vunpack.c.l.b16 %v942_v57 }
 0x20d   : > { %v1315_v42 = vpack.c.b16 %v1314_v35, %v1313_v14 }
 0x20e   : > { %v3446_v16 = vpop.permute.xlu2 %3445 }
 0x20f   : > { %v3448_v17 = vunpack.i.h.bf16 %v3446_v16  ;;  %v3447_v18 = vunpack.i.l.bf16 %v3446_v16 }
 0x211   : > { %v1063_v19 = vpack.c.bf16 %v3448_v17, %v3448_v17  ;;  %v1062_v21 = vpack.c.bf16 %v3447_v18, %v3447_v18 }
 0x213   : > { %v1439_v23 = vunpack.c.l.b16 %v1063_v19  ;;  %v1438_v52 = vunpack.c.l.b16 %v1062_v21 }
 0x215   : > { %v1440_v39 = vpack.c.b16 %v1439_v23, %v1438_v52 }
 0x216   : > { %v3451_v26 = vpop.permute.xlu2 %3450 }
 0x217   : > { %v3453_v28 = vunpack.i.h.bf16 %v3451_v26  ;;  %v3452_v29 = vunpack.i.l.bf16 %v3451_v26  ;;  %v1445_v31 = vsel %vm1200_vm11, %v1440_v39, 0 }
 0x218   : > { %1454 = vmatpush.bf16.xpose.msrb.mxu0 %v1445_v31 }
 0x219   : > { %v951_v32 = vpack.c.bf16 %v3453_v28, %v3453_v28  ;;  %v950_v33 = vpack.c.bf16 %v3452_v29, %v3452_v29 }
 0x21a   : > { %v751_v36 = vpop.f32.mrf.mxu0  ;;  %v800_v38 = vpop.f32.mrf.mxu1 }
 0x21b   : > { %v1434_v24 = vunpack.c.l.b16 %v951_v32  ;;  %v1433_v41 = vunpack.c.l.b16 %v950_v33  ;;  %v801_v12 = vadd.f32 %v4105_v45, %v800_v38  ;;  %v752_v63 = vadd.f32 %v4110_v50, %v751_v36 }
 0x21d   : > { %v1435_v44 = vpack.c.b16 %v1434_v24, %v1433_v41  ;;  %v1052_v3 = vpack.c.bf16 %v801_v12, %v801_v12 }
 0x21e   : > { %v3436_v46 = vpop.permute.xlu1 %3435  ;;  %v3456_v48 = vpop.permute.xlu2 %3455 }
 0x21f   : > { %v3438_v49 = vunpack.i.h.bf16 %v3436_v46  ;;  %v3437_v51 = vunpack.i.l.bf16 %v3436_v46  ;;  %v3458_v53 = vunpack.i.h.bf16 %v3456_v48  ;;  %3317 = vmatmul.msk.bf16.vlgmr.msrb.gmra.mxu0 %vm1200_vm11, %v1435_v44  ;;  %v3457_v55 = vunpack.i.l.bf16 %v3456_v48 }
 0x220   : > { %v1288_v52 = vunpack.c.l.b16 %v1052_v3  ;;  %v940_v46 = vpack.c.bf16 %v752_v63, %v752_v63 }
 0x221   : > { %v1055_v58 = vpack.c.bf16 %v3438_v49, %v3438_v49  ;;  %v1054_v59 = vpack.c.bf16 %v3437_v51, %v3437_v51  ;;  %v1071_v60 = vpack.c.bf16 %v3458_v53, %v3458_v53  ;;  %v849_v61 = vpop.f32.mrf.mxu3  ;;  %v1070_v56 = vpack.c.bf16 %v3457_v55, %v3457_v55 }
 0x222   : > { %v850_v0 = vadd.f32 %v4116_v47, %v849_v61  ;;  %v753_v25 = vpop.f32.mrf.mxu0  ;;  %v802_v37 = vpop.f32.mrf.mxu1  ;;  %v1283_v8 = vunpack.c.l.b16 %v940_v46 }
 0x223   : > { %v1319_v4 = vunpack.c.l.b16 %v1055_v58  ;;  %v1318_v6 = vunpack.c.l.b16 %v1054_v59  ;;  %v1559_v7 = vunpack.c.l.b16 %v1071_v60  ;;  %v754_v9 = vadd.f32 %v4110_v50, %v753_v25 }
 0x224   : > { %v1558_v11 = vunpack.c.l.b16 %v1070_v56  ;;  %v803_v13 = vadd.f32 %v4105_v45, %v802_v37  ;;  %v1164_v39 = vpack.c.bf16 %v850_v0, %v850_v0 }
 0x225   : > { %v4207_v15 = vpack.i.bf16 %v754_v9, %v752_v63  ;;  %v1320_v16 = vpack.c.b16 %v1319_v4, %v1318_v6  ;;  %v941_v33 = vpack.c.bf16 %v754_v9, %v754_v9 }
 0x226   : > { %v1560_v17 = vpack.c.b16 %v1559_v7, %v1558_v11  ;;  %v3461_v18 = vpop.permute.xlu1 %3460  ;;  %v3466_v19 = vpop.permute.xlu2 %3465  ;;  %v3554_v21 = vpack.i.bf16 %v803_v13, %v801_v12  ;;  %v1053_v23 = vpack.c.bf16 %v803_v13, %v803_v13  ;;  %v4218_v53 = vunpack.c.l.b16 %v1164_v39  ;;  %v4243_v13 = vld [vmem:[%s5061_s1] sm:$0xff] }
 0x227   : > { %v3463_v26 = vunpack.i.h.bf16 %v3461_v18  ;;  %v3462_v28 = vunpack.i.l.bf16 %v3461_v18  ;;  %v3468_v29 = vunpack.i.h.bf16 %v3466_v19  ;;  %3560 = vrot.lane.b32.xlu0 %v4207_v15, %s3875_s17  ;;  %v3467_v50 = vunpack.i.l.bf16 %v3466_v19 }
 0x228   : > { %3555 = vrot.lane.b32.xlu1 %v3554_v21, %s3875_s17  ;;  %v1325_v45 = vsel %vm1200_vm11, %v1320_v16, 0  ;;  %v1565_v31 = vsel %vm1200_vm11, %v1560_v17, 0  ;;  %v1289_v32 = vunpack.c.l.b16 %v1053_v23  ;;  %v1284_v59 = vunpack.c.l.b16 %v941_v33  ;;  %v4248_v16 = vld [vmem:[%s5062_s2] sm:$0xff] }
 0x229   : > { %v959_v36 = vpack.c.bf16 %v3463_v26, %v3463_v26  ;;  %v958_v38 = vpack.c.bf16 %v3462_v28, %v3462_v28  ;;  %v1167_v24 = vpack.c.bf16 %v3468_v29, %v3468_v29  ;;  %v851_v41 = vpop.f32.mrf.mxu3  ;;  %1334 = vmatpush.bf16.xpose.msrb.mxu2 %v1325_v45  ;;  %v1166_v43 = vpack.c.bf16 %v3467_v50, %v3467_v50 }
 0x22a   : > { %v852_v44 = vadd.f32 %v4116_v47, %v851_v41  ;;  %1574 = vmatpush.bf16.xpose.msra.mxu0 %v1565_v31  ;;  %v1290_v12 = vpack.c.b16 %v1289_v32, %v1288_v52 }
 0x22b   : > { %v1554_v48 = vunpack.c.l.b16 %v959_v36  ;;  %v1553_v49 = vunpack.c.l.b16 %v958_v38  ;;  %v2256_v51 = vunpack.c.l.b16 %v1167_v24  ;;  %v2255_v54 = vunpack.c.l.b16 %v1166_v43 }
 0x22c   : > { %v1165_v55 = vpack.c.bf16 %v852_v44, %v852_v44  ;;  %v1295_v57 = vsel %vm1200_vm11, %v1290_v12, 0  ;;  %v4221_v58 = vpop.permute.xlu0 %3470  ;;  %v4227_v56 = vpack.i.bf16 %v852_v44, %v850_v0 }
 0x22d   : > { %v1555_v47 = vpack.c.b16 %v1554_v48, %v1553_v49  ;;  %1304 = vmatpush.bf16.xpose.msra.mxu3 %v1295_v57  ;;  %v2257_v60 = vpack.c.b16 %v2256_v51, %v2255_v54 }
 0x22e   : > { %v4223_v61 = vunpack.c.l.b16 %v1165_v55  ;;  %v4225_v63 = vpop.permute.xlu1 %3475  ;;  %v3501_v4 = vpop.permute.xlu2 %3500 }
 0x22f   : > { %3565 = vrot.lane.b32.xlu0 %v3554_v21, %s3877_s22  ;;  %v3503_v48 = vunpack.i.h.bf16 %v3501_v4  ;;  %v3502_v49 = vunpack.i.l.bf16 %v3501_v4 }
 0x230   : > { %3313 = vmatmul.msk.bf16.vlgmr.msrb.gmra.mxu2 %vm1200_vm11, %v1315_v42  ;;  %3575 = vrot.lane.b32.xlu1 %v3554_v21, %s3876_s19  ;;  %v2229_v10 = vpack.c.b16 %v4223_v61, %v4218_v53 }
 0x231   : > { %3321 = vmatmul.msk.bf16.vlgmr.msra.gmra.mxu0 %vm1200_vm11, %v1555_v47  ;;  %v953_v47 = vpack.c.bf16 %v3503_v48, %v3503_v48 }
 0x232   : > { %2157 = vmatpush.bf16.msrb.mxu0 %v2145_v40  ;;  %v1285_v40 = vpack.c.b16 %v1284_v59, %v1283_v8 }
 0x234   : > { %3312 = vmatmul.msk.bf16.vlgmr.msra.gmra.mxu3 %vm1200_vm11, %v1285_v40  ;;  %v3486_v25 = vpop.permute.xlu0 %3485 }
 0x235   : > { %v3488_v37 = vunpack.i.h.bf16 %v3486_v25  ;;  %v3487_v0 = vunpack.i.l.bf16 %v3486_v25 }
 0x236   : > { %2269 = vmatpush.bf16.msra.mxu0 %v2257_v60  ;;  %v4236_v3 = vpop.permute.xlu1 %3480  ;;  %v4259_v31 = vpop.permute.xlu2 %3535  ;;  %v952_v60 = vpack.c.bf16 %v3502_v49, %v3502_v49 }
 0x237   : > { %v1057_v6 = vpack.c.bf16 %v3488_v37, %v3488_v37  ;;  %v1056_v7 = vpack.c.bf16 %v3487_v0, %v3487_v0  ;;  %3570 = vrot.lane.b32.xlu0 %v4207_v15, %s3877_s22  ;;  %v4271_v0 = vld [vmem:[%s5061_s1 + $0x8] sm:$0xff] }
 0x239   : > { %v1349_v9 = vunpack.c.l.b16 %v1057_v6  ;;  %v1348_v11 = vunpack.c.l.b16 %v1056_v7 }
 0x23b   : > { %v1216_v35 = vpop.f32.mrf.mxu3  ;;  %v1350_v14 = vpack.c.b16 %v1349_v9, %v1348_v11  ;;  %v1464_v11 = vunpack.c.l.b16 %v953_v47 }
 0x23c   : > { %v1679_v17 = vadd.f32 %v4243_v13, %v1216_v35  ;;  %v3491_v18 = vpop.permute.xlu0 %3490  ;;  %v1463_v35 = vunpack.c.l.b16 %v952_v60 }
 0x23d   : > { %v3493_v19 = vunpack.i.h.bf16 %v3491_v18  ;;  %v3492_v21 = vunpack.i.l.bf16 %v3491_v18  ;;  %v1355_v23 = vsel %vm1200_vm11, %v1350_v14, 0 }
 0x23e   : > { %v3506_v52 = vpop.permute.xlu1 %3505  ;;  %1364 = vmatpush.bf16.xpose.msrb.mxu1 %v1355_v23  ;;  %v4253_v39 = vadd.f32 %v4248_v16, %v1679_v17  ;;  %v3541_v8 = vpop.permute.xlu2 %3540 }
 0x23f   : > { %v945_v26 = vpack.c.bf16 %v3493_v19, %v3493_v19  ;;  %v944_v28 = vpack.c.bf16 %v3492_v21, %v3492_v21  ;;  %v3508_v29 = vunpack.i.h.bf16 %v3506_v52  ;;  %v3507_v50 = vunpack.i.l.bf16 %v3506_v52  ;;  %3580 = vrot.lane.b32.xlu0 %v4207_v15, %s3876_s19  ;;  %v4279_v52 = vld [vmem:[%s5062_s2 + $0x8] sm:$0xff] }
 0x240   : > { %v1752_v45 = vsel %vm1751_vm12, %v4253_v39, -inf  ;;  %v3543_v6 = vunpack.i.h.bf16 %v3541_v8  ;;  %v3542_v18 = vunpack.i.l.bf16 %v3541_v8 }
 0x241   : > { %v1344_v32 = vunpack.c.l.b16 %v945_v26  ;;  %v1343_v33 = vunpack.c.l.b16 %v944_v28  ;;  %1753 = vmax.xlane.f32.xlu2 %v1752_v45  ;;  %v1073_v36 = vpack.c.bf16 %v3508_v29, %v3508_v29  ;;  %v1072_v38 = vpack.c.bf16 %v3507_v50, %v3507_v50 }
 0x242   : > { %v1075_v26 = vpack.c.bf16 %v3543_v6, %v3543_v6  ;;  %v1465_v28 = vpack.c.b16 %v1464_v11, %v1463_v35 }
 0x243   : > { %v1345_v24 = vpack.c.b16 %v1344_v32, %v1343_v33  ;;  %v1218_v41 = vpop.f32.mrf.mxu3  ;;  %v1589_v12 = vunpack.c.l.b16 %v1073_v36  ;;  %v1588_v46 = vunpack.c.l.b16 %v1072_v38  ;;  %v4284_v32 = vld [vmem:[%s5062_s2 + $0x18] sm:$0xff]  ;;  %v3473_v33 = vunpack.i.h.bf16 %v4221_v58 }
 0x244   : > { %v3496_v42 = vpop.permute.xlu0 %3495  ;;  %v1680_v19 = vadd.f32 %v4271_v0, %v1218_v41  ;;  %v1074_v36 = vpack.c.bf16 %v3542_v18, %v3542_v18 }
 0x245   : > { %v3498_v43 = vunpack.i.h.bf16 %v3496_v42  ;;  %v3497_v44 = vunpack.i.l.bf16 %v3496_v42  ;;  %3314 = vmatmul.msk.bf16.vlgmr.msrb.gmra.mxu1 %vm1200_vm11, %v1345_v24  ;;  %v1590_v59 = vpack.c.b16 %v1589_v12, %v1588_v46  ;;  %v3472_v42 = vunpack.i.l.bf16 %v4221_v58 }
 0x246   : > { %v4262_v15 = vpop.permute.xlu1 %3510  ;;  %v4289_v41 = vadd.f32 %v4279_v52, %v1680_v19  ;;  %v1619_v46 = vunpack.c.l.b16 %v1075_v26  ;;  %v1618_v47 = vunpack.c.l.b16 %v1074_v36 }
 0x247   : > { %v1065_v51 = vpack.c.bf16 %v3498_v43, %v3498_v43  ;;  %v1064_v54 = vpack.c.bf16 %v3497_v44, %v3497_v44  ;;  %v1595_v9 = vsel %vm1200_vm11, %v1590_v59, 0  ;;  %v3513_v48 = vunpack.i.h.bf16 %v4262_v15 }
 0x248   : > { %v3512_v49 = vunpack.i.l.bf16 %v4262_v15  ;;  %v1755_v15 = vsel %vm1751_vm12, %v4289_v41, -inf  ;;  %v1168_v18 = vpack.c.bf16 %v3472_v42, %v3472_v42  ;;  %v1620_v19 = vpack.c.b16 %v1619_v46, %v1618_v47  ;;  %v4325_v42 = vld [vmem:[%s5062_s2 + $0x10] sm:$0xff]  ;;  %v4332_v46 = vld [vmem:[%s5062_s2 + $0x28] sm:$0xff] }
 0x249   : > { %v1469_v55 = vunpack.c.l.b16 %v1065_v51  ;;  %v1468_v57 = vunpack.c.l.b16 %v1064_v54  ;;  %v961_v6 = vpack.c.bf16 %v3513_v48, %v3513_v48 }
 0x24b   : > { %v1470_v40 = vpack.c.b16 %v1469_v55, %v1468_v57  ;;  %v4264_v25 = vpop.f32.mrf.mxu3 }
 0x24c   : > { %v4266_v37 = vpop.permute.xlu0 %3515  ;;  %v1681_v36 = vadd.f32 %v4243_v13, %v4264_v25 }
 0x24d   : > { %v1475_v4 = vsel %vm1200_vm11, %v1470_v40, 0 }
 0x24e   : > { %v3521_v7 = vpop.permute.xlu1 %3520  ;;  %1484 = vmatpush.bf16.xpose.msra.mxu1 %v1475_v4 }
 0x24f   : > { %v3523_v14 = vunpack.i.h.bf16 %v3521_v7  ;;  %v3522_v17 = vunpack.i.l.bf16 %v3521_v7  ;;  %v960_v7 = vpack.c.bf16 %v3512_v49, %v3512_v49 }
 0x251   : > { %v1059_v21 = vpack.c.bf16 %v3523_v14, %v3523_v14  ;;  %v1058_v23 = vpack.c.bf16 %v3522_v17, %v3522_v17  ;;  %v4309_v17 = vld [vmem:[%s5062_s2 + $0x20] sm:$0xff] }
 0x253   : > { %v1379_v29 = vunpack.c.l.b16 %v1059_v21  ;;  %v1378_v50 = vunpack.c.l.b16 %v1058_v23  ;;  %v1248_v45 = vpop.f32.mrf.mxu3 }
 0x254   : > { %v1682_v38 = vadd.f32 %v4271_v0, %v1248_v45  ;;  %v3531_v24 = vpop.permute.xlu0 %3530  ;;  %v1583_v45 = vunpack.c.l.b16 %v960_v7 }
 0x255   : > { %v1380_v43 = vpack.c.b16 %v1379_v29, %v1378_v50  ;;  %v3533_v44 = vunpack.i.h.bf16 %v3531_v24  ;;  %v3532_v12 = vunpack.i.l.bf16 %v3531_v24  ;;  %3318 = vmatmul.msk.bf16.vlgmr.msra.gmra.mxu1 %vm1200_vm11, %v1465_v28  ;;  %v1584_v50 = vunpack.c.l.b16 %v961_v6 }
 0x256   : > { %1604 = vmatpush.bf16.xpose.msrb.mxu1 %v1595_v9  ;;  %v3526_v51 = vpop.permute.xlu1 %3525  ;;  %v4299_v54 = vadd.f32 %v4284_v32, %v1682_v38  ;;  %v1625_v38 = vsel %vm1200_vm11, %v1620_v19, 0 }
 0x257   : > { %v1067_v55 = vpack.c.bf16 %v3533_v44, %v3533_v44  ;;  %v1066_v58 = vpack.c.bf16 %v3532_v12, %v3532_v12  ;;  %v3528_v57 = vunpack.i.h.bf16 %v3526_v51  ;;  %v3527_v59 = vunpack.i.l.bf16 %v3526_v51 }
 0x258   : > { %v1385_v60 = vsel %vm1200_vm11, %v1380_v43, 0  ;;  %v1761_v8 = vsel %vm1751_vm12, %v4299_v54, -inf  ;;  %v3538_v43 = vunpack.i.h.bf16 %v4259_v31  ;;  %v3537_v44 = vunpack.i.l.bf16 %v4259_v31 }
 0x259   : > { %v1499_v40 = vunpack.c.l.b16 %v1067_v55  ;;  %v1498_v4 = vunpack.c.l.b16 %v1066_v58  ;;  %v947_v27 = vpack.c.bf16 %v3528_v57, %v3528_v57  ;;  %v946_v30 = vpack.c.bf16 %v3527_v59, %v3527_v59  ;;  %1394 = vmatpush.bf16.xpose.msra.mxu2 %v1385_v60  ;;  %1762 = vmax.xlane.f32.xlu2 %v1761_v8 }
 0x25a   : > { %1756 = vmax.xlane.f32.xlu1 %v1755_v15  ;;  %v1585_v12 = vpack.c.b16 %v1584_v50, %v1583_v45  ;;  %v4336_v51 = vadd.f32 %v4325_v42, %v1681_v36  ;;  %v955_v55 = vpack.c.bf16 %v3538_v43, %v3538_v43  ;;  %v954_v58 = vpack.c.bf16 %v3537_v44, %v3537_v44  ;;  %v3546_v15 = vpop.permute.xlu2 %3545 }
 0x25b   : > { %v1500_v9 = vpack.c.b16 %v1499_v40, %v1498_v4  ;;  %v1374_v11 = vunpack.c.l.b16 %v947_v27  ;;  %v1373_v35 = vunpack.c.l.b16 %v946_v30  ;;  %v1276_v14 = vpop.f32.mrf.mxu3  ;;  %v3548_v40 = vunpack.i.h.bf16 %v3546_v15 }
 0x25c   : > { %v1683_v21 = vadd.f32 %v4243_v13, %v1276_v14  ;;  %v1758_v59 = vsel %vm1751_vm12, %v4336_v51, -inf  ;;  %v1494_v47 = vunpack.c.l.b16 %v955_v55  ;;  %v1493_v60 = vunpack.c.l.b16 %v954_v58 }
 0x25d   : > { %v1375_v23 = vpack.c.b16 %v1374_v11, %v1373_v35  ;;  %v1505_v26 = vsel %vm1200_vm11, %v1500_v9, 0  ;;  %v3547_v4 = vunpack.i.l.bf16 %v3546_v15  ;;  %v3518_v27 = vunpack.i.h.bf16 %v4266_v37 }
 0x25e   : > { %2185 = vmatpush.bf16.msra.mxu1 %v2173_v34  ;;  %v1169_v34 = vpack.c.bf16 %v3473_v33, %v3473_v33  ;;  %v4314_v28 = vadd.f32 %v4309_v17, %v1683_v21  ;;  %v2283_v33 = vunpack.c.l.b16 %v1168_v18  ;;  %v1495_v8 = vpack.c.b16 %v1494_v47, %v1493_v60 }
 0x25f   : > { %v3517_v30 = vunpack.i.l.bf16 %v4266_v37  ;;  %v962_v6 = vpack.c.bf16 %v3547_v4, %v3547_v4  ;;  %v1171_v7 = vpack.c.bf16 %v3518_v27, %v3518_v27 }
 0x260   : > { %v2284_v29 = vunpack.c.l.b16 %v1169_v34  ;;  %3315 = vmatmul.msk.bf16.vlgmr.msra.gmra.mxu2 %vm1200_vm11, %v1375_v23  ;;  %v1764_v24 = vsel %vm1751_vm12, %v4314_v28, -inf  ;;  %v963_v34 = vpack.c.bf16 %v3548_v40, %v3548_v40 }
 0x261   : > { %1514 = vmatpush.bf16.xpose.msrb.mxu2 %v1505_v26  ;;  %1765 = vmax.xlane.f32.xlu2 %v1764_v24  ;;  %v1170_v9 = vpack.c.bf16 %v3517_v30, %v3517_v30  ;;  %v1613_v35 = vunpack.c.l.b16 %v962_v6  ;;  %v2312_v14 = vunpack.c.l.b16 %v1171_v7 }
 0x262   : > { %v2285_v48 = vpack.c.b16 %v2284_v29, %v2283_v33  ;;  %v1614_v11 = vunpack.c.l.b16 %v963_v34 }
 0x263   : > { %v1278_v25 = vpop.f32.mrf.mxu3  ;;  %v2311_v18 = vunpack.c.l.b16 %v1170_v9 }
 0x264   : > { %v1684_v49 = vadd.f32 %v4271_v0, %v1278_v25  ;;  %v1615_v19 = vpack.c.b16 %v1614_v11, %v1613_v35 }
 0x265   : > { %3322 = vmatmul.msk.bf16.vlgmr.msrb.gmra.mxu1 %vm1200_vm11, %v1585_v12  ;;  %v2313_v21 = vpack.c.b16 %v2312_v14, %v2311_v18 }
 0x266   : > { %2297 = vmatpush.bf16.msrb.mxu1 %v2285_v48  ;;  %v4340_v31 = vadd.f32 %v4332_v46, %v1684_v49  ;;  %v4358_v49 = vld [vmem:[%s5061_s1 + $0x28] sm:$0xff] }
 0x268   : > { %v1767_v57 = vsel %vm1751_vm12, %v4340_v31, -inf }
 0x269   : > { %1634 = vmatpush.bf16.xpose.msra.mxu2 %v1625_v38  ;;  %1768 = vmax.xlane.f32.xlu1 %v1767_v57 }
 0x26a   : > { %1759 = vmax.xlane.f32.xlu0 %v1758_v59 }
 0x270   : > { %3319 = vmatmul.msk.bf16.vlgmr.msrb.gmra.mxu2 %vm1200_vm11, %v1495_v8 }
 0x271   : > { %2213 = vmatpush.bf16.msrb.mxu2 %v2201_v5 }
 0x280   : > { %3323 = vmatmul.msk.bf16.vlgmr.msra.gmra.mxu2 %vm1200_vm11, %v1615_v19 }
 0x281   : > { %2325 = vmatpush.bf16.msra.mxu2 %v2313_v21 }
 0x299   : > { %v3561_v1 = vpop.permute.xlu0 %3560 }
 0x29a   : > { %v3556_v2 = vpop.permute.xlu1 %3555  ;;  %v3563_v26 = vunpack.i.h.bf16 %v3561_v1  ;;  %v3562_v45 = vunpack.i.l.bf16 %v3561_v1 }
 0x29b   : > { %v3558_v5 = vunpack.i.h.bf16 %v3556_v2  ;;  %v3557_v23 = vunpack.i.l.bf16 %v3556_v2 }
 0x29c   : > { %v4353_v29 = vpop.f32.mrf.mxu0  ;;  %v949_v38 = vpack.c.bf16 %v3563_v26, %v3563_v26  ;;  %v948_v43 = vpack.c.bf16 %v3562_v45, %v3562_v45 }
 0x29d   : > { %v1061_v37 = vpack.c.bf16 %v3558_v5, %v3558_v5  ;;  %v1060_v50 = vpack.c.bf16 %v3557_v23, %v3557_v23 }
 0x29e   : > { %v1404_v59 = vunpack.c.l.b16 %v949_v38  ;;  %v1403_v15 = vunpack.c.l.b16 %v948_v43  ;;  %v4375_v38 = vld [vmem:[%s5062_s2 + $0x30] sm:$0xff] }
 0x29f   : > { %v1409_v33 = vunpack.c.l.b16 %v1061_v37  ;;  %v1408_v36 = vunpack.c.l.b16 %v1060_v50  ;;  %v4370_v50 = vpop.permute.xlu2 %3550 }
 0x2a0   : > { %v1405_v35 = vpack.c.b16 %v1404_v59, %v1403_v15 }
 0x2a1   : > { %v1410_v24 = vpack.c.b16 %v1409_v33, %v1408_v36  ;;  %v3566_v44 = vpop.permute.xlu0 %3565 }
 0x2a2   : > { %v3576_v12 = vpop.permute.xlu1 %3575  ;;  %v3568_v25 = vunpack.i.h.bf16 %v3566_v44  ;;  %v3567_v48 = vunpack.i.l.bf16 %v3566_v44 }
 0x2a3   : > { %v3578_v55 = vunpack.i.h.bf16 %v3576_v12  ;;  %v3577_v58 = vunpack.i.l.bf16 %v3576_v12  ;;  %v1415_v57 = vsel %vm1200_vm11, %v1410_v24, 0  ;;  %v4381_v12 = vld [vmem:[%s5061_s1 + $0x30] sm:$0xff] }
 0x2a4   : > { %v1069_v47 = vpack.c.bf16 %v3568_v25, %v3568_v25  ;;  %v1068_v60 = vpack.c.bf16 %v3567_v48, %v3567_v48  ;;  %1424 = vmatpush.bf16.xpose.msrb.mxu3 %v1415_v57  ;;  %v1458_v8 = vpop.f32.mrf.mxu0  ;;  %v4386_v25 = vld [vmem:[%s5061_s1 + $0x18] sm:$0xff] }
 0x2a5   : > { %v1077_v40 = vpack.c.bf16 %v3578_v55, %v3578_v55  ;;  %v1076_v4 = vpack.c.bf16 %v3577_v58, %v3577_v58  ;;  %v1696_v27 = vadd.f32 %v4358_v49, %v1458_v8 }
 0x2a6   : > { %v1529_v30 = vunpack.c.l.b16 %v1069_v47  ;;  %v1528_v34 = vunpack.c.l.b16 %v1068_v60 }
 0x2a7   : > { %v1649_v6 = vunpack.c.l.b16 %v1077_v40  ;;  %v1648_v7 = vunpack.c.l.b16 %v1076_v4  ;;  %v4363_v9 = vadd.f32 %v4279_v52, %v1696_v27  ;;  %v4406_v27 = vld [vmem:[%s5062_s2 + $0x38] sm:$0xff] }
 0x2a8   : > { %v1530_v11 = vpack.c.b16 %v1529_v30, %v1528_v34  ;;  %v4417_v30 = vld [vmem:[%s5061_s1 + $0x20] sm:$0xff] }
 0x2a9   : > { %v1650_v14 = vpack.c.b16 %v1649_v6, %v1648_v7  ;;  %v1803_v18 = vsel %vm1751_vm12, %v4363_v9, -inf  ;;  %v3571_v19 = vpop.permute.xlu0 %3570  ;;  %v4422_v6 = vld [vmem:[%s5061_s1 + $0x10] sm:$0xff] }
 0x2aa   : > { %1804 = vmax.xlane.f32.xlu0 %v1803_v18  ;;  %v1535_v21 = vsel %vm1200_vm11, %v1530_v11, 0  ;;  %v3573_v2 = vunpack.i.h.bf16 %v3571_v19  ;;  %v3572_v5 = vunpack.i.l.bf16 %v3571_v19 }
 0x2ab   : > { %3316 = vmatmul.msk.bf16.vlgmr.msrb.gmra.mxu3 %vm1200_vm11, %v1405_v35  ;;  %v1655_v1 = vsel %vm1200_vm11, %v1650_v14, 0  ;;  %v1695_v14 = vadd.f32 %v4417_v30, %v4353_v29 }
 0x2ac   : > { %1544 = vmatpush.bf16.xpose.msra.mxu3 %v1535_v21  ;;  %v957_v23 = vpack.c.bf16 %v3573_v2, %v3573_v2  ;;  %v956_v26 = vpack.c.bf16 %v3572_v5, %v3572_v5 }
 0x2ae   : > { %v1524_v45 = vunpack.c.l.b16 %v957_v23  ;;  %v1523_v33 = vunpack.c.l.b16 %v956_v26  ;;  %v1576_v44 = vpop.f32.mrf.mxu0  ;;  %v4440_v23 = vadd.f32 %v4248_v16, %v1695_v14 }
 0x2b0   : > { %v1525_v43 = vpack.c.b16 %v1524_v45, %v1523_v33 }
 0x2b1   : > { %v3581_v48 = vpop.permute.xlu0 %3580 }
 0x2b2   : > { %v3583_v60 = vunpack.i.h.bf16 %v3581_v48  ;;  %v3582_v8 = vunpack.i.l.bf16 %v3581_v48 }
 0x2b3   : > { %v1336_v37 = vpop.f32.mrf.mxu2 }
 0x2b4   : > { %1664 = vmatpush.bf16.xpose.msrb.mxu3 %v1655_v1  ;;  %v1754_v57 = vpop.xlane.xlu2 %1753  ;;  %v964_v34 = vpack.c.bf16 %v3582_v8, %v3582_v8  ;;  %v1687_v33 = vadd.f32 %v4422_v6, %v1336_v37 }
 0x2b5   : > { %v1848_v40 = vsub.f32 %v4253_v39, %v1754_v57  ;;  %v965_v39 = vpack.c.bf16 %v3583_v60, %v3583_v60 }
 0x2b6   : > { %v1643_v1 = vunpack.c.l.b16 %v964_v34  ;;  %v4458_v37 = vadd.f32 %v4248_v16, %v1687_v33 }
 0x2b7   : > { %v1306_v36 = vpop.f32.mrf.mxu3  ;;  %v1880_v11 = vmul.f32 1.442695, %v1848_v40  ;;  %v1644_v21 = vunpack.c.l.b16 %v965_v39 }
 0x2b8   : > { %v1685_v24 = vadd.f32 %v4243_v13, %v1306_v36  ;;  %v1703_v13 = vadd.f32 %v4381_v12, %v1576_v44  ;;  %v1800_v36 = vsel %vm1751_vm12, %v4440_v23, -inf  ;;  %v1776_v60 = vsel %vm1751_vm12, %v4458_v37, -inf }
 0x2b9   : > { %3698 = vpow2.f32 %v1880_v11  ;;  %v1645_v29 = vpack.c.b16 %v1644_v21, %v1643_v1 }
 0x2ba   : > { %v4389_v55 = vadd.f32 %v4375_v38, %v1685_v24 }
 0x2bb   : > { %v1338_v58 = vpop.f32.mrf.mxu2  ;;  %3320 = vmatmul.msk.bf16.vlgmr.msra.gmra.mxu3 %vm1200_vm11, %v1525_v43 }
 0x2bc   : > { %v1688_v59 = vadd.f32 %v4386_v25, %v1338_v58  ;;  %2241 = vmatpush.bf16.msra.mxu3 %v2229_v10  ;;  %v1770_v47 = vsel %vm1751_vm12, %v4389_v55, -inf  ;;  %v4412_v10 = vadd.f32 %v4248_v16, %v1703_v13 }
 0x2bd   : > { %1771 = vmax.xlane.f32.xlu2 %v1770_v47  ;;  %v4463_v47 = vld [vmem:[%s5061_s1 + $0x38] sm:$0xff] }
 0x2be   : > { %v4400_v15 = vadd.f32 %v4279_v52, %v1688_v59  ;;  %v1824_v18 = vsel %vm1751_vm12, %v4412_v10, -inf  ;;  %v1578_v59 = vpop.f32.mrf.mxu0 }
 0x2bf   : > { %v1308_v4 = vpop.f32.mrf.mxu3  ;;  %v4447_v24 = vpop.eup %3698 }
 0x2c0   : > { %v1686_v53 = vadd.f32 %v4271_v0, %v1308_v4  ;;  %v1779_v61 = vsel %vm1751_vm12, %v4400_v15, -inf  ;;  %v1944_v57 = vsel %vm1751_vm12, %v4447_v24, 0.0 }
 0x2c1   : > { %1780 = vmax.xlane.f32.xlu0 %v1779_v61 }
 0x2c2   : > { %v1366_v0 = vpop.f32.mrf.mxu1  ;;  %v4425_v7 = vadd.f32 %v4406_v27, %v1686_v53 }
 0x2c3   : > { %v1689_v35 = vadd.f32 %v4422_v6, %v1366_v0 }
 0x2c4   : > { %v1773_v19 = vsel %vm1751_vm12, %v4425_v7, -inf }
 0x2c5   : > { %1825 = vmax.xlane.f32.xlu2 %v1824_v18  ;;  %1774 = vmax.xlane.f32.xlu1 %v1773_v19  ;;  %v4435_v2 = vadd.f32 %v4325_v42, %v1689_v35 }
 0x2c7   : > { %v1782_v5 = vsel %vm1751_vm12, %v4435_v2, -inf }
 0x2c9   : > { %1783 = vmax.xlane.f32.xlu0 %v1782_v5 }
 0x2ca   : > { %v1368_v26 = vpop.f32.mrf.mxu1 }
 0x2cb   : > { %v1690_v45 = vadd.f32 %v4386_v25, %v1368_v26  ;;  %3324 = vmatmul.msk.bf16.vlgmr.msrb.gmra.mxu3 %vm1200_vm11, %v1645_v29 }
 0x2cc   : > { %v1763_v8 = vpop.xlane.xlu2 %1762 }
 0x2cd   : > { %v1757_v43 = vpop.xlane.xlu1 %1756  ;;  %1801 = vmax.xlane.f32.xlu1 %v1800_v36  ;;  %v4450_v44 = vadd.f32 %v4284_v32, %v1690_v45 }
 0x2ce   : > { %v1849_v48 = vsub.f32 %v4289_v41, %v1757_v43  ;;  %v1704_v41 = vadd.f32 %v4463_v47, %v1578_v59 }
 0x2cf   : > { %v1785_v58 = vsel %vm1751_vm12, %v4450_v44, -inf }
 0x2d0   : > { %v1882_v13 = vmul.f32 1.442695, %v1849_v48  ;;  %1786 = vmax.xlane.f32.xlu2 %v1785_v58  ;;  %v4471_v16 = vadd.f32 %v4279_v52, %v1704_v41 }
 0x2d1   : > { %1945 = vadd.xlane.f32.xlu0 %v1944_v57 }
 0x2d2   : > { %3700 = vpow2.f32 %v1882_v13  ;;  %v1486_v40 = vpop.f32.mrf.mxu1  ;;  %v1827_v39 = vsel %vm1751_vm12, %v4471_v16, -inf }
 0x2d3   : > { %v1697_v61 = vadd.f32 %v4417_v30, %v1486_v40 }
 0x2d4   : > { %v1766_v35 = vpop.xlane.xlu2 %1765 }
 0x2d5   : > { %1777 = vmax.xlane.f32.xlu1 %v1776_v60  ;;  %v4480_v14 = vadd.f32 %v4325_v42, %v1697_v61  ;;  %v1852_v18 = vsub.f32 %v4314_v28, %v1766_v35 }
 0x2d7   : > { %v1806_v1 = vsel %vm1751_vm12, %v4480_v14, -inf  ;;  %v1888_v29 = vmul.f32 1.442695, %v1852_v18 }
 0x2d8   : > { %v4468_v4 = vpop.eup %3700 }
 0x2d9   : > { %v1947_v53 = vsel %vm1751_vm12, %v4468_v4, 0.0 }
 0x2da   : > { %1948 = vadd.xlane.f32.xlu2 %v1947_v53  ;;  %v1488_v52 = vpop.f32.mrf.mxu1 }
 0x2db   : > { %v1698_v26 = vadd.f32 %v4358_v49, %v1488_v52 }
 0x2dd   : > { %v1760_v34 = vpop.xlane.xlu0 %1759  ;;  %1828 = vmax.xlane.f32.xlu1 %v1827_v39 }
 0x2de   : > { %v1850_v0 = vsub.f32 %v4336_v51, %v1760_v34  ;;  %v1851_v51 = vsub.f32 %v4299_v54, %v1763_v8  ;;  %v4499_v54 = vadd.f32 %v4284_v32, %v1698_v26  ;;  %v1769_v8 = vpop.xlane.xlu1 %1768 }
 0x2e0   : > { %v1884_v11 = vmul.f32 1.442695, %v1850_v0  ;;  %v1886_v33 = vmul.f32 1.442695, %v1851_v51  ;;  %v1809_v59 = vsel %vm1751_vm12, %v4499_v54, -inf  ;;  %v1853_v0 = vsub.f32 %v4340_v31, %v1769_v8 }
 0x2e2   : > { %3702 = vpow2.f32 %v1884_v11  ;;  %v1606_v36 = vpop.f32.mrf.mxu1 }
 0x2e3   : > { %v1396_v19 = vpop.f32.mrf.mxu2  ;;  %3704 = vpow2.f32 %v1888_v29  ;;  %v1705_v11 = vadd.f32 %v4381_v12, %v1606_v36 }
 0x2e4   : > { %v1691_v21 = vadd.f32 %v4422_v6, %v1396_v19  ;;  %3706 = vpow2.f32 %v1886_v33  ;;  %v1890_v19 = vmul.f32 1.442695, %v1853_v0 }
 0x2e5   : > { %1807 = vmax.xlane.f32.xlu1 %v1806_v1 }
 0x2e6   : > { %v4487_v5 = vadd.f32 %v4309_v17, %v1691_v21  ;;  %v4526_v21 = vadd.f32 %v4325_v42, %v1705_v11  ;;  %3708 = vpow2.f32 %v1890_v19 }
 0x2e8   : > { %v1788_v45 = vsel %vm1751_vm12, %v4487_v5, -inf  ;;  %v4493_v28 = vpop.eup %3702  ;;  %v1830_v31 = vsel %vm1751_vm12, %v4526_v21, -inf }
 0x2e9   : > { %1789 = vmax.xlane.f32.xlu0 %v1788_v45  ;;  %v1950_v58 = vsel %vm1751_vm12, %v4493_v28, 0.0  ;;  %v4508_v41 = vpop.eup %3704 }
 0x2ea   : > { %v1956_v53 = vsel %vm1751_vm12, %v4508_v41, 0.0  ;;  %v4513_v61 = vpop.eup %3706  ;;  %v1608_v39 = vpop.f32.mrf.mxu1 }
 0x2eb   : > { %v1398_v43 = vpop.f32.mrf.mxu2  ;;  %v1706_v35 = vadd.f32 %v4463_v47, %v1608_v39  ;;  %v1953_v18 = vsel %vm1751_vm12, %v4513_v61, 0.0 }
 0x2ec   : > { %v1692_v48 = vadd.f32 %v4386_v25, %v1398_v43  ;;  %v4535_v29 = vpop.eup %3708 }
 0x2ed   : > { %1951 = vadd.xlane.f32.xlu1 %v1950_v58  ;;  %v4529_v1 = vadd.f32 %v4284_v32, %v1706_v35  ;;  %v1959_v26 = vsel %vm1751_vm12, %v4535_v29, 0.0 }
 0x2ee   : > { %v4502_v13 = vadd.f32 %v4332_v46, %v1692_v48 }
 0x2ef   : > { %v1833_v51 = vsel %vm1751_vm12, %v4529_v1, -inf }
 0x2f0   : > { %v1791_v57 = vsel %vm1751_vm12, %v4502_v13, -inf }
 0x2f1   : > { %1792 = vmax.xlane.f32.xlu2 %v1791_v57  ;;  %1810 = vmax.xlane.f32.xlu0 %v1809_v59 }
 0x2f3   : > { %v1516_v60 = vpop.f32.mrf.mxu2 }
 0x2f4   : > { %v1699_v40 = vadd.f32 %v4417_v30, %v1516_v60 }
 0x2f5   : > { %1957 = vadd.xlane.f32.xlu1 %v1956_v53 }
 0x2f6   : > { %v4516_v34 = vadd.f32 %v4309_v17, %v1699_v40 }
 0x2f8   : > { %v1812_v52 = vsel %vm1751_vm12, %v4516_v34, -inf }
 0x2f9   : > { %1813 = vmax.xlane.f32.xlu2 %v1812_v52  ;;  %1954 = vadd.xlane.f32.xlu0 %v1953_v18 }
 0x2fb   : > { %v1518_v45 = vpop.f32.mrf.mxu2 }
 0x2fc   : > { %v1700_v58 = vadd.f32 %v4358_v49, %v1518_v45 }
 0x301   : > { %1831 = vmax.xlane.f32.xlu0 %v1830_v31  ;;  %1834 = vmax.xlane.f32.xlu2 %v1833_v51 }
 0x303   : > { %v1636_v53 = vpop.f32.mrf.mxu2 }
 0x304   : > { %v1707_v11 = vadd.f32 %v4381_v12, %v1636_v53 }
 0x306   : > { %v4565_v51 = vadd.f32 %v4309_v17, %v1707_v11 }
 0x309   : > { %1960 = vadd.xlane.f32.xlu0 %v1959_v26 }
 0x30b   : > { %v1638_v17 = vpop.f32.mrf.mxu2 }
 0x31d   : > { %v1805_v42 = vpop.xlane.xlu0 %1804 }
 0x32e   : > { %v1426_v33 = vpop.f32.mrf.mxu3 }
 0x32f   : > { %v1693_v32 = vadd.f32 %v4422_v6, %v1426_v33  ;;  %v4551_v6 = vadd.f32 %v4332_v46, %v1700_v58 }
 0x330   : > { %v1772_v36 = vpop.xlane.xlu2 %1771 }
 0x331   : > { %v4541_v43 = vadd.f32 %v4375_v38, %v1693_v32  ;;  %v1854_v48 = vsub.f32 %v4389_v55, %v1772_v36  ;;  %v1815_v52 = vsel %vm1751_vm12, %v4551_v6, -inf  ;;  %v1836_v32 = vsel %vm1751_vm12, %v4565_v51, -inf }
 0x333   : > { %v1794_v57 = vsel %vm1751_vm12, %v4541_v43, -inf  ;;  %v1892_v60 = vmul.f32 1.442695, %v1854_v48 }
 0x334   : > { %v4547_v59 = vpop.xlane.xlu0 %1780  ;;  %1795 = vmax.xlane.f32.xlu1 %v1794_v57 }
 0x335   : > { %3710 = vpow2.f32 %v1892_v60 }
 0x336   : > { %v1428_v8 = vpop.f32.mrf.mxu3 }
 0x337   : > { %v1694_v40 = vadd.f32 %v4386_v25, %v1428_v8 }
 0x338   : > { %v1775_v39 = vpop.xlane.xlu1 %1774  ;;  %v1826_v35 = vpop.xlane.xlu2 %1825 }
 0x339   : > { %v4554_v0 = vadd.f32 %v4406_v27, %v1694_v40  ;;  %v1855_v55 = vsub.f32 %v4425_v7, %v1775_v39  ;;  %v1865_v40 = vsub.f32 %v4363_v9, %v1805_v42  ;;  %v1708_v39 = vadd.f32 %v4463_v47, %v1638_v17 }
 0x33b   : > { %v1797_v25 = vsel %vm1751_vm12, %v4554_v0, -inf  ;;  %v1894_v19 = vmul.f32 1.442695, %v1855_v55  ;;  %v4567_v26 = vpop.eup %3710 }
 0x33c   : > { %v4562_v18 = vpop.xlane.xlu0 %1783  ;;  %1816 = vmax.xlane.f32.xlu1 %v1815_v52  ;;  %1798 = vmax.xlane.f32.xlu0 %v1797_v25  ;;  %v1962_v36 = vsel %vm1751_vm12, %v4567_v26, 0.0  ;;  %v1914_v25 = vmul.f32 1.442695, %v1865_v40 }
 0x33d   : > { %3712 = vpow2.f32 %v1894_v19 }
 0x33e   : > { %v1546_v31 = vpop.f32.mrf.mxu3 }
 0x33f   : > { %v1701_v45 = vadd.f32 %v4417_v30, %v1546_v31 }
 0x340   : > { %v1802_v7 = vpop.xlane.xlu1 %1801 }
 0x341   : > { %v4578_v60 = vadd.f32 %v4375_v38, %v1701_v45  ;;  %v4596_v45 = vadd.f32 %v4332_v46, %v1708_v39 }
 0x343   : > { %v4570_v33 = vpop.xlane.xlu2 %1786  ;;  %v4580_v8 = vpop.eup %3712  ;;  %v1839_v46 = vsel %vm1751_vm12, %v4596_v45, -inf }
 0x344   : > { %1837 = vmax.xlane.f32.xlu1 %v1836_v32  ;;  %1963 = vadd.xlane.f32.xlu0 %v1962_v36  ;;  %v1946_v48 = vpop.xlane.xlu0 %1945  ;;  %v1965_v11 = vsel %vm1751_vm12, %v4580_v8, 0.0  ;;  %v3478_v32 = vunpack.i.h.bf16 %v4225_v63  ;;  %v3477_v36 = vunpack.i.l.bf16 %v4225_v63 }
 0x345   : > { %3714 = vrcp.f32 %v1946_v48 }
 0x346   : > { %v1548_v58 = vpop.f32.mrf.mxu3  ;;  %v1175_v39 = vpack.c.bf16 %v3478_v32, %v3478_v32  ;;  %v1859_v32 = vsub.f32 %v4450_v44, %v4570_v33 }
 0x347   : > { %v1702_v57 = vadd.f32 %v4358_v49, %v1548_v58  ;;  %v1818_v49 = vsel %vm1751_vm12, %v4578_v60, -inf  ;;  %v1872_v58 = vsub.f32 %v4412_v10, %v1826_v35 }
 0x348   : > { %v1778_v30 = vpop.xlane.xlu1 %1777  ;;  %v1902_v44 = vmul.f32 1.442695, %v1859_v32 }
 0x349   : > { %v4584_v53 = vadd.f32 %v4406_v27, %v1702_v57  ;;  %v1856_v55 = vsub.f32 %v4458_v37, %v1778_v30  ;;  %v1864_v30 = vsub.f32 %v4440_v23, %v1802_v7  ;;  %v1928_v10 = vmul.f32 1.442695, %v1872_v58 }
 0x34b   : > { %v1821_v52 = vsel %vm1751_vm12, %v4584_v53, -inf  ;;  %v3715_v42 = vpop.eup %3714  ;;  %v1896_v31 = vmul.f32 1.442695, %v1856_v55  ;;  %v1174_v55 = vpack.c.bf16 %v3477_v36, %v3477_v36  ;;  %v1912_v35 = vmul.f32 1.442695, %v1864_v30 }
 0x34c   : > { %1966 = vadd.xlane.f32.xlu1 %v1965_v11  ;;  %1819 = vmax.xlane.f32.xlu0 %v1818_v49  ;;  %v2072_v17 = vmul.f32 %v3715_v42, %v4447_v24 }
 0x34d   : > { %1822 = vmax.xlane.f32.xlu2 %v1821_v52  ;;  %v1949_v9 = vpop.xlane.xlu2 %1948  ;;  %v2368_v52 = vunpack.c.l.b16 %v1175_v39 }
 0x34e   : > { %3716 = vrcp.f32 %v1949_v9  ;;  %v1666_v19 = vpop.f32.mrf.mxu3  ;;  %v2104_v24 = vpack.c.bf16 %v2072_v17, %v2072_v17  ;;  %v1857_v9 = vsub.f32 %v4400_v15, %v4547_v59 }
 0x34f   : > { %v1709_v37 = vadd.f32 %v4381_v12, %v1666_v19  ;;  %3718 = vpow2.f32 %v1914_v25  ;;  %v2367_v25 = vunpack.c.l.b16 %v1174_v55 }
 0x350   : > { %v1829_v48 = vpop.xlane.xlu1 %1828  ;;  %3720 = vpow2.f32 %v1896_v31  ;;  %v2138_v31 = vunpack.c.l.b16 %v2104_v24  ;;  %v1898_v17 = vmul.f32 1.442695, %v1857_v9  ;;  %v3483_v9 = vunpack.i.h.bf16 %v4236_v3 }
 0x351   : > { %v4603_v57 = vadd.f32 %v4375_v38, %v1709_v37  ;;  %v1873_v12 = vsub.f32 %v4471_v16, %v1829_v48  ;;  %3722 = vpow2.f32 %v1928_v10  ;;  %v2369_v48 = vpack.c.b16 %v2368_v52, %v2367_v25 }
 0x352   : > { %3724 = vpow2.f32 %v1912_v35 }
 0x353   : > { %v1842_v63 = vsel %vm1751_vm12, %v4603_v57, -inf  ;;  %v1930_v11 = vmul.f32 1.442695, %v1873_v12 }
 0x354   : > { %v3717_v40 = vpop.eup %3716  ;;  %1840 = vmax.xlane.f32.xlu0 %v1839_v46  ;;  %v1858_v46 = vsub.f32 %v4435_v2, %v4562_v18 }
 0x355   : > { %v2073_v38 = vmul.f32 %v3717_v40, %v4468_v4  ;;  %1843 = vmax.xlane.f32.xlu2 %v1842_v63  ;;  %v4612_v7 = vpop.eup %3718  ;;  %3726 = vpow2.f32 %v1930_v11 }
 0x356   : > { %v1668_v23 = vpop.f32.mrf.mxu3  ;;  %v4617_v19 = vpop.eup %3720  ;;  %3728 = vpow2.f32 %v1898_v17 }
 0x357   : > { %v2105_v16 = vpack.c.bf16 %v2073_v38, %v2073_v38  ;;  %v1710_v49 = vadd.f32 %v4463_v47, %v1668_v23  ;;  %v1995_v47 = vsel %vm1751_vm12, %v4612_v7, 0.0  ;;  %v4632_v33 = vpop.eup %3722  ;;  %3730 = vpow2.f32 %v1902_v44 }
 0x358   : > { %v1808_v42 = vpop.xlane.xlu1 %1807  ;;  %v2016_v39 = vsel %vm1751_vm12, %v4632_v33, 0.0  ;;  %v1900_v38 = vmul.f32 1.442695, %v1858_v46 }
 0x359   : > { %v2139_v4 = vunpack.c.l.b16 %v2105_v16  ;;  %v4620_v37 = vadd.f32 %v4406_v27, %v1710_v49  ;;  %v1866_v15 = vsub.f32 %v4480_v14, %v1808_v42  ;;  %v1968_v27 = vsel %vm1751_vm12, %v4617_v19, 0.0  ;;  %v4634_v14 = vpop.eup %3724 }
 0x35a   : > { %v1992_v40 = vsel %vm1751_vm12, %v4634_v14, 0.0  ;;  %v3482_v42 = vunpack.i.l.bf16 %v4236_v3 }
 0x35b   : > { %v2140_v36 = vpack.c.b16 %v2139_v4, %v2138_v31  ;;  %v1845_v59 = vsel %vm1751_vm12, %v4620_v37, -inf  ;;  %v1916_v30 = vmul.f32 1.442695, %v1866_v15  ;;  %v4636_v12 = vpop.eup %3726 }
 0x35c   : > { %v1790_v58 = vpop.xlane.xlu0 %1789  ;;  %1846 = vmax.xlane.f32.xlu1 %v1845_v59  ;;  %1996 = vadd.xlane.f32.xlu0 %v1995_v47  ;;  %v2019_v24 = vsel %vm1751_vm12, %v4636_v12, 0.0  ;;  %v4647_v2 = vpop.eup %3728  ;;  %v1176_v59 = vpack.c.bf16 %v3482_v42, %v3482_v42 }
 0x35d   : > { %1969 = vadd.xlane.f32.xlu2 %v1968_v27  ;;  %3325 = vmatmul.msk.bf16.vlgmr.msrb.gmra.mxu0 %vm1751_vm12, %v2140_v36  ;;  %3732 = vpow2.f32 %v1916_v30  ;;  %v1860_v63 = vsub.f32 %v4487_v5, %v1790_v58  ;;  %v4649_v5 = vpop.eup %3730  ;;  %v1971_v16 = vsel %vm1751_vm12, %v4647_v2, 0.0  ;;  %v1177_v36 = vpack.c.bf16 %v3483_v9, %v3483_v9 }
 0x35e   : > { %2381 = vmatpush.bf16.msrb.mxu0 %v2369_v48  ;;  %v1977_v11 = vsel %vm1751_vm12, %v4649_v5, 0.0 }
 0x35f   : > { %v1904_v18 = vmul.f32 1.442695, %v1860_v63  ;;  %v2396_v46 = vunpack.c.l.b16 %v1177_v36  ;;  %v2395_v63 = vunpack.c.l.b16 %v1176_v59 }
 0x360   : > { %v1952_v55 = vpop.xlane.xlu1 %1951 }
 0x361   : > { %3734 = vrcp.f32 %v1952_v55 }
 0x362   : > { %3736 = vpow2.f32 %v1900_v38 }
 0x363   : > { %v4651_v35 = vpop.eup %3732  ;;  %3738 = vpow2.f32 %v1904_v18 }
 0x364   : > { %1993 = vadd.xlane.f32.xlu1 %v1992_v40  ;;  %v1811_v10 = vpop.xlane.xlu0 %1810  ;;  %2017 = vadd.xlane.f32.xlu0 %v2016_v39  ;;  %v1998_v52 = vsel %vm1751_vm12, %v4651_v35, 0.0  ;;  %v1793_v32 = vpop.xlane.xlu2 %1792 }
 0x365   : > { %2020 = vadd.xlane.f32.xlu2 %v2019_v24  ;;  %v1867_v23 = vsub.f32 %v4499_v54, %v1811_v10  ;;  %v1861_v48 = vsub.f32 %v4502_v13, %v1793_v32  ;;  %v2397_v24 = vpack.c.b16 %v2396_v46, %v2395_v63 }
 0x367   : > { %v3735_v25 = vpop.eup %3734  ;;  %v1918_v54 = vmul.f32 1.442695, %v1867_v23  ;;  %v1906_v40 = vmul.f32 1.442695, %v1861_v48 }
 0x368   : > { %v4662_v31 = vpop.eup %3736  ;;  %v2074_v4 = vmul.f32 %v3735_v25, %v4493_v28  ;;  %v1958_v17 = vpop.xlane.xlu1 %1957 }
 0x369   : > { %v4665_v47 = vpop.eup %3738  ;;  %v1974_v58 = vsel %vm1751_vm12, %v4662_v31, 0.0 }
 0x36a   : > { %v2106_v27 = vpack.c.bf16 %v2074_v4, %v2074_v4  ;;  %v1980_v28 = vsel %vm1751_vm12, %v4665_v47, 0.0 }
 0x36c   : > { %1972 = vadd.xlane.f32.xlu1 %v1971_v16  ;;  %v1955_v49 = vpop.xlane.xlu0 %1954  ;;  %1978 = vadd.xlane.f32.xlu0 %v1977_v11  ;;  %v2166_v13 = vunpack.c.l.b16 %v2106_v27 }
 0x36d   : > { %3740 = vrcp.f32 %v1955_v49  ;;  %1999 = vadd.xlane.f32.xlu2 %v1998_v52 }
 0x36e   : > { %3742 = vpow2.f32 %v1918_v54 }
 0x36f   : > { %3744 = vrcp.f32 %v1958_v17 }
 0x370   : > { %3746 = vpow2.f32 %v1906_v40 }
 0x373   : > { %v3741_v15 = vpop.eup %3740 }
 0x374   : > { %v2075_v3 = vmul.f32 %v3741_v15, %v4513_v61  ;;  %1975 = vadd.xlane.f32.xlu1 %v1974_v58  ;;  %v1832_v44 = vpop.xlane.xlu0 %1831  ;;  %v4673_v55 = vpop.eup %3742 }
 0x375   : > { %1981 = vadd.xlane.f32.xlu2 %v1980_v28  ;;  %v2001_v38 = vsel %vm1751_vm12, %v4673_v55, 0.0  ;;  %v3745_v18 = vpop.eup %3744 }
 0x376   : > { %v2107_v30 = vpack.c.bf16 %v2075_v3, %v2075_v3  ;;  %v2076_v23 = vmul.f32 %v3745_v18, %v4508_v41  ;;  %v4681_v16 = vpop.eup %3746 }
 0x377   : > { %v1983_v25 = vsel %vm1751_vm12, %v4681_v16, 0.0 }
 0x378   : > { %v2167_v39 = vunpack.c.l.b16 %v2107_v30  ;;  %v2108_v49 = vpack.c.bf16 %v2076_v23, %v2076_v23 }
 0x37a   : > { %v2168_v10 = vpack.c.b16 %v2167_v39, %v2166_v13  ;;  %v2194_v42 = vunpack.c.l.b16 %v2108_v49 }
 0x37c   : > { %3326 = vmatmul.msk.bf16.vlgmr.msra.gmra.mxu1 %vm1751_vm12, %v2168_v10  ;;  %v1961_v61 = vpop.xlane.xlu0 %1960 }
 0x37d   : > { %3748 = vrcp.f32 %v1961_v61  ;;  %2002 = vadd.xlane.f32.xlu2 %v2001_v38  ;;  %2409 = vmatpush.bf16.msra.mxu1 %v2397_v24 }
 0x380   : > { %3595 = vrot.lane.b32.xlu0 %v4143_v22, %s3876_s19  ;;  %v1814_v22 = vpop.xlane.xlu2 %1813 }
 0x383   : > { %v3749_v11 = vpop.eup %3748 }
 0x384   : > { %v2077_v52 = vmul.f32 %v3749_v11, %v4535_v29  ;;  %v1874_v29 = vsub.f32 %v4526_v21, %v1832_v44 }
 0x385   : > { %1984 = vadd.xlane.f32.xlu2 %v1983_v25 }
 0x386   : > { %v2109_v9 = vpack.c.bf16 %v2077_v52, %v2077_v52  ;;  %v1932_v15 = vmul.f32 1.442695, %v1874_v29 }
 0x388   : > { %v2195_v54 = vunpack.c.l.b16 %v2109_v9  ;;  %3600 = vrot.lane.b32.xlu0 %v4227_v56, %s3877_s22  ;;  %v1835_v4 = vpop.xlane.xlu2 %1834 }
 0x389   : > { %v1875_v59 = vsub.f32 %v4529_v1, %v1835_v4  ;;  %v1868_v1 = vsub.f32 %v4516_v34, %v1814_v22 }
 0x38a   : > { %v2196_v41 = vpack.c.b16 %v2195_v54, %v2194_v42 }
 0x38b   : > { %v1934_v58 = vmul.f32 1.442695, %v1875_v59  ;;  %v1920_v13 = vmul.f32 1.442695, %v1868_v1 }
 0x38c   : > { %3327 = vmatmul.msk.bf16.vlgmr.msrb.gmra.mxu2 %vm1751_vm12, %v2196_v41 }
 0x38d   : > { %3590 = vrot.lane.b32.xlu1 %v4171_v62, %s3877_s22  ;;  %s3880_s22 = smov 24  }
 0x39d   : > { %3585 = vrot.lane.b32.xlu2 %v4227_v56, %s3875_s17  ;;  %s3878_s17 = smov 8  }
 0x3a7   : > { %v1796_v32 = vpop.xlane.xlu1 %1795 }
 0x3a8   : > { %v1862_v36 = vsub.f32 %v4541_v43, %v1796_v32 }
 0x3aa   : > { %v1908_v48 = vmul.f32 1.442695, %v1862_v36 }
 0x3ac   : > { %3750 = vpow2.f32 %v1908_v48 }
 0x3ad   : > { %3752 = vpow2.f32 %v1932_v15 }
 0x3ae   : > { %3754 = vpow2.f32 %v1934_v58 }
 0x3af   : > { %v1817_v27 = vpop.xlane.xlu1 %1816  ;;  %v1799_v17 = vpop.xlane.xlu0 %1798 }
 0x3b0   : > { %v1863_v3 = vsub.f32 %v4554_v0, %v1799_v17  ;;  %v1869_v28 = vsub.f32 %v4551_v6, %v1817_v27 }
 0x3b2   : > { %v4698_v30 = vpop.eup %3750  ;;  %v1910_v21 = vmul.f32 1.442695, %v1863_v3  ;;  %v1922_v46 = vmul.f32 1.442695, %v1869_v28 }
 0x3b3   : > { %v4700_v44 = vpop.eup %3752  ;;  %v1986_v43 = vsel %vm1751_vm12, %v4698_v30, 0.0 }
 0x3b4   : > { %1987 = vadd.xlane.f32.xlu0 %v1986_v43  ;;  %3756 = vpow2.f32 %v1910_v21  ;;  %v2022_v63 = vsel %vm1751_vm12, %v4700_v44, 0.0  ;;  %v4707_v40 = vpop.eup %3754 }
 0x3b5   : > { %3758 = vpow2.f32 %v1922_v46  ;;  %v2025_v34 = vsel %vm1751_vm12, %v4707_v40, 0.0 }
 0x3b7   : > { %v1838_v0 = vpop.xlane.xlu1 %1837  ;;  %2023 = vadd.xlane.f32.xlu1 %v2022_v63  ;;  %v1964_v6 = vpop.xlane.xlu0 %1963 }
 0x3b8   : > { %v1876_v39 = vsub.f32 %v4565_v51, %v1838_v0  ;;  %3760 = vrcp.f32 %v1964_v6 }
 0x3b9   : > { %3762 = vpow2.f32 %v1920_v13 }
 0x3ba   : > { %v1936_v10 = vmul.f32 1.442695, %v1876_v39  ;;  %v4710_v24 = vpop.eup %3756 }
 0x3bb   : > { %v1989_v61 = vsel %vm1751_vm12, %v4710_v24, 0.0  ;;  %v4716_v38 = vpop.eup %3758 }
 0x3bc   : > { %2026 = vadd.xlane.f32.xlu0 %v2025_v34  ;;  %3764 = vpow2.f32 %v1936_v10  ;;  %v2007_v22 = vsel %vm1751_vm12, %v4716_v38, 0.0 }
 0x3be   : > { %v3761_v51 = vpop.eup %3760 }
 0x3bf   : > { %v1967_v18 = vpop.xlane.xlu1 %1966  ;;  %1990 = vadd.xlane.f32.xlu1 %v1989_v61  ;;  %v1820_v23 = vpop.xlane.xlu0 %1819  ;;  %v2078_v54 = vmul.f32 %v3761_v51, %v4567_v26 }
 0x3c0   : > { %3766 = vrcp.f32 %v1967_v18  ;;  %v1870_v11 = vsub.f32 %v4578_v60, %v1820_v23  ;;  %v1823_v49 = vpop.xlane.xlu2 %1822  ;;  %v4720_v25 = vpop.eup %3762 }
 0x3c1   : > { %v1871_v52 = vsub.f32 %v4584_v53, %v1823_v49  ;;  %v2004_v60 = vsel %vm1751_vm12, %v4720_v25, 0.0  ;;  %v2110_v4 = vpack.c.bf16 %v2078_v54, %v2078_v54 }
 0x3c2   : > { %v1924_v9 = vmul.f32 1.442695, %v1870_v11  ;;  %v4722_v42 = vpop.eup %3764 }
 0x3c3   : > { %v1926_v41 = vmul.f32 1.442695, %v1871_v52  ;;  %v2028_v53 = vsel %vm1751_vm12, %v4722_v42, 0.0  ;;  %v2222_v17 = vunpack.c.l.b16 %v2110_v4  ;;  %v3553_v52 = vunpack.i.h.bf16 %v4370_v50 }
 0x3c4   : > { %3768 = vpow2.f32 %v1924_v9  ;;  %2008 = vadd.xlane.f32.xlu0 %v2007_v22  ;;  %v3552_v9 = vunpack.i.l.bf16 %v4370_v50 }
 0x3c5   : > { %3770 = vpow2.f32 %v1926_v41 }
 0x3c6   : > { %v3767_v29 = vpop.eup %3766  ;;  %2005 = vadd.xlane.f32.xlu2 %v2004_v60  ;;  %v1183_v60 = vpack.c.bf16 %v3553_v52, %v3553_v52 }
 0x3c7   : > { %v2079_v32 = vmul.f32 %v3767_v29, %v4580_v8  ;;  %2029 = vadd.xlane.f32.xlu1 %v2028_v53  ;;  %v1841_v26 = vpop.xlane.xlu0 %1840  ;;  %v1182_v29 = vpack.c.bf16 %v3552_v9, %v3552_v9 }
 0x3c8   : > { %v1877_v36 = vsub.f32 %v4596_v45, %v1841_v26  ;;  %v1844_v15 = vpop.xlane.xlu2 %1843  ;;  %v2480_v26 = vunpack.c.l.b16 %v1183_v60 }
 0x3c9   : > { %v2111_v59 = vpack.c.bf16 %v2079_v32, %v2079_v32  ;;  %v1878_v21 = vsub.f32 %v4603_v57, %v1844_v15 }
 0x3ca   : > { %v4733_v48 = vpop.eup %3768  ;;  %v1938_v58 = vmul.f32 1.442695, %v1877_v36  ;;  %v2479_v36 = vunpack.c.l.b16 %v1182_v29 }
 0x3cb   : > { %v4735_v27 = vpop.eup %3770  ;;  %v2223_v3 = vunpack.c.l.b16 %v2111_v59  ;;  %v2010_v28 = vsel %vm1751_vm12, %v4733_v48, 0.0  ;;  %v1940_v46 = vmul.f32 1.442695, %v1878_v21 }
 0x3cc   : > { %3772 = vpow2.f32 %v1938_v58  ;;  %v2013_v8 = vsel %vm1751_vm12, %v4735_v27, 0.0 }
 0x3cd   : > { %v2224_v43 = vpack.c.b16 %v2223_v3, %v2222_v17  ;;  %2014 = vadd.xlane.f32.xlu0 %v2013_v8  ;;  %3774 = vpow2.f32 %v1940_v46 }
 0x3ce   : > { %2011 = vadd.xlane.f32.xlu2 %v2010_v28  ;;  %v2481_v28 = vpack.c.b16 %v2480_v26, %v2479_v36 }
 0x3cf   : > { %v1847_v45 = vpop.xlane.xlu1 %1846  ;;  %3328 = vmatmul.msk.bf16.vlgmr.msra.gmra.mxu3 %vm1751_vm12, %v2224_v43  ;;  %v1997_v1 = vpop.xlane.xlu0 %1996 }
 0x3d0   : > { %v1970_v63 = vpop.xlane.xlu2 %1969  ;;  %v1879_v57 = vsub.f32 %v4620_v37, %v1847_v45 }
 0x3d1   : > { %3776 = vrcp.f32 %v1970_v63 }
 0x3d2   : > { %v4743_v0 = vpop.eup %3772  ;;  %v1942_v10 = vmul.f32 1.442695, %v1879_v57 }
 0x3d3   : > { %v2031_v6 = vsel %vm1751_vm12, %v4743_v0, 0.0  ;;  %v4750_v61 = vpop.eup %3774 }
 0x3d4   : > { %3778 = vpow2.f32 %v1942_v10  ;;  %v2034_v18 = vsel %vm1751_vm12, %v4750_v61, 0.0 }
 0x3d6   : > { %2032 = vadd.xlane.f32.xlu2 %v2031_v6 }
 0x3d7   : > { %v1994_v13 = vpop.xlane.xlu1 %1993  ;;  %v2018_v39 = vpop.xlane.xlu0 %2017 }
 0x3d8   : > { %v4748_v34 = vpop.xlane.xlu2 %2020  ;;  %v3777_v11 = vpop.eup %3776 }
 0x3d9   : > { %v2080_v54 = vmul.f32 %v3777_v11, %v4617_v19 }
 0x3da   : > { %v4758_v37 = vpop.eup %3778 }
 0x3db   : > { %v2037_v41 = vsel %vm1751_vm12, %v4758_v37, 0.0 }
 0x3de   : > { %2035 = vadd.xlane.f32.xlu2 %v2034_v18 }
 0x3df   : > { %v1973_v23 = vpop.xlane.xlu1 %1972  ;;  %v1979_v51 = vpop.xlane.xlu0 %1978 }
 0x3e0   : > { %3780 = vrcp.f32 %v1973_v23  ;;  %v2000_v49 = vpop.xlane.xlu2 %1999  ;;  %3605 = vrot.lane.b32.xlu1 %v4171_v62, %s3876_s19  ;;  %v2112_v62 = vpack.c.bf16 %v2080_v54, %v2080_v54 }
 0x3e1   : > { %3610 = vrot.lane.b32.xlu0 %v4227_v56, %s3876_s19  ;;  %3782 = vrcp.f32 %v1979_v51  ;;  %s3879_s19 = smov 16  }
 0x3e2   : > { %3784 = vrcp.f32 %v1994_v13  ;;  %v2250_v19 = vunpack.c.l.b16 %v2112_v62 }
 0x3e6   : > { %v3781_v22 = vpop.eup %3780  ;;  %2038 = vadd.xlane.f32.xlu2 %v2037_v41 }
 0x3e7   : > { %v2081_v56 = vmul.f32 %v3781_v22, %v4647_v2  ;;  %v1976_v53 = vpop.xlane.xlu1 %1975  ;;  %v3783_v4 = vpop.eup %3782 }
 0x3e8   : > { %3786 = vrcp.f32 %v1976_v53  ;;  %v1982_v32 = vpop.xlane.xlu2 %1981  ;;  %v2083_v59 = vmul.f32 %v3783_v4, %v4649_v5  ;;  %v3785_v58 = vpop.eup %3784 }
 0x3e9   : > { %3788 = vrcp.f32 %v1997_v1  ;;  %v2113_v50 = vpack.c.bf16 %v2081_v56, %v2081_v56  ;;  %v2088_v45 = vmul.f32 %v3785_v58, %v4634_v14 }
 0x3ea   : > { %v2115_v8 = vpack.c.bf16 %v2083_v59, %v2083_v59  ;;  %3790 = vrcp.f32 %v2000_v49 }
 0x3eb   : > { %v2251_v15 = vunpack.c.l.b16 %v2113_v50  ;;  %v2120_v10 = vpack.c.bf16 %v2088_v45, %v2088_v45 }
 0x3ec   : > { %v2279_v63 = vunpack.c.l.b16 %v2115_v8 }
 0x3ed   : > { %v2252_v17 = vpack.c.b16 %v2251_v15, %v2250_v19  ;;  %v2362_v54 = vunpack.c.l.b16 %v2120_v10 }
 0x3ee   : > { %v3787_v3 = vpop.eup %3786 }
 0x3ef   : > { %v3789_v21 = vpop.eup %3788  ;;  %v2082_v2 = vmul.f32 %v3787_v3, %v4662_v31  ;;  %3329 = vmatmul.msk.bf16.vlgmr.msra.gmra.mxu0 %vm1751_vm12, %v2252_v17 }
 0x3f0   : > { %2493 = vmatpush.bf16.msra.mxu0 %v2481_v28  ;;  %v2003_v43 = vpop.xlane.xlu2 %2002  ;;  %v2089_v46 = vmul.f32 %v3789_v21, %v4612_v7  ;;  %v3791_v51 = vpop.eup %3790 }
 0x3f1   : > { %v2114_v1 = vpack.c.bf16 %v2082_v2, %v2082_v2  ;;  %3792 = vrcp.f32 %v2003_v43  ;;  %v2090_v60 = vmul.f32 %v3791_v51, %v4651_v35 }
 0x3f2   : > { %3794 = vrcp.f32 %v1982_v32  ;;  %v3596_v5 = vpop.permute.xlu0 %3595  ;;  %v2121_v14 = vpack.c.bf16 %v2089_v46, %v2089_v46 }
 0x3f3   : > { %v2278_v6 = vunpack.c.l.b16 %v2114_v1  ;;  %v3598_v57 = vunpack.i.h.bf16 %v3596_v5  ;;  %v3597_v13 = vunpack.i.l.bf16 %v3596_v5  ;;  %3796 = vrcp.f32 %v2018_v39 }
 0x3f4   : > { %3798 = vrcp.f32 %v4748_v34  ;;  %v2363_v62 = vunpack.c.l.b16 %v2121_v14  ;;  %v2122_v36 = vpack.c.bf16 %v2090_v60, %v2090_v60 }
 0x3f5   : > { %v2280_v31 = vpack.c.b16 %v2279_v63, %v2278_v6  ;;  %v1185_v18 = vpack.c.bf16 %v3598_v57, %v3598_v57  ;;  %v1184_v23 = vpack.c.bf16 %v3597_v13, %v3597_v13 }
 0x3f6   : > { %v2364_v32 = vpack.c.b16 %v2363_v62, %v2362_v54  ;;  %v2390_v43 = vunpack.c.l.b16 %v2122_v36 }
 0x3f7   : > { %v3793_v11 = vpop.eup %3792  ;;  %v2508_v49 = vunpack.c.l.b16 %v1185_v18  ;;  %v2507_v52 = vunpack.c.l.b16 %v1184_v23  ;;  %3330 = vmatmul.msk.bf16.vlgmr.msrb.gmra.mxu1 %vm1751_vm12, %v2280_v31 }
 0x3f8   : > { %v3795_v7 = vpop.eup %3794  ;;  %v1985_v9 = vpop.xlane.xlu2 %1984  ;;  %v2091_v41 = vmul.f32 %v3793_v11, %v4673_v55 }
 0x3f9   : > { %v2509_v22 = vpack.c.b16 %v2508_v49, %v2507_v52  ;;  %3800 = vrcp.f32 %v1985_v9  ;;  %v3797_v39 = vpop.eup %3796  ;;  %v2084_v34 = vmul.f32 %v3795_v7, %v4665_v47 }
 0x3fa   : > { %v3601_v29 = vpop.permute.xlu0 %3600  ;;  %v3799_v53 = vpop.eup %3798  ;;  %v2096_v50 = vmul.f32 %v3797_v39, %v4632_v33  ;;  %v2123_v26 = vpack.c.bf16 %v2091_v41, %v2091_v41 }
 0x3fb   : > { %v3603_v56 = vunpack.i.h.bf16 %v3601_v29  ;;  %2521 = vmatpush.bf16.msrb.mxu1 %v2509_v22  ;;  %v3602_v4 = vunpack.i.l.bf16 %v3601_v29  ;;  %v2097_v55 = vmul.f32 %v3799_v53, %v4636_v12  ;;  %v2116_v15 = vpack.c.bf16 %v2084_v34, %v2084_v34 }
 0x3fc   : > { %v2128_v21 = vpack.c.bf16 %v2096_v50, %v2096_v50  ;;  %v2391_v8 = vunpack.c.l.b16 %v2123_v26 }
 0x3fd   : > { %v1181_v59 = vpack.c.bf16 %v3603_v56, %v3603_v56  ;;  %v1180_v47 = vpack.c.bf16 %v3602_v4, %v3602_v4  ;;  %v2306_v12 = vunpack.c.l.b16 %v2116_v15  ;;  %v2129_v31 = vpack.c.bf16 %v2097_v55, %v2097_v55 }
 0x3fe   : > { %v2392_v18 = vpack.c.b16 %v2391_v8, %v2390_v43  ;;  %v2474_v7 = vunpack.c.l.b16 %v2128_v21 }
 0x3ff   : > { %v3801_v19 = vpop.eup %3800  ;;  %v3591_v58 = vpop.permute.xlu1 %3590  ;;  %3333 = vmatmul.msk.bf16.vlgmr.msrb.gmra.mxu0 %vm1751_vm12, %v2364_v32  ;;  %v2452_v5 = vunpack.c.l.b16 %v1181_v59  ;;  %v2451_v13 = vunpack.c.l.b16 %v1180_v47  ;;  %v2475_v9 = vunpack.c.l.b16 %v2129_v31 }
 0x400   : > { %v2085_v35 = vmul.f32 %v3801_v19, %v4681_v16  ;;  %v3593_v17 = vunpack.i.h.bf16 %v3591_v58  ;;  %v3592_v3 = vunpack.i.l.bf16 %v3591_v58  ;;  %v3586_v28 = vpop.permute.xlu2 %3585 }
 0x401   : > { %v3588_v2 = vunpack.i.h.bf16 %v3586_v28  ;;  %v3587_v33 = vunpack.i.l.bf16 %v3586_v28  ;;  %v2453_v52 = vpack.c.b16 %v2452_v5, %v2451_v13  ;;  %v2476_v54 = vpack.c.b16 %v2475_v9, %v2474_v7 }
 0x402   : > { %v2117_v45 = vpack.c.bf16 %v2085_v35, %v2085_v35  ;;  %v1179_v1 = vpack.c.bf16 %v3593_v17, %v3593_v17  ;;  %v1178_v46 = vpack.c.bf16 %v3592_v3, %v3592_v3 }
 0x403   : > { %v1173_v63 = vpack.c.bf16 %v3588_v2, %v3588_v2  ;;  %v1172_v6 = vpack.c.bf16 %v3587_v33, %v3587_v33 }
 0x404   : > { %v2307_v57 = vunpack.c.l.b16 %v2117_v45  ;;  %v2424_v10 = vunpack.c.l.b16 %v1179_v1  ;;  %v2423_v16 = vunpack.c.l.b16 %v1178_v46 }
 0x405   : > { %v2340_v23 = vunpack.c.l.b16 %v1173_v63  ;;  %v2339_v51 = vunpack.c.l.b16 %v1172_v6 }
 0x406   : > { %v2308_v11 = vpack.c.b16 %v2307_v57, %v2306_v12  ;;  %v2425_v14 = vpack.c.b16 %v2424_v10, %v2423_v16 }
 0x407   : > { %v2341_v49 = vpack.c.b16 %v2340_v23, %v2339_v51  ;;  %3334 = vmatmul.msk.bf16.vlgmr.msra.gmra.mxu1 %vm1751_vm12, %v2392_v18 }
 0x408   : > { %3331 = vmatmul.msk.bf16.vlgmr.msra.gmra.mxu2 %vm1751_vm12, %v2308_v11 }
 0x409   : > { %2353 = vmatpush.bf16.msrb.mxu3 %v2341_v49  ;;  %2437 = vmatpush.bf16.msrb.mxu2 %v2425_v14 }
 0x40d   : > { %2465 = vmatpush.bf16.msra.mxu3 %v2453_v52 }
 0x40f   : > { %3337 = vmatmul.msk.bf16.vlgmr.msra.gmra.mxu0 %vm1751_vm12, %v2476_v54 }
 0x427   : > { %v1988_v41 = vpop.xlane.xlu0 %1987 }
 0x42a   : > { %v2024_v22 = vpop.xlane.xlu1 %2023 }
 0x42b   : > { %3802 = vrcp.f32 %v2024_v22 }
 0x42c   : > { %3804 = vrcp.f32 %v1988_v41 }
 0x42f   : > { %v2027_v39 = vpop.xlane.xlu0 %2026 }
 0x430   : > { %3806 = vrcp.f32 %v2027_v39 }
 0x431   : > { %v3803_v60 = vpop.eup %3802 }
 0x432   : > { %v1991_v29 = vpop.xlane.xlu1 %1990  ;;  %v3805_v62 = vpop.eup %3804  ;;  %v2098_v34 = vmul.f32 %v3803_v60, %v4700_v44 }
 0x433   : > { %3808 = vrcp.f32 %v1991_v29  ;;  %v2086_v53 = vmul.f32 %v3805_v62, %v4698_v30 }
 0x434   : > { %v2130_v4 = vpack.c.bf16 %v2098_v34, %v2098_v34 }
 0x435   : > { %v2118_v55 = vpack.c.bf16 %v2086_v53, %v2086_v53 }
 0x436   : > { %v3807_v56 = vpop.eup %3806  ;;  %v2502_v59 = vunpack.c.l.b16 %v2130_v4 }
 0x437   : > { %v2099_v32 = vmul.f32 %v3807_v56, %v4707_v40  ;;  %v2009_v50 = vpop.xlane.xlu0 %2008  ;;  %v2334_v17 = vunpack.c.l.b16 %v2118_v55 }
 0x438   : > { %3810 = vrcp.f32 %v2009_v50 }
 0x439   : > { %v3809_v26 = vpop.eup %3808  ;;  %v2131_v36 = vpack.c.bf16 %v2099_v32, %v2099_v32  ;;  %v2006_v19 = vpop.xlane.xlu2 %2005 }
 0x43a   : > { %v2087_v15 = vmul.f32 %v3809_v26, %v4710_v24  ;;  %3812 = vrcp.f32 %v2006_v19  ;;  %v2030_v1 = vpop.xlane.xlu1 %2029  ;;  %v4797_v32 = vpop.f32.mrf.mxu0 }
 0x43b   : > { %v2503_v58 = vunpack.c.l.b16 %v2131_v36 }
 0x43c   : > { %v2119_v35 = vpack.c.bf16 %v2087_v15, %v2087_v15 }
 0x43d   : > { %v2504_v44 = vpack.c.b16 %v2503_v58, %v2502_v59 }
 0x43e   : > { %v3811_v47 = vpop.eup %3810  ;;  %v2335_v3 = vunpack.c.l.b16 %v2119_v35 }
 0x43f   : > { %v2093_v30 = vmul.f32 %v3811_v47, %v4716_v38  ;;  %3338 = vmatmul.msk.bf16.vlgmr.msrb.gmra.mxu1 %vm1751_vm12, %v2504_v44 }
 0x440   : > { %v3813_v40 = vpop.eup %3812  ;;  %v2336_v28 = vpack.c.b16 %v2335_v3, %v2334_v17  ;;  %v2015_v21 = vpop.xlane.xlu0 %2014 }
 0x441   : > { %v2125_v8 = vpack.c.bf16 %v2093_v30, %v2093_v30  ;;  %v2092_v2 = vmul.f32 %v3813_v40, %v4720_v25  ;;  %3814 = vrcp.f32 %v2015_v21  ;;  %v2012_v24 = vpop.xlane.xlu2 %2011  ;;  %v4805_v3 = vpop.f32.mrf.mxu1 }
 0x442   : > { %3816 = vrcp.f32 %v2012_v24  ;;  %3332 = vmatmul.msk.bf16.vlgmr.msrb.gmra.mxu3 %vm1751_vm12, %v2336_v28  ;;  %v4802_v35 = vpop.f32.mrf.mxu0  ;;  %v4810_v21 = vpop.f32.mrf.mxu2 }
 0x443   : > { %v2419_v33 = vunpack.c.l.b16 %v2125_v8  ;;  %v2124_v43 = vpack.c.bf16 %v2092_v2, %v2092_v2  ;;  %3818 = vrcp.f32 %v2030_v1 }
 0x445   : > { %v2418_v45 = vunpack.c.l.b16 %v2124_v43 }
 0x447   : > { %v3815_v46 = vpop.eup %3814  ;;  %v2420_v12 = vpack.c.b16 %v2419_v33, %v2418_v45 }
 0x448   : > { %v3817_v38 = vpop.eup %3816  ;;  %v2095_v5 = vmul.f32 %v3815_v46, %v4735_v27 }
 0x449   : > { %v2094_v63 = vmul.f32 %v3817_v38, %v4733_v48  ;;  %3335 = vmatmul.msk.bf16.vlgmr.msrb.gmra.mxu2 %vm1751_vm12, %v2420_v12  ;;  %v2033_v25 = vpop.xlane.xlu2 %2032  ;;  %v3819_v16 = vpop.eup %3818 }
 0x44a   : > { %v2127_v6 = vpack.c.bf16 %v2095_v5, %v2095_v5  ;;  %3820 = vrcp.f32 %v2033_v25  ;;  %v2100_v11 = vmul.f32 %v3819_v16, %v4722_v42  ;;  %v4807_v40 = vpop.f32.mrf.mxu1  ;;  %v4812_v2 = vpop.f32.mrf.mxu2 }
 0x44b   : > { %v2126_v57 = vpack.c.bf16 %v2094_v63, %v2094_v63 }
 0x44c   : > { %v2447_v13 = vunpack.c.l.b16 %v2127_v6  ;;  %v2132_v22 = vpack.c.bf16 %v2100_v11, %v2100_v11 }
 0x44d   : > { %v2446_v10 = vunpack.c.l.b16 %v2126_v57 }
 0x44e   : > { %v2530_v50 = vunpack.c.l.b16 %v2132_v22 }
 0x44f   : > { %v2448_v18 = vpack.c.b16 %v2447_v13, %v2446_v10 }
 0x450   : > { %v3821_v31 = vpop.eup %3820 }
 0x451   : > { %v2101_v23 = vmul.f32 %v3821_v31, %v4743_v0  ;;  %v2036_v51 = vpop.xlane.xlu2 %2035 }
 0x452   : > { %v3606_v27 = vpop.permute.xlu1 %3605  ;;  %3336 = vmatmul.msk.bf16.vlgmr.msra.gmra.mxu3 %vm1751_vm12, %v2448_v18  ;;  %3822 = vrcp.f32 %v2036_v51  ;;  %v4819_v13 = vpop.f32.mrf.mxu3 }
 0x453   : > { %v3608_v48 = vunpack.i.h.bf16 %v3606_v27  ;;  %v3607_v14 = vunpack.i.l.bf16 %v3606_v27  ;;  %v3611_v49 = vpop.permute.xlu0 %3610  ;;  %v2133_v52 = vpack.c.bf16 %v2101_v23, %v2101_v23 }
 0x454   : > { %v3613_v7 = vunpack.i.h.bf16 %v3611_v49  ;;  %v3612_v9 = vunpack.i.l.bf16 %v3611_v49 }
 0x455   : > { %v1187_v54 = vpack.c.bf16 %v3608_v48, %v3608_v48  ;;  %v1186_v41 = vpack.c.bf16 %v3607_v14, %v3607_v14  ;;  %v2531_v62 = vunpack.c.l.b16 %v2133_v52 }
 0x456   : > { %v1189_v39 = vpack.c.bf16 %v3613_v7, %v3613_v7  ;;  %v1188_v60 = vpack.c.bf16 %v3612_v9, %v3612_v9 }
 0x457   : > { %v2536_v29 = vunpack.c.l.b16 %v1187_v54  ;;  %v2535_v0 = vunpack.c.l.b16 %v1186_v41  ;;  %v2532_v36 = vpack.c.b16 %v2531_v62, %v2530_v50  ;;  %v3406_v54 = vld [vmem:[%s5069_s9 + $0x8] sm:$0xff] }
 0x458   : > { %v2564_v34 = vunpack.c.l.b16 %v1189_v39  ;;  %v2563_v42 = vunpack.c.l.b16 %v1188_v60  ;;  %v3823_v4 = vpop.eup %3822  ;;  %2747 = vmatpush.bf16.msrb.mxu0 %v3406_v54  ;;  %v3405_v60 = vld [vmem:[%s5069_s9] sm:$0xff] }
 0x459   : > { %v2537_v56 = vpack.c.b16 %v2536_v29, %v2535_v0  ;;  %v2039_v53 = vpop.xlane.xlu2 %2038  ;;  %v2102_v19 = vmul.f32 %v3823_v4, %v4750_v61 }
 0x45a   : > { %v2565_v26 = vpack.c.b16 %v2564_v34, %v2563_v42  ;;  %3824 = vrcp.f32 %v2039_v53  ;;  %v4821_v16 = vpop.f32.mrf.mxu3 }
 0x45b   : > { %2549 = vmatpush.bf16.msra.mxu2 %v2537_v56  ;;  %v2134_v15 = vpack.c.bf16 %v2102_v19, %v2102_v19 }
 0x45c   : > { %2577 = vmatpush.bf16.msrb.mxu3 %v2565_v26  ;;  %2748 = vmatpush.bf16.msrb.mxu0 %v3405_v60 }
 0x45d   : > { %v2558_v44 = vunpack.c.l.b16 %v2134_v15 }
 0x45e   : > { %3339 = vmatmul.msk.bf16.vlgmr.msra.gmra.mxu2 %vm1751_vm12, %v2532_v36 }
 0x460   : > { %v3825_v55 = vpop.eup %3824 }
 0x461   : > { %v2103_v59 = vmul.f32 %v3825_v55, %v4758_v37 }
 0x463   : > { %v2135_v58 = vpack.c.bf16 %v2103_v59, %v2103_v59 }
 0x465   : > { %v2559_v47 = vunpack.c.l.b16 %v2135_v58 }
 0x467   : > { %v2560_v17 = vpack.c.b16 %v2559_v47, %v2558_v44 }
 0x469   : > { %3340 = vmatmul.msk.bf16.vlgmr.msrb.gmra.mxu3 %vm1751_vm12, %v2560_v17 }
 0x46c   : > { %v2271_v30 = vpop.f32.mrf.mxu0 }
 0x474   : > { %v2273_v61 = vpop.f32.mrf.mxu0  ;;  %v2299_v37 = vpop.f32.mrf.mxu1 }
 0x475   : > { %v3614_v28 = vpack.i.bf16 %v2273_v61, %v2271_v30 }
 0x477   : > { %3615 = vrot.lane.b32.xlu2 %v3614_v28, %s3878_s17 }
 0x47c   : > { %v2383_v8 = vpop.f32.mrf.mxu0  ;;  %v2301_v43 = vpop.f32.mrf.mxu1 }
 0x47d   : > { %v3629_v46 = vpack.i.bf16 %v2301_v43, %v2299_v37 }
 0x484   : > { %v2385_v24 = vpop.f32.mrf.mxu0  ;;  %v2411_v12 = vpop.f32.mrf.mxu1 }
 0x485   : > { %v3619_v33 = vpack.i.bf16 %v2385_v24, %v2383_v8 }
 0x487   : > { %3620 = vrot.lane.b32.xlu0 %v3619_v33, %s3879_s19 }
 0x48b   : > { %v2327_v45 = vpop.f32.mrf.mxu2 }
 0x48c   : > { %v2495_v1 = vpop.f32.mrf.mxu0  ;;  %v2413_v6 = vpop.f32.mrf.mxu1 }
 0x48d   : > { %v3634_v57 = vpack.i.bf16 %v2413_v6, %v2411_v12 }
 0x48f   : > { %3630 = vrot.lane.b32.xlu0 %v3629_v46, %s3878_s17 }
 0x493   : > { %v2329_v38 = vpop.f32.mrf.mxu2 }
 0x494   : > { %v3644_v5 = vpack.i.bf16 %v2329_v38, %v2327_v45  ;;  %v2497_v63 = vpop.f32.mrf.mxu0 }
 0x495   : > { %v3624_v25 = vpack.i.bf16 %v2497_v63, %v2495_v1 }
 0x496   : > { %3645 = vrot.lane.b32.xlu2 %v3644_v5, %s3878_s17 }
 0x497   : > { %3625 = vrot.lane.b32.xlu1 %v3624_v25, %s3880_s22 }
 0x49f   : > { %3635 = vrot.lane.b32.xlu1 %v3634_v57, %s3879_s19 }
 0x4bc   : > { %v2523_v10 = vpop.f32.mrf.mxu1 }
 0x4c4   : > { %v2525_v31 = vpop.f32.mrf.mxu1 }
 0x4c5   : > { %v3639_v18 = vpack.i.bf16 %v2525_v31, %v2523_v10  ;;  %v2355_v23 = vpop.f32.mrf.mxu3 }
 0x4c7   : > { %3640 = vrot.lane.b32.xlu0 %v3639_v18, %s3880_s22 }
 0x4cc   : > { %v2439_v51 = vpop.f32.mrf.mxu2 }
 0x4cd   : > { %v2357_v11 = vpop.f32.mrf.mxu3 }
 0x4ce   : > { %v3659_v27 = vpack.i.bf16 %v2357_v11, %v2355_v23 }
 0x4d0   : > { %3660 = vrot.lane.b32.xlu2 %v3659_v27, %s3878_s17 }
 0x4d1   : > { %v3616_v62 = vpop.permute.xlu2 %3615 }
 0x4d2   : > { %v3618_v42 = vunpack.i.h.bf16 %v3616_v62  ;;  %v3617_v56 = vunpack.i.l.bf16 %v3616_v62 }
 0x4d4   : > { %v2441_v48 = vpop.f32.mrf.mxu2  ;;  %v2681_v26 = vsel %vm1200_vm11, %v4802_v35, %v3618_v42  ;;  %v2680_v36 = vsel %vm1200_vm11, %v4797_v32, %v3617_v56 }
 0x4d5   : > { %v3649_v14 = vpack.i.bf16 %v2441_v48, %v2439_v51  ;;  %v2467_v49 = vpop.f32.mrf.mxu3 }
 0x4d7   : > { %3650 = vrot.lane.b32.xlu1 %v3649_v14, %s3879_s19 }
 0x4dd   : > { %v2469_v52 = vpop.f32.mrf.mxu3 }
 0x4de   : > { %v3664_v7 = vpack.i.bf16 %v2469_v52, %v2467_v49 }
 0x4e0   : > { %3665 = vrot.lane.b32.xlu1 %v3664_v7, %s3879_s19 }
 0x4e1   : > { %v2551_v9 = vpop.f32.mrf.mxu2 }
 0x4e9   : > { %v2553_v41 = vpop.f32.mrf.mxu2 }
 0x4ea   : > { %v3654_v22 = vpack.i.bf16 %v2553_v41, %v2551_v9 }
 0x4ec   : > { %v2579_v39 = vpop.f32.mrf.mxu3  ;;  %3655 = vrot.lane.b32.xlu0 %v3654_v22, %s3880_s22 }
 0x4f0   : > { %v3646_v5 = vpop.permute.xlu2 %3645 }
 0x4f1   : > { %v3648_v25 = vunpack.i.h.bf16 %v3646_v5 }
 0x4f3   : > { %v2685_v10 = vsel %vm1200_vm11, %v4812_v2, %v3648_v25  ;;  %v3864_v25 = vld [vmem:[%s3977_s24 + $0x30] sm:$0xff] }
 0x4f4   : > { %v2581_v29 = vpop.f32.mrf.mxu3 }
 0x4f5   : > { %v3669_v0 = vpack.i.bf16 %v2581_v29, %v2579_v39 }
 0x4f7   : > { %3670 = vrot.lane.b32.xlu0 %v3669_v0, %s3880_s22 }
 0x4f9   : > { %v3621_v34 = vpop.permute.xlu0 %3620 }
 0x4fa   : > { %v3623_v53 = vunpack.i.h.bf16 %v3621_v34  ;;  %v3622_v4 = vunpack.i.l.bf16 %v3621_v34 }
 0x4fc   : > { %v2688_v15 = vsel %vm1751_vm12, %v2680_v36, %v3622_v4  ;;  %v2689_v59 = vsel %vm1751_vm12, %v2681_v26, %v3623_v53 }
 0x501   : > { %v3631_v17 = vpop.permute.xlu0 %3630 }
 0x502   : > { %v3633_v61 = vunpack.i.h.bf16 %v3631_v17  ;;  %v3632_v35 = vunpack.i.l.bf16 %v3631_v17 }
 0x504   : > { %v2683_v8 = vsel %vm1200_vm11, %v4807_v40, %v3633_v61  ;;  %v2682_v24 = vsel %vm1200_vm11, %v4805_v3, %v3632_v35  ;;  %v3647_v40 = vunpack.i.l.bf16 %v3646_v5  ;;  %v3861_v35 = vld [vmem:[%s3977_s24 + $0x18] sm:$0xff] }
 0x506   : > { %v2684_v31 = vsel %vm1200_vm11, %v4810_v21, %v3647_v40 }
 0x509   : > { %v3626_v50 = vpop.permute.xlu1 %3625 }
 0x50a   : > { %v3628_v19 = vunpack.i.h.bf16 %v3626_v50  ;;  %v3627_v55 = vunpack.i.l.bf16 %v3626_v50 }
 0x50c   : > { %v2697_v58 = vsel %vm2696_vm13, %v2688_v15, %v3627_v55  ;;  %v2698_v44 = vsel %vm2696_vm13, %v2689_v59, %v3628_v19  ;;  %v3859_v19 = vld [vmem:[%s3977_s24 + $0x8] sm:$0xff] }
 0x50d   : > { %v2705_v47 = vpack.c.bf16 %v2698_v44, %v2697_v58  ;;  %v3860_v44 = vld [vmem:[%s3977_s24 + $0x10] sm:$0xff] }
 0x50f   : > { %3349 = vmatmul.msk.bf16.vlgmr.msrb.gmra.mxu0 %vm507_vm0, %v2705_v47 }
 0x511   : > { %v3636_v30 = vpop.permute.xlu1 %3635 }
 0x512   : > { %v3638_v28 = vunpack.i.h.bf16 %v3636_v30  ;;  %v3637_v37 = vunpack.i.l.bf16 %v3636_v30 }
 0x514   : > { %v2691_v45 = vsel %vm1751_vm12, %v2683_v8, %v3638_v28  ;;  %v2690_v1 = vsel %vm1751_vm12, %v2682_v24, %v3637_v37  ;;  %v3862_v24 = vld [vmem:[%s3977_s24 + $0x20] sm:$0xff] }
 0x52a   : > { %v3661_v49 = vpop.permute.xlu2 %3660 }
 0x52b   : > { %v3663_v7 = vunpack.i.h.bf16 %v3661_v49  ;;  %v3662_v2 = vunpack.i.l.bf16 %v3661_v49 }
 0x52d   : > { %v2687_v39 = vsel %vm1200_vm11, %v4821_v16, %v3663_v7  ;;  %v2686_v60 = vsel %vm1200_vm11, %v4819_v13, %v3662_v2  ;;  %v3677_v16 = vld [vmem:[%s5070_s10] ss:$0 sm:$0xff] }
 0x52e   : > { %v3858_v13 = vld [vmem:[%s3977_s24] sm:$0xff] }
 0x539   : > { %v3641_v32 = vpop.permute.xlu0 %3640 }
 0x53a   : > { %v3643_v33 = vunpack.i.h.bf16 %v3641_v32  ;;  %v3642_v43 = vunpack.i.l.bf16 %v3641_v32 }
 0x53c   : > { %v2699_v46 = vsel %vm2696_vm13, %v2690_v1, %v3642_v43  ;;  %v2700_v12 = vsel %vm2696_vm13, %v2691_v45, %v3643_v33 }
 0x53d   : > { %v2706_v38 = vpack.c.bf16 %v2700_v12, %v2699_v46  ;;  %v3863_v46 = vld [vmem:[%s3977_s24 + $0x28] sm:$0xff] }
 0x53f   : > { %3350 = vmatmul.msk.bf16.gmra.mxu0 %vm507_vm0, %v2706_v38 }
 0x549   : > { %v3651_v63 = vpop.permute.xlu1 %3650 }
 0x54a   : > { %v3653_v6 = vunpack.i.h.bf16 %v3651_v63  ;;  %v3652_v57 = vunpack.i.l.bf16 %v3651_v63 }
 0x54c   : > { %v2693_v51 = vsel %vm1751_vm12, %v2685_v10, %v3653_v6  ;;  %v2692_v11 = vsel %vm1751_vm12, %v2684_v31, %v3652_v57 }
 0x552   : > { %v3666_v52 = vpop.permute.xlu1 %3665 }
 0x553   : > { %v3668_v21 = vunpack.i.h.bf16 %v3666_v52  ;;  %v3667_v54 = vunpack.i.l.bf16 %v3666_v52 }
 0x555   : > { %v2695_v29 = vsel %vm1751_vm12, %v2687_v39, %v3668_v21  ;;  %v2694_v0 = vsel %vm1751_vm12, %v2686_v60, %v3667_v54 }
 0x55e   : > { %v3656_v3 = vpop.permute.xlu0 %3655 }
 0x55f   : > { %v3658_v18 = vunpack.i.h.bf16 %v3656_v3  ;;  %v3657_v23 = vunpack.i.l.bf16 %v3656_v3 }
 0x561   : > { %v2702_v27 = vsel %vm2696_vm13, %v2693_v51, %v3658_v18  ;;  %v2701_v48 = vsel %vm2696_vm13, %v2692_v11, %v3657_v23 }
 0x562   : > { %v2707_v14 = vpack.c.bf16 %v2702_v27, %v2701_v48  ;;  %v3865_v48 = vld [vmem:[%s3977_s24 + $0x38] sm:$0xff] }
 0x564   : > { %3351 = vmatmul.msk.bf16.gmra.mxu0 %vm507_vm0, %v2707_v14 }
 0x569   : > { %v3671_v9 = vpop.permute.xlu0 %3670 }
 0x56a   : > { %v3673_v41 = vunpack.i.h.bf16 %v3671_v9  ;;  %v3672_v22 = vunpack.i.l.bf16 %v3671_v9 }
 0x56c   : > { %v2704_v62 = vsel %vm2696_vm13, %v2695_v29, %v3673_v41  ;;  %v2703_v34 = vsel %vm2696_vm13, %v2694_v0, %v3672_v22 }
 0x56d   : > { %v2708_v42 = vpack.c.bf16 %v2704_v62, %v2703_v34 }
 0x574   : > { %3352 = vmatmul.msk.bf16.gmra.mxu0 %vm507_vm0, %v2708_v42 }
 0x58c   : > { %v2750_v56 = vpop.f32.mrf.mxu0 }
 0x58d   : > { %v2751_v53 = vadd.f32 %v3677_v16, %v2750_v56 }
 0x58f   : > { %v4875_v4 = vadd.f32 %v3858_v13, %v2751_v53 }
 0x591   : > { %v2778_v50 = vsel %vm507_vm0, %v4875_v4, 0.0 }
 0x592   : > { %2779 = vadd.xlane.f32.xlu2 %v2778_v50 }
 0x594   : > { %v2752_v26 = vpop.f32.mrf.mxu0 }
 0x595   : > { %v2753_v36 = vadd.f32 %v3677_v16, %v2752_v26 }
 0x597   : > { %v4880_v55 = vadd.f32 %v3859_v19, %v2753_v36 }
 0x599   : > { %v2781_v15 = vsel %vm507_vm0, %v4880_v55, 0.0 }
 0x59a   : > { %2782 = vadd.xlane.f32.xlu1 %v2781_v15 }
 0x5bc   : > { %v2755_v59 = vpop.f32.mrf.mxu0 }
 0x5bd   : > { %v2756_v58 = vadd.f32 %v3677_v16, %v2755_v59 }
 0x5bf   : > { %v4885_v47 = vadd.f32 %v3860_v44, %v2756_v58 }
 0x5c1   : > { %v2784_v17 = vsel %vm507_vm0, %v4885_v47, 0.0 }
 0x5c2   : > { %2785 = vadd.xlane.f32.xlu0 %v2784_v17 }
 0x5c4   : > { %v2757_v30 = vpop.f32.mrf.mxu0 }
 0x5c5   : > { %v2758_v61 = vadd.f32 %v3677_v16, %v2757_v30 }
 0x5c7   : > { %v4890_v28 = vadd.f32 %v3861_v35, %v2758_v61  ;;  %v3408_v61 = vld [vmem:[%s5071_s11 + $0x8] sm:$0xff] }
 0x5c8   : > { %2996 = vmatpush.bf16.msra.mxu1 %v3408_v61 }
 0x5c9   : > { %v2787_v37 = vsel %vm507_vm0, %v4890_v28, 0.0 }
 0x5ca   : > { %2788 = vadd.xlane.f32.xlu2 %v2787_v37  ;;  %v3407_v37 = vld [vmem:[%s5071_s11] sm:$0xff] }
 0x5cc   : > { %2997 = vmatpush.bf16.msra.mxu1 %v3407_v37 }
 0x5e1   : > { %v2760_v32 = vpop.f32.mrf.mxu0 }
 0x5e2   : > { %v2761_v8 = vadd.f32 %v3677_v16, %v2760_v32 }
 0x5e4   : > { %v4895_v33 = vadd.f32 %v3862_v24, %v2761_v8 }
 0x5e6   : > { %v2790_v43 = vsel %vm507_vm0, %v4895_v33, 0.0 }
 0x5e7   : > { %2791 = vadd.xlane.f32.xlu1 %v2790_v43 }
 0x5e9   : > { %v2762_v45 = vpop.f32.mrf.mxu0 }
 0x5ea   : > { %v2763_v1 = vadd.f32 %v3677_v16, %v2762_v45 }
 0x5ec   : > { %v4900_v12 = vadd.f32 %v3863_v46, %v2763_v1 }
 0x5ee   : > { %v2793_v38 = vsel %vm507_vm0, %v4900_v12, 0.0 }
 0x5ef   : > { %2794 = vadd.xlane.f32.xlu2 %v2793_v38 }
 0x5f1   : > { %v2765_v5 = vpop.f32.mrf.mxu0 }
 0x5f2   : > { %v2766_v63 = vadd.f32 %v3677_v16, %v2765_v5 }
 0x5f4   : > { %v4905_v40 = vadd.f32 %v3864_v25, %v2766_v63 }
 0x5f6   : > { %v2796_v6 = vsel %vm507_vm0, %v4905_v40, 0.0 }
 0x5f7   : > { %2797 = vadd.xlane.f32.xlu2 %v2796_v6 }
 0x5f9   : > { %v2767_v31 = vpop.f32.mrf.mxu0 }
 0x5fa   : > { %v2768_v23 = vadd.f32 %v3677_v16, %v2767_v31 }
 0x5fc   : > { %v4918_v14 = vadd.f32 %v3865_v48, %v2768_v23 }
 0x5fe   : > { %v2799_v2 = vsel %vm507_vm0, %v4918_v14, 0.0 }
 0x605   : > { %v2780_v57 = vpop.xlane.xlu2 %2779 }
 0x606   : > { %v2802_v3 = vmul.f32 %v2780_v57, %v3993_v20 }
 0x608   : > { %v4911_v10 = vsub.f32 %v4875_v4, %v2802_v3 }
 0x60a   : > { %v2818_v18 = vmul.f32 %v4911_v10, %v4911_v10 }
 0x60c   : > { %v2826_v51 = vsel %vm507_vm0, %v2818_v18, 0.0 }
 0x60d   : > { %v2783_v11 = vpop.xlane.xlu1 %2782  ;;  %2827 = vadd.xlane.f32.xlu0 %v2826_v51 }
 0x60e   : > { %v2803_v27 = vmul.f32 %v2783_v11, %v3993_v20 }
 0x610   : > { %v4921_v49 = vsub.f32 %v4880_v55, %v2803_v27 }
 0x612   : > { %v2819_v52 = vmul.f32 %v4921_v49, %v4921_v49 }
 0x614   : > { %v2829_v7 = vsel %vm507_vm0, %v2819_v52, 0.0 }
 0x615   : > { %2830 = vadd.xlane.f32.xlu1 %v2829_v7  ;;  %2800 = vadd.xlane.f32.xlu0 %v2799_v2 }
 0x635   : > { %v2786_v9 = vpop.xlane.xlu0 %2785 }
 0x636   : > { %v2804_v21 = vmul.f32 %v2786_v9, %v3993_v20 }
 0x638   : > { %v4930_v54 = vsub.f32 %v4885_v47, %v2804_v21 }
 0x63a   : > { %v2820_v41 = vmul.f32 %v4930_v54, %v4930_v54 }
 0x63c   : > { %v2832_v22 = vsel %vm507_vm0, %v2820_v41, 0.0 }
 0x63d   : > { %v2789_v39 = vpop.xlane.xlu2 %2788  ;;  %2833 = vadd.xlane.f32.xlu1 %v2832_v22 }
 0x63e   : > { %v2805_v60 = vmul.f32 %v2789_v39, %v3993_v20 }
 0x640   : > { %v4937_v29 = vsub.f32 %v4890_v28, %v2805_v60 }
 0x642   : > { %v2821_v0 = vmul.f32 %v4937_v29, %v4937_v29 }
 0x644   : > { %v2835_v62 = vsel %vm507_vm0, %v2821_v0, 0.0 }
 0x645   : > { %2836 = vadd.xlane.f32.xlu2 %v2835_v62 }
 0x65a   : > { %v2792_v34 = vpop.xlane.xlu1 %2791 }
 0x65b   : > { %v2806_v42 = vmul.f32 %v2792_v34, %v3993_v20 }
 0x65d   : > { %v4944_v16 = vsub.f32 %v4895_v33, %v2806_v42 }
 0x65f   : > { %v2822_v56 = vmul.f32 %v4944_v16, %v4944_v16 }
 0x661   : > { %v2838_v53 = vsel %vm507_vm0, %v2822_v56, 0.0 }
 0x662   : > { %v2795_v13 = vpop.xlane.xlu2 %2794  ;;  %2839 = vadd.xlane.f32.xlu0 %v2838_v53 }
 0x663   : > { %v2807_v50 = vmul.f32 %v2795_v13, %v3993_v20 }
 0x665   : > { %v4951_v26 = vsub.f32 %v4900_v12, %v2807_v50 }
 0x667   : > { %v2823_v36 = vmul.f32 %v4951_v26, %v4951_v26 }
 0x669   : > { %v2841_v19 = vsel %vm507_vm0, %v2823_v36, 0.0 }
 0x66a   : > { %v2798_v15 = vpop.xlane.xlu2 %2797  ;;  %2842 = vadd.xlane.f32.xlu1 %v2841_v19 }
 0x66b   : > { %v2808_v59 = vmul.f32 %v2798_v15, %v3993_v20 }
 0x66d   : > { %v4958_v58 = vsub.f32 %v4905_v40, %v2808_v59 }
 0x66f   : > { %v2824_v44 = vmul.f32 %v4958_v58, %v4958_v58 }
 0x671   : > { %v2844_v17 = vsel %vm507_vm0, %v2824_v44, 0.0 }
 0x672   : > { %2845 = vadd.xlane.f32.xlu2 %v2844_v17 }
 0x680   : > { %v2828_v30 = vpop.xlane.xlu0 %2827 }
 0x681   : > { %v2850_v35 = vmul.f32 %v2828_v30, %v3993_v20 }
 0x683   : > { %v2858_v32 = vadd.f32 1e-05, %v2850_v35 }
 0x685   : > { %3826 = vrsqrt.f32 %v2858_v32  ;;  %vm2872_vm15 = vweird.f32 %v2858_v32 }
 0x688   : > { %v2831_v8 = vpop.xlane.xlu1 %2830  ;;  %v2801_v24 = vpop.xlane.xlu0 %2800 }
 0x689   : > { %v2851_v43 = vmul.f32 %v2831_v8, %v3993_v20  ;;  %v2809_v45 = vmul.f32 %v2801_v24, %v3993_v20 }
 0x68b   : > { %v3827_v1 = vpop.eup %3826  ;;  %v2859_v46 = vadd.f32 1e-05, %v2851_v43  ;;  %v4973_v38 = vsub.f32 %v4918_v14, %v2809_v45 }
 0x68c   : > { %v2867_v5 = vmul.f32 %v3827_v1, %v2858_v32  ;;  %vm2873_vm14 = vweird.f32 %v3827_v1 }
 0x68d   : > { %3828 = vrsqrt.f32 %v2859_v46  ;;  %v2825_v63 = vmul.f32 %v4973_v38, %v4973_v38  ;;  %vm2874_vm2 = vmor %vm2872_vm15, %vm2873_vm14  ;;  %vm2882_vm3 = vweird.f32 %v2859_v46 }
 0x68e   : > { %v2868_v25 = vmul.f32 %v3827_v1, %v2867_v5 }
 0x68f   : > { %v2847_v6 = vsel %vm507_vm0, %v2825_v63, 0.0 }
 0x690   : > { %v2869_v57 = vmul.f32 0.5, %v2868_v25  ;;  %2848 = vadd.xlane.f32.xlu0 %v2847_v6 }
 0x692   : > { %v2870_v31 = vsub.f32 1.5, %v2869_v57 }
 0x693   : > { %v3829_v3 = vpop.eup %3828 }
 0x694   : > { %v2877_v18 = vmul.f32 %v3829_v3, %v2859_v46  ;;  %v2871_v51 = vmul.f32 %v3827_v1, %v2870_v31  ;;  %vm2883_vm1 = vweird.f32 %v3829_v3 }
 0x695   : > { %vm2884_vm4 = vmor %vm2882_vm3, %vm2883_vm1 }
 0x696   : > { %v2878_v23 = vmul.f32 %v3829_v3, %v2877_v18  ;;  %v2875_v48 = vsel %vm2874_vm2, %v3827_v1, %v2871_v51 }
 0x697   : > { %v2946_v2 = vmul.f32 %v2875_v48, %v4911_v10 }
 0x698   : > { %v2879_v11 = vmul.f32 0.5, %v2878_v23 }
 0x69a   : > { %v2880_v27 = vsub.f32 1.5, %v2879_v11 }
 0x69c   : > { %v2881_v52 = vmul.f32 %v3829_v3, %v2880_v27 }
 0x69e   : > { %v2885_v7 = vsel %vm2884_vm4, %v3829_v3, %v2881_v52 }
 0x69f   : > { %v2947_v9 = vmul.f32 %v2885_v7, %v4921_v49 }
 0x6a1   : > { %v2954_v21 = vpack.c.bf16 %v2947_v9, %v2946_v2 }
 0x6a3   : > { %3361 = vmatmul.msk.bf16.vlgmr.msra.gmra.mxu1 %vm507_vm0, %v2954_v21 }
 0x6b0   : > { %v2834_v41 = vpop.xlane.xlu1 %2833 }
 0x6b1   : > { %v2852_v22 = vmul.f32 %v2834_v41, %v3993_v20 }
 0x6b3   : > { %v2860_v39 = vadd.f32 1e-05, %v2852_v22 }
 0x6b5   : > { %3830 = vrsqrt.f32 %v2860_v39  ;;  %vm2892_vm6 = vweird.f32 %v2860_v39 }
 0x6b8   : > { %v2837_v60 = vpop.xlane.xlu2 %2836 }
 0x6b9   : > { %v2853_v0 = vmul.f32 %v2837_v60, %v3993_v20 }
 0x6bb   : > { %v3831_v62 = vpop.eup %3830  ;;  %v2861_v34 = vadd.f32 1e-05, %v2853_v0  ;;  %v3416_v0 = vld [vmem:[%s5073_s13 + $0x38] sm:$0xff] }
 0x6bc   : > { %v2887_v42 = vmul.f32 %v3831_v62, %v2860_v39  ;;  %vm2893_vm5 = vweird.f32 %v3831_v62  ;;  %3163 = vmatpush.bf16.msrb.mxu2 %v3416_v0 }
 0x6bd   : > { %3832 = vrsqrt.f32 %v2861_v34  ;;  %vm2894_vm8 = vmor %vm2892_vm6, %vm2893_vm5  ;;  %vm2902_vm9 = vweird.f32 %v2861_v34 }
 0x6be   : > { %v2888_v56 = vmul.f32 %v3831_v62, %v2887_v42 }
 0x6c0   : > { %v2889_v53 = vmul.f32 0.5, %v2888_v56 }
 0x6c2   : > { %v2890_v13 = vsub.f32 1.5, %v2889_v53 }
 0x6c3   : > { %v3833_v10 = vpop.eup %3832 }
 0x6c4   : > { %v2897_v49 = vmul.f32 %v3833_v10, %v2861_v34  ;;  %v2891_v36 = vmul.f32 %v3831_v62, %v2890_v13  ;;  %vm2903_vm7 = vweird.f32 %v3833_v10  ;;  %v3413_v13 = vld [vmem:[%s5073_s13 + $0x20] sm:$0xff] }
 0x6c5   : > { %vm2904_vm10 = vmor %vm2902_vm9, %vm2903_vm7 }
 0x6c6   : > { %v2898_v50 = vmul.f32 %v3833_v10, %v2897_v49  ;;  %v2895_v59 = vsel %vm2894_vm8, %v3831_v62, %v2891_v36 }
 0x6c7   : > { %v2948_v30 = vmul.f32 %v2895_v59, %v4930_v54 }
 0x6c8   : > { %v2899_v19 = vmul.f32 0.5, %v2898_v50 }
 0x6ca   : > { %v2900_v15 = vsub.f32 1.5, %v2899_v19  ;;  %v3412_v19 = vld [vmem:[%s5073_s13 + $0x18] sm:$0xff] }
 0x6cc   : > { %v2901_v44 = vmul.f32 %v3833_v10, %v2900_v15 }
 0x6ce   : > { %v2905_v17 = vsel %vm2904_vm10, %v3833_v10, %v2901_v44 }
 0x6cf   : > { %v2949_v61 = vmul.f32 %v2905_v17, %v4937_v29  ;;  %v3411_v17 = vld [vmem:[%s5073_s13 + $0x10] sm:$0xff] }
 0x6d1   : > { %v2955_v35 = vpack.c.bf16 %v2949_v61, %v2948_v30  ;;  %v5016_v61 = vld [vmem:[%s5072_s12] ss:$0 sm:$0xff] }
 0x6d3   : > { %3362 = vmatmul.msk.bf16.gmra.mxu1 %vm507_vm0, %v2955_v35  ;;  %v3410_v35 = vld [vmem:[%s5073_s13 + $0x8] sm:$0xff] }
 0x6d5   : > { %v2840_v37 = vpop.xlane.xlu0 %2839 }
 0x6d6   : > { %v2854_v32 = vmul.f32 %v2840_v37, %v3993_v20  ;;  %v3409_v37 = vld [vmem:[%s5073_s13] sm:$0xff] }
 0x6d8   : > { %v2862_v8 = vadd.f32 1e-05, %v2854_v32 }
 0x6da   : > { %3834 = vrsqrt.f32 %v2862_v8  ;;  %vm2912_vm12 = vweird.f32 %v2862_v8 }
 0x6dd   : > { %v2843_v24 = vpop.xlane.xlu1 %2842 }
 0x6de   : > { %v2855_v43 = vmul.f32 %v2843_v24, %v3993_v20 }
 0x6e0   : > { %v3835_v45 = vpop.eup %3834  ;;  %v2863_v1 = vadd.f32 1e-05, %v2855_v43 }
 0x6e1   : > { %v2907_v46 = vmul.f32 %v3835_v45, %v2862_v8  ;;  %vm2913_vm11 = vweird.f32 %v3835_v45 }
 0x6e2   : > { %3836 = vrsqrt.f32 %v2863_v1  ;;  %vm2914_vm14 = vmor %vm2912_vm12, %vm2913_vm11  ;;  %vm2922_vm15 = vweird.f32 %v2863_v1 }
 0x6e3   : > { %v2908_v5 = vmul.f32 %v3835_v45, %v2907_v46 }
 0x6e5   : > { %v2909_v63 = vmul.f32 0.5, %v2908_v5  ;;  %v2846_v18 = vpop.xlane.xlu2 %2845 }
 0x6e6   : > { %v2856_v11 = vmul.f32 %v2846_v18, %v3993_v20 }
 0x6e7   : > { %v2910_v25 = vsub.f32 1.5, %v2909_v63 }
 0x6e8   : > { %v3837_v54 = vpop.eup %3836  ;;  %v2864_v7 = vadd.f32 1e-05, %v2856_v11 }
 0x6e9   : > { %v2917_v29 = vmul.f32 %v3837_v54, %v2863_v1  ;;  %v2911_v57 = vmul.f32 %v3835_v45, %v2910_v25  ;;  %vm2923_vm13 = vweird.f32 %v3837_v54 }
 0x6ea   : > { %vm2924_vm1 = vmor %vm2922_vm15, %vm2923_vm13  ;;  %3838 = vrsqrt.f32 %v2864_v7  ;;  %vm2932_vm3 = vweird.f32 %v2864_v7 }
 0x6eb   : > { %v2918_v6 = vmul.f32 %v3837_v54, %v2917_v29  ;;  %v2915_v23 = vsel %vm2914_vm14, %v3835_v45, %v2911_v57 }
 0x6ec   : > { %v2950_v48 = vmul.f32 %v2915_v23, %v4944_v16 }
 0x6ed   : > { %v2919_v3 = vmul.f32 0.5, %v2918_v6 }
 0x6ef   : > { %v2920_v31 = vsub.f32 1.5, %v2919_v3 }
 0x6f0   : > { %v3839_v9 = vpop.eup %3838 }
 0x6f1   : > { %v2921_v51 = vmul.f32 %v3837_v54, %v2920_v31  ;;  %v2927_v21 = vmul.f32 %v3839_v9, %v2864_v7  ;;  %vm2933_vm2 = vweird.f32 %v3839_v9 }
 0x6f2   : > { %vm2934_vm5 = vmor %vm2932_vm3, %vm2933_vm2 }
 0x6f3   : > { %v2925_v27 = vsel %vm2924_vm1, %v3837_v54, %v2921_v51  ;;  %v2928_v60 = vmul.f32 %v3839_v9, %v2927_v21 }
 0x6f4   : > { %v2951_v52 = vmul.f32 %v2925_v27, %v4951_v26  ;;  %v3415_v26 = vld [vmem:[%s5073_s13 + $0x30] sm:$0xff] }
 0x6f5   : > { %v2929_v16 = vmul.f32 0.5, %v2928_v60  ;;  %3164 = vmatpush.bf16.msrb.mxu2 %v3415_v26 }
 0x6f6   : > { %v2956_v2 = vpack.c.bf16 %v2951_v52, %v2950_v48 }
 0x6f7   : > { %v2930_v34 = vsub.f32 1.5, %v2929_v16 }
 0x6f8   : > { %3363 = vmatmul.msk.bf16.gmra.mxu1 %vm507_vm0, %v2956_v2 }
 0x6f9   : > { %v2931_v53 = vmul.f32 %v3839_v9, %v2930_v34 }
 0x6fb   : > { %v2935_v50 = vsel %vm2934_vm5, %v3839_v9, %v2931_v53 }
 0x6fc   : > { %v2952_v59 = vmul.f32 %v2935_v50, %v4958_v58 }
 0x703   : > { %v2849_v41 = vpop.xlane.xlu0 %2848 }
 0x704   : > { %v2857_v22 = vmul.f32 %v2849_v41, %v3993_v20  ;;  %v3414_v20 = vld [vmem:[%s5073_s13 + $0x28] sm:$0xff] }
 0x705   : > { %3165 = vmatpush.bf16.msrb.mxu2 %v3414_v20 }
 0x706   : > { %v2865_v39 = vadd.f32 1e-05, %v2857_v22 }
 0x708   : > { %3840 = vrsqrt.f32 %v2865_v39  ;;  %vm2942_vm6 = vweird.f32 %v2865_v39 }
 0x709   : > { %3166 = vmatpush.bf16.msrb.mxu2 %v3413_v13 }
 0x70d   : > { %3167 = vmatpush.bf16.msrb.mxu2 %v3412_v19 }
 0x70e   : > { %v3841_v62 = vpop.eup %3840 }
 0x70f   : > { %v2937_v42 = vmul.f32 %v3841_v62, %v2865_v39  ;;  %vm2943_vm4 = vweird.f32 %v3841_v62 }
 0x710   : > { %vm2944_vm7 = vmor %vm2942_vm6, %vm2943_vm4 }
 0x711   : > { %v2938_v56 = vmul.f32 %v3841_v62, %v2937_v42  ;;  %3168 = vmatpush.bf16.msrb.mxu2 %v3411_v17 }
 0x713   : > { %v2939_v10 = vmul.f32 0.5, %v2938_v56 }
 0x715   : > { %v2940_v49 = vsub.f32 1.5, %v2939_v10  ;;  %3169 = vmatpush.bf16.msrb.mxu2 %v3410_v35 }
 0x717   : > { %v2941_v36 = vmul.f32 %v3841_v62, %v2940_v49 }
 0x719   : > { %v2945_v15 = vsel %vm2944_vm7, %v3841_v62, %v2941_v36  ;;  %3170 = vmatpush.bf16.msrb.mxu2 %v3409_v37 }
 0x71a   : > { %v2953_v44 = vmul.f32 %v2945_v15, %v4973_v38 }
 0x71c   : > { %v2957_v30 = vpack.c.bf16 %v2953_v44, %v2952_v59 }
 0x71e   : > { %3364 = vmatmul.msk.bf16.gmra.mxu1 %vm507_vm0, %v2957_v30 }
 0x720   : > { %v2999_v58 = vpop.f32.mrf.mxu1 }
 0x721   : > { %v3000_v38 = vadd.f32 %v5016_v61, %v2999_v58 }
 0x723   : > { %v3027_v32 = vmul.f32 %v3000_v38, %v3000_v38  ;;  %v3019_v31 = vmul.f32 0.5, %v3000_v38 }
 0x725   : > { %v3035_v8 = vmul.f32 %v3027_v32, %v3000_v38 }
 0x727   : > { %v3043_v24 = vmul.f32 0.044715, %v3035_v8 }
 0x728   : > { %v3001_v43 = vpop.f32.mrf.mxu1 }
 0x729   : > { %v3051_v45 = vadd.f32 %v3043_v24, %v3000_v38  ;;  %v3002_v1 = vadd.f32 %v5016_v61, %v3001_v43 }
 0x72b   : > { %v3028_v46 = vmul.f32 %v3002_v1, %v3002_v1  ;;  %v3059_v5 = vmul.f32 0.7978846, %v3051_v45  ;;  %v3020_v18 = vmul.f32 0.5, %v3002_v1 }
 0x72d   : > { %v3036_v63 = vmul.f32 %v3028_v46, %v3002_v1  ;;  %3842 = vtanh.f32 %v3059_v5 }
 0x72f   : > { %v3044_v54 = vmul.f32 0.044715, %v3036_v63 }
 0x731   : > { %v3052_v25 = vadd.f32 %v3044_v54, %v3002_v1 }
 0x733   : > { %v3060_v29 = vmul.f32 0.7978846, %v3052_v25  ;;  %v3843_v6 = vpop.eup %3842 }
 0x734   : > { %v3075_v57 = vadd.f32 1.0, %v3843_v6 }
 0x735   : > { %3844 = vtanh.f32 %v3060_v29 }
 0x736   : > { %v3083_v51 = vmul.f32 %v3075_v57, %v3019_v31 }
 0x73b   : > { %v3845_v3 = vpop.eup %3844 }
 0x73c   : > { %v3076_v23 = vadd.f32 1.0, %v3845_v3 }
 0x73e   : > { %v3084_v11 = vmul.f32 %v3076_v23, %v3020_v18 }
 0x740   : > { %v3091_v27 = vpack.c.bf16 %v3084_v11, %v3083_v51 }
 0x742   : > { %3171 = vmatmul.bf16.vlgmr.msrb.gmra.mxu2 %v3091_v27 }
 0x750   : > { %v3004_v48 = vpop.f32.mrf.mxu1 }
 0x751   : > { %v3005_v52 = vadd.f32 %v5016_v61, %v3004_v48 }
 0x753   : > { %v3029_v7 = vmul.f32 %v3005_v52, %v3005_v52  ;;  %v3021_v56 = vmul.f32 0.5, %v3005_v52 }
 0x755   : > { %v3037_v2 = vmul.f32 %v3029_v7, %v3005_v52 }
 0x757   : > { %v3045_v9 = vmul.f32 0.044715, %v3037_v2 }
 0x758   : > { %v3006_v21 = vpop.f32.mrf.mxu1 }
 0x759   : > { %v3007_v41 = vadd.f32 %v5016_v61, %v3006_v21  ;;  %v3053_v22 = vadd.f32 %v3045_v9, %v3005_v52 }
 0x75b   : > { %v3030_v39 = vmul.f32 %v3007_v41, %v3007_v41  ;;  %v3061_v0 = vmul.f32 0.7978846, %v3053_v22  ;;  %v3022_v53 = vmul.f32 0.5, %v3007_v41 }
 0x75d   : > { %v3038_v60 = vmul.f32 %v3030_v39, %v3007_v41  ;;  %3846 = vtanh.f32 %v3061_v0 }
 0x75f   : > { %v3046_v16 = vmul.f32 0.044715, %v3038_v60 }
 0x761   : > { %v3054_v26 = vadd.f32 %v3046_v16, %v3007_v41 }
 0x763   : > { %v3062_v62 = vmul.f32 0.7978846, %v3054_v26  ;;  %v3847_v34 = vpop.eup %3846 }
 0x764   : > { %v3077_v42 = vadd.f32 1.0, %v3847_v34 }
 0x765   : > { %3848 = vtanh.f32 %v3062_v62 }
 0x766   : > { %v3085_v13 = vmul.f32 %v3077_v42, %v3021_v56 }
 0x76b   : > { %v3849_v20 = vpop.eup %3848 }
 0x76c   : > { %v3078_v10 = vadd.f32 1.0, %v3849_v20 }
 0x76e   : > { %v3086_v49 = vmul.f32 %v3078_v10, %v3022_v53 }
 0x770   : > { %v3092_v50 = vpack.c.bf16 %v3086_v49, %v3085_v13 }
 0x772   : > { %3176 = vmatmul.bf16.gmra.mxu2 %v3092_v50 }
 0x775   : > { %v3009_v36 = vpop.f32.mrf.mxu1 }
 0x776   : > { %v3010_v19 = vadd.f32 %v5016_v61, %v3009_v36 }
 0x778   : > { %v3031_v15 = vmul.f32 %v3010_v19, %v3010_v19  ;;  %v3023_v46 = vmul.f32 0.5, %v3010_v19 }
 0x77a   : > { %v3039_v59 = vmul.f32 %v3031_v15, %v3010_v19 }
 0x77c   : > { %v3047_v44 = vmul.f32 0.044715, %v3039_v59 }
 0x77d   : > { %v3011_v17 = vpop.f32.mrf.mxu1 }
 0x77e   : > { %v3012_v30 = vadd.f32 %v5016_v61, %v3011_v17  ;;  %v3055_v35 = vadd.f32 %v3047_v44, %v3010_v19 }
 0x780   : > { %v3032_v58 = vmul.f32 %v3012_v30, %v3012_v30  ;;  %v3063_v37 = vmul.f32 0.7978846, %v3055_v35  ;;  %v3024_v5 = vmul.f32 0.5, %v3012_v30 }
 0x782   : > { %v3040_v38 = vmul.f32 %v3032_v58, %v3012_v30  ;;  %3850 = vtanh.f32 %v3063_v37 }
 0x784   : > { %v3048_v32 = vmul.f32 0.044715, %v3040_v38 }
 0x786   : > { %v3056_v8 = vadd.f32 %v3048_v32, %v3012_v30 }
 0x788   : > { %v3064_v24 = vmul.f32 0.7978846, %v3056_v8  ;;  %v3851_v43 = vpop.eup %3850 }
 0x789   : > { %v3079_v45 = vadd.f32 1.0, %v3851_v43 }
 0x78a   : > { %3852 = vtanh.f32 %v3064_v24 }
 0x78b   : > { %v3087_v54 = vmul.f32 %v3079_v45, %v3023_v46 }
 0x790   : > { %v3853_v1 = vpop.eup %3852 }
 0x791   : > { %v3080_v63 = vadd.f32 1.0, %v3853_v1 }
 0x793   : > { %v3088_v25 = vmul.f32 %v3080_v63, %v3024_v5 }
 0x795   : > { %v3093_v29 = vpack.c.bf16 %v3088_v25, %v3087_v54 }
 0x797   : > { %3181 = vmatmul.bf16.gmra.mxu2 %v3093_v29 }
 0x79b   : > { %v3014_v6 = vpop.f32.mrf.mxu1 }
 0x79c   : > { %v3015_v57 = vadd.f32 %v5016_v61, %v3014_v6 }
 0x79e   : > { %v3033_v3 = vmul.f32 %v3015_v57, %v3015_v57  ;;  %v3025_v39 = vmul.f32 0.5, %v3015_v57 }
 0x7a0   : > { %v3041_v31 = vmul.f32 %v3033_v3, %v3015_v57 }
 0x7a2   : > { %v3049_v18 = vmul.f32 0.044715, %v3041_v31 }
 0x7a3   : > { %v3016_v23 = vpop.f32.mrf.mxu1 }
 0x7a4   : > { %v3057_v51 = vadd.f32 %v3049_v18, %v3015_v57  ;;  %v3017_v11 = vadd.f32 %v5016_v61, %v3016_v23  ;;  %v3679_v61 = vld [vmem:[%s5074_s14] ss:$0 sm:$0xff] }
 0x7a6   : > { %v3034_v27 = vmul.f32 %v3017_v11, %v3017_v11  ;;  %v3065_v48 = vmul.f32 0.7978846, %v3057_v51  ;;  %v3026_v60 = vmul.f32 0.5, %v3017_v11 }
 0x7a8   : > { %v3042_v52 = vmul.f32 %v3034_v27, %v3017_v11  ;;  %3854 = vtanh.f32 %v3065_v48 }
 0x7aa   : > { %v3050_v7 = vmul.f32 0.044715, %v3042_v52 }
 0x7ac   : > { %v3058_v2 = vadd.f32 %v3050_v7, %v3017_v11 }
 0x7ae   : > { %v3066_v9 = vmul.f32 0.7978846, %v3058_v2  ;;  %v3855_v21 = vpop.eup %3854 }
 0x7af   : > { %v3081_v41 = vadd.f32 1.0, %v3855_v21 }
 0x7b0   : > { %3856 = vtanh.f32 %v3066_v9 }
 0x7b1   : > { %v3089_v16 = vmul.f32 %v3081_v41, %v3025_v39 }
 0x7b6   : > { %v3857_v22 = vpop.eup %3856 }
 0x7b7   : > { %v3082_v0 = vadd.f32 1.0, %v3857_v22 }
 0x7b9   : > { %v3090_v26 = vmul.f32 %v3082_v0, %v3026_v60 }
 0x7bb   : > { %v3094_v62 = vpack.c.bf16 %v3090_v26, %v3089_v16 }
 0x7bd   : > { %3186 = vmatmul.bf16.gmra.mxu2 %v3094_v62 }
 0x7c5   : > { %v3172_v34 = vpop.f32.mrf.mxu2 }
 0x7c6   : > { %v3173_v42 = vadd.f32 %v3679_v61, %v3172_v34 }
 0x7c8   : > { %v3192_v20 = vadd.f32 %v3173_v42, %v4875_v4 }
 0x7ca   : > { %3200 = vst.msk [vmem:[%s496_s16] sm:$0xff] %vm507_vm0, %v3192_v20 }
 0x7cd   : > { %v3174_v56 = vpop.f32.mrf.mxu2 }
 0x7ce   : > { %v3175_v53 = vadd.f32 %v3679_v61, %v3174_v56 }
 0x7d0   : > { %v3193_v10 = vadd.f32 %v3175_v53, %v4880_v55 }
 0x7d2   : > { %3201 = vst.msk [vmem:[%s496_s16 + $0x8] sm:$0xff] %vm507_vm0, %v3193_v10 }
 0x7f5   : > { %v3177_v13 = vpop.f32.mrf.mxu2 }
 0x7f6   : > { %v3178_v49 = vadd.f32 %v3679_v61, %v3177_v13 }
 0x7f8   : > { %v3194_v50 = vadd.f32 %v3178_v49, %v4885_v47 }
 0x7fa   : > { %3202 = vst.msk [vmem:[%s496_s16 + $0x10] sm:$0xff] %vm507_vm0, %v3194_v50 }
 0x7fd   : > { %v3179_v36 = vpop.f32.mrf.mxu2 }
 0x7fe   : > { %v3180_v19 = vadd.f32 %v3679_v61, %v3179_v36 }
 0x800   : > { %v3195_v15 = vadd.f32 %v3180_v19, %v4890_v28 }
 0x802   : > { %3203 = vst.msk [vmem:[%s496_s16 + $0x18] sm:$0xff] %vm507_vm0, %v3195_v15 }
 0x81a   : > { %v3182_v4 = vpop.f32.mrf.mxu2 }
 0x81b   : > { %v3183_v59 = vadd.f32 %v3679_v61, %v3182_v4 }
 0x81d   : > { %v3196_v44 = vadd.f32 %v3183_v59, %v4895_v33 }
 0x81f   : > { %3204 = vst.msk [vmem:[%s496_s16 + $0x20] sm:$0xff] %vm507_vm0, %v3196_v44 }
 0x822   : > { %v3184_v55 = vpop.f32.mrf.mxu2 }
 0x823   : > { %v3185_v17 = vadd.f32 %v3679_v61, %v3184_v55 }
 0x825   : > { %v3197_v30 = vadd.f32 %v3185_v17, %v4900_v12 }
 0x827   : > { %3205 = vst.msk [vmem:[%s496_s16 + $0x28] sm:$0xff] %vm507_vm0, %v3197_v30 }
 0x840   : > { %v3187_v47 = vpop.f32.mrf.mxu2 }
 0x841   : > { %v3188_v35 = vadd.f32 %v3679_v61, %v3187_v47 }
 0x843   : > { %v3198_v58 = vadd.f32 %v3188_v35, %v4905_v40 }
 0x845   : > { %3206 = vst.msk [vmem:[%s496_s16 + $0x30] sm:$0xff] %vm507_vm0, %v3198_v58 }
 0x848   : > { %v3189_v28 = vpop.f32.mrf.mxu2 }
 0x849   : > { %v3190_v38 = vadd.f32 %v3679_v61, %v3189_v28 }
 0x84b   : > { %v3199_v37 = vadd.f32 %v3190_v38, %v4918_v14 }
 0x84d   : > { %3207 = vst.msk [vmem:[%s496_s16 + $0x38] sm:$0xff] %vm507_vm0, %v3199_v37 }
 0x84e PF: > { %s25_s18 = sadd.s32 1, %s3872_s18  }
 0x84f   : > { %p22_p4 = scmp.ge.s32.totalorder %s25_s18, 4  }
 0x851   :  { %24 = sbr.rel (!%p22_p4) target bundleno = 1 (0x1), region = 110 }

</bundles_post_ra>
